<compile_context>
chip_gen: v5e
topology: v5e:2x2
jax: 0.10.0
libtpu: 0.0.40
codegen_flags: <defaults>
</compile_context>

<pallas_src>
import jax
import jax.numpy as jnp
from jax import lax
from jax.experimental import pallas as pl
from jax.experimental.pallas import tpu as pltpu

DATA_ROW = 113
N_STATES = DATA_ROW * DATA_ROW   # 12769
HIDDEN = 50
N_ACTIONS = 4                    # len(env.action_space) is env-defined; small fixed value


def _mlp_kernel(x_ref, w1_ref, b1_ref, w2_ref, b2_ref, o_ref):
    # fc1: x (TB, K) bf16 contracted with torch-layout w1 (H, K) bf16 on K.
    # trans_b form -> lane-dense w1, f32 accumulation on the MXU.
    h = lax.dot_general(
        x_ref[...], w1_ref[...],
        dimension_numbers=(((1,), (1,)), ((), ())),
        preferred_element_type=jnp.float32,
    )
    h = jnp.maximum(h + b1_ref[...], 0.0)
    # out head: (TB, H) x (A, H)^T -> (TB, A). Tiny; keep in f32.
    out = lax.dot_general(
        h, w2_ref[...],
        dimension_numbers=(((1,), (1,)), ((), ())),
        preferred_element_type=jnp.float32,
    )
    o_ref[...] = (out + b2_ref[...]).astype(o_ref.dtype)


def net_forward(x, w1, b1, w2, b2, *, tb=256):
    """Forward pass of `Net`.

    x : (B, N_STATES) float32
    w1: (HIDDEN, N_STATES)  -- torch-native (out_features, in_features) layout
    b1: (HIDDEN,)
    w2: (N_ACTIONS, HIDDEN) -- torch-native layout
    b2: (N_ACTIONS,)
    returns (B, N_ACTIONS) float32
    """
    B, K = x.shape
    assert K == w1.shape[1]
    H = w1.shape[0]
    A = w2.shape[0]

    # Batch tile: either the whole batch, or a multiple of 8 rows (sublane rule).
    tb = min(tb, B)
    if tb != B and tb % 8 != 0:
        tb = max(8, (tb // 8) * 8)
    grid = (pl.cdiv(B, tb),)

    # bf16 for the two dominant streams (x, w1); tiny operands stay f32.
    x_bf = x.astype(jnp.bfloat16)
    w1_bf = w1.astype(jnp.bfloat16)
    b1_2d = b1.reshape(1, H).astype(jnp.float32)
    w2_f = w2.astype(jnp.float32)
    b2_2d = b2.reshape(1, A).astype(jnp.float32)

    cost = pl.CostEstimate(
        flops=2 * B * K * H + 2 * B * H * A,
        transcendentals=0,
        bytes_accessed=(x_bf.size * 2 + w1_bf.size * 2 + b1_2d.size * 4
                        + w2_f.size * 4 + b2_2d.size * 4 + B * A * 4),
    )

    return pl.pallas_call(
        _mlp_kernel,
        out_shape=jax.ShapeDtypeStruct((B, A), jnp.float32),
        grid=grid,
        in_specs=[
            pl.BlockSpec((tb, K), lambda i: (i, 0)),   # x: tiled over batch
            pl.BlockSpec((H, K), lambda i: (0, 0)),    # w1: resident, lane-dense
            pl.BlockSpec((1, H), lambda i: (0, 0)),    # b1
            pl.BlockSpec((A, H), lambda i: (0, 0)),    # w2
            pl.BlockSpec((1, A), lambda i: (0, 0)),    # b2
        ],
        out_specs=pl.BlockSpec((tb, A), lambda i: (i, 0)),
        compiler_params=pltpu.CompilerParams(
            dimension_semantics=("parallel",),
            vmem_limit_bytes=32 * 1024 * 1024,
        ),
        cost_estimate=cost,
    )(x_bf, w1_bf, b1_2d, w2_f, b2_2d)


def init_params(key):
    """Deterministic init mirroring the PyTorch module (torch-native layouts):
    weights ~ Normal(0, 0.1); biases ~ Uniform(-1/sqrt(fan_in), 1/sqrt(fan_in))."""
    k1, k2, k3, k4 = jax.random.split(key, 4)
    w1 = 0.1 * jax.random.normal(k1, (HIDDEN, N_STATES), jnp.float32)
    bound1 = 1.0 / jnp.sqrt(jnp.float32(N_STATES))
    b1 = jax.random.uniform(k2, (HIDDEN,), jnp.float32, -bound1, bound1)
    w2 = 0.1 * jax.random.normal(k3, (N_ACTIONS, HIDDEN), jnp.float32)
    bound2 = 1.0 / jnp.sqrt(jnp.float32(HIDDEN))
    b2 = jax.random.uniform(k4, (N_ACTIONS,), jnp.float32, -bound2, bound2)
    return w1, b1, w2, b2


if __name__ == "__main__":
    key = jax.random.PRNGKey(0)
    k_x, k_p = jax.random.split(key)
    B = 2
    x = jax.random.normal(k_x, (B, N_STATES), jnp.float32)
    w1, b1, w2, b2 = init_params(k_p)

    out = net_forward(x, w1, b1, w2, b2)
    jax.block_until_ready(out)
    assert out.shape == (B, N_ACTIONS)

    # Reference with the same bf16 input rounding (f32 accumulate), full precision.
    xb = x.astype(jnp.bfloat16).astype(jnp.float32)
    w1b = w1.astype(jnp.bfloat16).astype(jnp.float32)
    h_ref = jnp.maximum(
        lax.dot_general(xb, w1b, (((1,), (1,)), ((), ())),
                        precision=lax.Precision.HIGHEST) + b1[None, :], 0.0)
    ref = lax.dot_general(h_ref, w2, (((1,), (1,)), ((), ())),
                          precision=lax.Precision.HIGHEST) + b2[None, :]
    assert jnp.allclose(out, ref, atol=1e-2, rtol=1e-2), (out, ref)

    # Sanity check against the pure-f32 math (looser tolerance for bf16 inputs).
    ref_f32 = jnp.maximum(
        lax.dot_general(x, w1, (((1,), (1,)), ((), ())),
                        precision=lax.Precision.HIGHEST) + b1[None, :], 0.0)
    ref_f32 = lax.dot_general(ref_f32, w2, (((1,), (1,)), ((), ())),
                              precision=lax.Precision.HIGHEST) + b2[None, :]
    assert jnp.allclose(out, ref_f32, atol=5e-2, rtol=5e-2)

    print("KERNEL_OK")
</pallas_src>

<mosaic_0001>
module attributes {stable_mosaic.version = 11 : i64} {
  func.func @_mlp_kernel(%arg0: i32, %arg1: memref<2x12769xbf16, #tpu.memory_space<vmem>>, %arg2: memref<50x12769xbf16, #tpu.memory_space<vmem>>, %arg3: memref<1x50xf32, #tpu.memory_space<vmem>>, %arg4: memref<4x50xf32, #tpu.memory_space<vmem>>, %arg5: memref<1x4xf32, #tpu.memory_space<vmem>>, %arg6: memref<2x4xf32, #tpu.memory_space<vmem>>) attributes {dimension_semantics = [#tpu.dimension_semantics<parallel>], iteration_bounds = array<i64: 1>, scalar_prefetch = 0 : i64, scratch_operands = 0 : i64, tpu.core_type = #tpu.core_type<tc>, window_params = [{transform_indices = @transform_0, window_bounds = array<i64: 2, 12769>}, {pipeline_mode = #tpu.pipeline_mode<synchronous>, transform_indices = @transform_1, window_bounds = array<i64: 50, 12769>}, {pipeline_mode = #tpu.pipeline_mode<synchronous>, transform_indices = @transform_2, window_bounds = array<i64: 1, 50>}, {pipeline_mode = #tpu.pipeline_mode<synchronous>, transform_indices = @transform_3, window_bounds = array<i64: 4, 50>}, {pipeline_mode = #tpu.pipeline_mode<synchronous>, transform_indices = @transform_4, window_bounds = array<i64: 1, 4>}, {transform_indices = @transform_5, window_bounds = array<i64: 2, 4>}]} {
    %c0 = arith.constant 0 : index
    %c0_0 = arith.constant 0 : index
    %0 = vector.load %arg1[%c0, %c0_0] : memref<2x12769xbf16, #tpu.memory_space<vmem>>, vector<2x12769xbf16>
    %c0_1 = arith.constant 0 : index
    %c0_2 = arith.constant 0 : index
    %1 = vector.load %arg2[%c0_1, %c0_2] : memref<50x12769xbf16, #tpu.memory_space<vmem>>, vector<50x12769xbf16>
    %cst = arith.constant dense<0.000000e+00> : vector<2x50xf32>
    %2 = tpu.matmul %0, %1, %cst {dimension_numbers = #tpu.dot_dimension_numbers<[1], [1], [0], [0], [0, 0, 1, 0], [], []>} : vector<2x12769xbf16>, vector<50x12769xbf16>, vector<2x50xf32> -> vector<2x50xf32>
    %c0_3 = arith.constant 0 : index
    %c0_4 = arith.constant 0 : index
    %3 = vector.load %arg3[%c0_3, %c0_4] : memref<1x50xf32, #tpu.memory_space<vmem>>, vector<1x50xf32>
    %4 = vector.broadcast %3 : vector<1x50xf32> to vector<2x50xf32>
    %5 = arith.addf %2, %4 : vector<2x50xf32>
    %cst_5 = arith.constant 0.000000e+00 : f32
    %6 = vector.broadcast %cst_5 : f32 to vector<2x50xf32>
    %7 = arith.maximumf %5, %6 : vector<2x50xf32>
    %c0_6 = arith.constant 0 : index
    %c0_7 = arith.constant 0 : index
    %8 = vector.load %arg4[%c0_6, %c0_7] : memref<4x50xf32, #tpu.memory_space<vmem>>, vector<4x50xf32>
    %cst_8 = arith.constant dense<0.000000e+00> : vector<2x4xf32>
    %9 = tpu.matmul %7, %8, %cst_8 {dimension_numbers = #tpu.dot_dimension_numbers<[1], [1], [0], [0], [0, 0, 1, 0], [], []>} : vector<2x50xf32>, vector<4x50xf32>, vector<2x4xf32> -> vector<2x4xf32>
    %c0_9 = arith.constant 0 : index
    %c0_10 = arith.constant 0 : index
    %10 = vector.load %arg5[%c0_9, %c0_10] : memref<1x4xf32, #tpu.memory_space<vmem>>, vector<1x4xf32>
    %11 = vector.broadcast %10 : vector<1x4xf32> to vector<2x4xf32>
    %12 = arith.addf %9, %11 : vector<2x4xf32>
    %c0_11 = arith.constant 0 : index
    %c0_12 = arith.constant 0 : index
    %13 = vector.load %arg6[%c0_11, %c0_12] : memref<2x4xf32, #tpu.memory_space<vmem>>, vector<2x4xf32>
    tpu.vector_store %arg6[%c0_11, %c0_12], %12 {strides = array<i32>} : memref<2x4xf32, #tpu.memory_space<vmem>>, vector<2x4xf32>,
    return
  }
  func.func @transform_0(%arg0: i32) -> (i32, i32) {
    %c0_i32 = arith.constant 0 : i32
    %c0_i32_0 = arith.constant 0 : i32
    return %arg0, %c0_i32 : i32, i32
  }
  func.func @transform_1(%arg0: i32) -> (i32, i32) {
    %c0_i32 = arith.constant 0 : i32
    %c0_i32_0 = arith.constant 0 : i32
    %c0_i32_1 = arith.constant 0 : i32
    return %c0_i32, %c0_i32_0 : i32, i32
  }
  func.func @transform_2(%arg0: i32) -> (i32, i32) {
    %c0_i32 = arith.constant 0 : i32
    %c0_i32_0 = arith.constant 0 : i32
    %c0_i32_1 = arith.constant 0 : i32
    return %c0_i32, %c0_i32_0 : i32, i32
  }
  func.func @transform_3(%arg0: i32) -> (i32, i32) {
    %c0_i32 = arith.constant 0 : i32
    %c0_i32_0 = arith.constant 0 : i32
    %c0_i32_1 = arith.constant 0 : i32
    return %c0_i32, %c0_i32_0 : i32, i32
  }
  func.func @transform_4(%arg0: i32) -> (i32, i32) {
    %c0_i32 = arith.constant 0 : i32
    %c0_i32_0 = arith.constant 0 : i32
    %c0_i32_1 = arith.constant 0 : i32
    return %c0_i32, %c0_i32_0 : i32, i32
  }
  func.func @transform_5(%arg0: i32) -> (i32, i32) {
    %c0_i32 = arith.constant 0 : i32
    %c0_i32_0 = arith.constant 0 : i32
    return %arg0, %c0_i32 : i32, i32
  }
}

</mosaic_0001>

<bundles_post_ra>
// kernel: tpu_custom_call.1
= control target key start
LH: loop header
LB: loop body
LE: loop exit
PB: predicated region body
PF: predicated region fallthrough
CT: control target
= control target key end

     0   :  { %10 = vsyncpa [#allocation3], 0  ;;  %s5627_s0 = inlined_call_operand.hbm [shape: bf16[2,12769], index: 0, kind: input, shape index: {}]   ;;  %s5628_s1 = inlined_call_operand.hbm [shape: bf16[50,12769], index: 1, kind: input, shape index: {}]   ;;  %s5629_s2 = inlined_call_operand.hbm [shape: f32[1,50], index: 2, kind: input, shape index: {}]   ;;  %s5630_s3 = inlined_call_operand.hbm [shape: f32[4,50], index: 3, kind: input, shape index: {}]   ;;  %s5631_s4 = inlined_call_operand.hbm [shape: f32[1,4], index: 4, kind: input, shape index: {}]   ;;  %s5632_s5 = inlined_call_operand.hbm [shape: f32[2,4], index: 5, kind: output, shape index: {}]  }
   0x1   :  { %11 = vsyncpa [#allocation6], 0 }
   0x2   :  { %12 = vsyncpa [#allocation9], 0  ;;  %s29_s20 = sshll.u32 %s5628_s1, 4  ;;  %s30_s20 = int_to_ptr.hbm [resolvable:$true] %s29_s20 }
   0x3   :  { %13 = vsyncpa [#allocation4], 0  ;;  %s5564_s21 = smov [#allocation5]   ;;  %s54_s25 = sshll.u32 %s5630_s3, 4  ;;  %s55_s25 = int_to_ptr.hbm [resolvable:$true] %s54_s25 }
   0x4   :  { %s31_s22 = sshll.u32 %s5564_s21, 4  ;;  %s5565_s26 = smov 6400   ;;  %s32_s22 = int_to_ptr.vmem [resolvable:$true] %s31_s22 }
   0x5   :  { %s5566_s27 = smov 400   ;;  %s5567_s28 = smov [#allocation8]  }
   0x6   :  { %37 = dma.hbm_to_vmem [thread:$0]  %s30_s20, 44800, %s32_s22, [#allocation6], %s5565_s26, %s5565_s26, %s5566_s27  }
   0x7   :  { %s56_s29 = sshll.u32 %s5567_s28, 4  ;;  %s19_s7 = sshll.u32 %s5627_s0, 4  ;;  %s57_s29 = int_to_ptr.vmem [resolvable:$true] %s56_s29  ;;  %s20_s7 = int_to_ptr.hbm [resolvable:$true] %s19_s7 }
   0x8   :  { %59 = dma.hbm_to_vmem [thread:$0]  %s55_s25, 64, %s57_s29, [#allocation9]  }
   0x9   :  { %s43_s9 = sshll.u32 %s5629_s2, 4  ;;  %s5568_s10 = smov [#allocation2]   ;;  %s44_s9 = int_to_ptr.hbm [resolvable:$true] %s43_s9 }
   0xa   :  { %s21_s11 = sshll.u32 %s5568_s10, 4  ;;  %s5569_s3 = smov [#allocation7]   ;;  %s22_s11 = int_to_ptr.vmem [resolvable:$true] %s21_s11 }
   0xb   :  { %24 = dma.hbm_to_vmem [thread:$0]  %s20_s7, 1600, %s22_s11, [#allocation3]  }
   0xc   :  { %s45_s12 = sshll.u32 %s5569_s3, 4  ;;  %s65_s15 = sshll.u32 %s5631_s4, 4  ;;  %s46_s12 = int_to_ptr.vmem [resolvable:$true] %s45_s12  ;;  %s66_s15 = int_to_ptr.hbm [resolvable:$true] %s65_s15 }
   0xd   :  { %48 = dma.hbm_to_vmem [thread:$0]  %s44_s9, 16, %s46_s12, [#allocation6]  }
   0xe   :  { %s5570_s0 = smov [#allocation10]  }
   0xf   :  { %s67_s16 = sshll.u32 %s5570_s0, 4  ;;  %s68_s16 = int_to_ptr.vmem [resolvable:$true] %s67_s16 }
  0x10   :  { %70 = dma.hbm_to_vmem [thread:$0]  %s66_s15, 16, %s68_s16, [#allocation9]  }
  0x11   :  { %5556 = dma.done.wait [#allocation3], 1600  }
  0x12   :  { %5557 = vsyncadd [#allocation3], 4294965696 }
  0x13   :  { %5558 = dma.done.wait [#allocation6], 44816  }
  0x14   :  { %5559 = vsyncadd [#allocation6], 4294922480 }
  0x15   :  { %5560 = dma.done.wait [#allocation9], 80  }
  0x16   :  { %5561 = vsyncadd [#allocation9], 4294967216  ;;  %v405_v0 = vld [vmem:[#allocation5 + $0x960] sm:$0x11]  ;;  %v406_v1 = vld [vmem:[#allocation5 + $0x968] sm:$0x11] }
  0x17   :  { %v1634_v2 = vunpack.c.l.b16 %v405_v0  ;;  %v1635_v3 = vunpack.c.h.b16 %v405_v0  ;;  %v1636_v4 = vunpack.c.l.b16 %v406_v1  ;;  %v1637_v5 = vunpack.c.h.b16 %v406_v1  ;;  %v4701_v10 = vld [vmem:[#allocation5 + $0x640] sm:$0xf]  ;;  %v5352_v11 = vld [vmem:[#allocation5 + $0x7cc] sm:$0xf0]  ;;  %v5302_v12 = vld [vmem:[#allocation5 + $0x644] sm:$0xf] }
  0x18   :  { %v4703_v13 = vld [vmem:[#allocation5 + $0x7d0] sm:$0xf0]  ;;  %v4709_v14 = vld [vmem:[#allocation5 + $0x648] sm:$0xf]  ;;  %v5353_v15 = vld [vmem:[#allocation5 + $0x7d4] sm:$0xf0]  ;;  %v4702_v18 = vor.u32 %v5352_v11, %v4701_v10 }
  0x19   :  { %v2034_v6 = vpack.c.b16 %v1634_v2, %v1634_v2  ;;  %v2035_v7 = vpack.c.b16 %v1635_v3, %v1635_v3  ;;  %v2036_v8 = vpack.c.b16 %v1636_v4, %v1636_v4  ;;  %v2037_v9 = vpack.c.b16 %v1637_v5, %v1637_v5  ;;  %v5303_v16 = vld [vmem:[#allocation5 + $0x64c] sm:$0xf]  ;;  %v4711_v17 = vld [vmem:[#allocation5 + $0x7d8] sm:$0xf0]  ;;  %v4301_v22 = vld [vmem:[#allocation5 + $0x320] sm:$0xf] }
  0x1a   :  { %v4706_v19 = vor.u32 %v5302_v12, %v4703_v13  ;;  %v4710_v20 = vor.u32 %v5353_v15, %v4709_v14  ;;  %v4714_v21 = vor.u32 %v5303_v16, %v4711_v17  ;;  %v5252_v23 = vld [vmem:[#allocation5 + $0x4ac] sm:$0xf0]  ;;  %v92_v24 = vld [vmem:[#allocation2] sm:$0xff]  ;;  %v5202_v25 = vld [vmem:[#allocation5 + $0x324] sm:$0xf]  ;;  %vm2530_vm0 = vcmask 793600  }
  0x1b   :  { %2549 = vmatpush.bf16.xpose.msra.mxu0 %v2034_v6  ;;  %2562 = vmatpush.bf16.xpose.msra.mxu1 %v2035_v7  ;;  %v4303_v26 = vld [vmem:[#allocation5 + $0x4b0] sm:$0xf0]  ;;  %v4309_v27 = vld [vmem:[#allocation5 + $0x328] sm:$0xf]  ;;  %v5253_v28 = vld [vmem:[#allocation5 + $0x4b4] sm:$0xf0]  ;;  %v4302_v31 = vor.u32 %v5252_v23, %v4301_v22 }
  0x1c   :  { %2575 = vmatpush.bf16.xpose.msra.mxu2 %v2036_v8  ;;  %2588 = vmatpush.bf16.xpose.msra.mxu3 %v2037_v9  ;;  %v5203_v29 = vld [vmem:[#allocation5 + $0x32c] sm:$0xf]  ;;  %v4311_v30 = vld [vmem:[#allocation5 + $0x4b8] sm:$0xf0]  ;;  %460 = vst [vmem:[#allocation1] ss:$9 sm:$0xff] %v92_v24  ;;  %v4306_v32 = vor.u32 %v5202_v25, %v4303_v26  ;;  %v4310_v33 = vor.u32 %v5253_v28, %v4309_v27 }
  0x1d   :  { %v4314_v34 = vor.u32 %v5203_v29, %v4311_v30  ;;  %v407_v35 = vld [vmem:[#allocation5 + $0x970] sm:$0x11]  ;;  %v3901_v36 = vld [vmem:[#allocation5] sm:$0xf]  ;;  %v408_v38 = vld [vmem:[#allocation5 + $0x978] sm:$0x11] }
  0x1e   :  { %v5152_v37 = vld [vmem:[#allocation5 + $0x18c] sm:$0xf0]  ;;  %v5102_v39 = vld [vmem:[#allocation5 + $0x4] sm:$0xf]  ;;  %v3903_v40 = vld [vmem:[#allocation5 + $0x190] sm:$0xf0]  ;;  %v1638_v45 = vunpack.c.l.b16 %v407_v35  ;;  %v1639_v46 = vunpack.c.h.b16 %v407_v35  ;;  %v1640_v47 = vunpack.c.l.b16 %v408_v38  ;;  %v1641_v48 = vunpack.c.h.b16 %v408_v38 }
  0x1f   :  { %v3909_v41 = vld [vmem:[#allocation5 + $0x8] sm:$0xf]  ;;  %v5153_v42 = vld [vmem:[#allocation5 + $0x194] sm:$0xf0]  ;;  %v5103_v43 = vld [vmem:[#allocation5 + $0xc] sm:$0xf]  ;;  %v3902_v49 = vor.u32 %v5152_v37, %v3901_v36  ;;  %v3906_v50 = vor.u32 %v5102_v39, %v3903_v40 }
  0x20   :  { %v3911_v44 = vld [vmem:[#allocation5 + $0x198] sm:$0xf0]  ;;  %v3910_v51 = vor.u32 %v5153_v42, %v3909_v41  ;;  %v2038_v53 = vpack.c.b16 %v1638_v45, %v1638_v45  ;;  %v2039_v54 = vpack.c.b16 %v1639_v46, %v1639_v46  ;;  %v2040_v55 = vpack.c.b16 %v1640_v47, %v1640_v47  ;;  %v4717_v57 = vld [vmem:[#allocation5 + $0x650] sm:$0xf]  ;;  %v5354_v58 = vld [vmem:[#allocation5 + $0x7dc] sm:$0xf0] }
  0x21   :  { %v3914_v52 = vor.u32 %v5103_v43, %v3911_v44  ;;  %v2041_v56 = vpack.c.b16 %v1641_v48, %v1641_v48  ;;  %v5304_v59 = vld [vmem:[#allocation5 + $0x654] sm:$0xf]  ;;  %v4719_v60 = vld [vmem:[#allocation5 + $0x7e0] sm:$0xf0]  ;;  %v4725_v61 = vld [vmem:[#allocation5 + $0x658] sm:$0xf]  ;;  %v4718_v5 = vor.u32 %v5354_v58, %v4717_v57 }
  0x22   :  { %v5355_v62 = vld [vmem:[#allocation5 + $0x7e4] sm:$0xf0]  ;;  %v5305_v63 = vld [vmem:[#allocation5 + $0x65c] sm:$0xf]  ;;  %v4727_v0 = vld [vmem:[#allocation5 + $0x7e8] sm:$0xf0]  ;;  %v4722_v6 = vor.u32 %v5304_v59, %v4719_v60 }
  0x23   :  { %2550 = vmatpush.bf16.xpose.msra.mxu0 %v4702_v18  ;;  %2563 = vmatpush.bf16.xpose.msra.mxu1 %v4706_v19  ;;  %v461_v1 = vld [vmem:[#allocation1] sm:$0xff]  ;;  %v462_v2 = vld [vmem:[#allocation1 + $0x9] sm:$0xff]  ;;  %v463_v3 = vld [vmem:[#allocation1 + $0x12] sm:$0xff]  ;;  %v4726_v7 = vor.u32 %v5355_v62, %v4725_v61  ;;  %v4730_v8 = vor.u32 %v5305_v63, %v4727_v0  ;;  %vm3851_vm1 = vcmask 408576   ;;  %s5571_s2 = smov [#allocation11]   ;;  %s3887_s19 = sshll.u32 %s5632_s5, 4  ;;  %s3888_s19 = int_to_ptr.hbm [resolvable:$true] %s3887_s19 }
  0x24   :  { %2576 = vmatpush.bf16.xpose.msra.mxu2 %v4710_v20  ;;  %2589 = vmatpush.bf16.xpose.msra.mxu3 %v4714_v21  ;;  %v464_v4 = vld [vmem:[#allocation1 + $0x1b] sm:$0xff]  ;;  %v5254_v10 = vld [vmem:[#allocation5 + $0x4bc] sm:$0xf0]  ;;  %v4319_v12 = vld [vmem:[#allocation5 + $0x4c0] sm:$0xf0]  ;;  %s3885_s4 = sshll.u32 %s5571_s2, 4  ;;  %s3886_s4 = int_to_ptr.vmem [resolvable:$true] %s3885_s4 }
  0x25   :  { %v4317_v9 = vld [vmem:[#allocation5 + $0x330] sm:$0xf]  ;;  %v5204_v11 = vld [vmem:[#allocation5 + $0x334] sm:$0xf]  ;;  %v4325_v13 = vld [vmem:[#allocation5 + $0x338] sm:$0xf] }
  0x26   :  { %v5255_v14 = vld [vmem:[#allocation5 + $0x4c4] sm:$0xf0]  ;;  %v5205_v15 = vld [vmem:[#allocation5 + $0x33c] sm:$0xf]  ;;  %v4327_v16 = vld [vmem:[#allocation5 + $0x4c8] sm:$0xf0]  ;;  %v4318_v17 = vor.u32 %v5254_v10, %v4317_v9  ;;  %v4322_v18 = vor.u32 %v5204_v11, %v4319_v12 }
  0x27   :  { %v4326_v19 = vor.u32 %v5255_v14, %v4325_v13  ;;  %v4330_v20 = vor.u32 %v5205_v15, %v4327_v16  ;;  %v409_v21 = vld [vmem:[#allocation5 + $0x980] sm:$0x11]  ;;  %v3917_v22 = vld [vmem:[#allocation5 + $0x10] sm:$0xf]  ;;  %v5104_v24 = vld [vmem:[#allocation5 + $0x14] sm:$0xf] }
  0x28   :  { %v5154_v23 = vld [vmem:[#allocation5 + $0x19c] sm:$0xf0]  ;;  %v3919_v25 = vld [vmem:[#allocation5 + $0x1a0] sm:$0xf0]  ;;  %v410_v26 = vld [vmem:[#allocation5 + $0x988] sm:$0x11] }
  0x29   :  { %v3925_v27 = vld [vmem:[#allocation5 + $0x18] sm:$0xf]  ;;  %v5155_v28 = vld [vmem:[#allocation5 + $0x1a4] sm:$0xf0]  ;;  %v5105_v29 = vld [vmem:[#allocation5 + $0x1c] sm:$0xf]  ;;  %v1644_v38 = vunpack.c.l.b16 %v410_v26  ;;  %v1645_v39 = vunpack.c.h.b16 %v410_v26  ;;  %v3918_v40 = vor.u32 %v5154_v23, %v3917_v22  ;;  %v3922_v41 = vor.u32 %v5104_v24, %v3919_v25 }
  0x2a   :  { %v3927_v30 = vld [vmem:[#allocation5 + $0x1a8] sm:$0xf0]  ;;  %v468_v35 = vld [vmem:[#allocation1 + $0x3f] sm:$0xff]  ;;  %v466_v36 = vld [vmem:[#allocation1 + $0x2d] sm:$0xff]  ;;  %v3926_v42 = vor.u32 %v5155_v28, %v3925_v27  ;;  %vm3878_vm2 = vcmask 25600  }
  0x2b   :  { %2551 = vmatpush.bf16.xpose.msra.mxu0 %v4302_v31  ;;  %2564 = vmatpush.bf16.xpose.msra.mxu1 %v4306_v32  ;;  %v467_v31 = vld [vmem:[#allocation1 + $0x36] sm:$0xff]  ;;  %v465_v32 = vld [vmem:[#allocation1 + $0x24] sm:$0xff]  ;;  %v3930_v43 = vor.u32 %v5105_v29, %v3927_v30  ;;  %v2044_v46 = vpack.c.b16 %v1644_v38, %v1644_v38  ;;  %v2045_v47 = vpack.c.b16 %v1645_v39, %v1645_v39  ;;  %v4733_v48 = vld [vmem:[#allocation5 + $0x660] sm:$0xf] }
  0x2c   :  { %2577 = vmatpush.bf16.xpose.msra.mxu2 %v4310_v33  ;;  %2590 = vmatpush.bf16.xpose.msra.mxu3 %v4314_v34  ;;  %v1642_v33 = vunpack.c.l.b16 %v409_v21  ;;  %v1643_v34 = vunpack.c.h.b16 %v409_v21  ;;  %v93_v37 = vld [vmem:[#allocation2 + $0x8] sm:$0xff]  ;;  %v4333_v60 = vld [vmem:[#allocation5 + $0x340] sm:$0xf]  ;;  %v5256_v61 = vld [vmem:[#allocation5 + $0x4cc] sm:$0xf0] }
  0x2d   :  { %470 = vst [vmem:[#allocation1] ss:$9 sm:$0xff] %v93_v37  ;;  %v5206_v62 = vld [vmem:[#allocation5 + $0x344] sm:$0xf]  ;;  %v4335_v63 = vld [vmem:[#allocation5 + $0x4d0] sm:$0xf0] }
  0x2e   :  { %v2042_v44 = vpack.c.b16 %v1642_v33, %v1642_v33  ;;  %v2043_v45 = vpack.c.b16 %v1643_v34, %v1643_v34  ;;  %v4341_v0 = vld [vmem:[#allocation5 + $0x348] sm:$0xf]  ;;  %v3933_v9 = vld [vmem:[#allocation5 + $0x20] sm:$0xf]  ;;  %v5156_v10 = vld [vmem:[#allocation5 + $0x1ac] sm:$0xf0] }
  0x2f   :  { %v412_v11 = vld [vmem:[#allocation5 + $0x998] sm:$0x11]  ;;  %v5106_v12 = vld [vmem:[#allocation5 + $0x24] sm:$0xf]  ;;  %v3935_v13 = vld [vmem:[#allocation5 + $0x1b0] sm:$0xf0]  ;;  %v3934_v22 = vor.u32 %v5156_v10, %v3933_v9 }
  0x30   :  { %v3941_v14 = vld [vmem:[#allocation5 + $0x28] sm:$0xf]  ;;  %v5157_v15 = vld [vmem:[#allocation5 + $0x1b4] sm:$0xf0]  ;;  %v5107_v16 = vld [vmem:[#allocation5 + $0x2c] sm:$0xf]  ;;  %v1649_v21 = vunpack.c.h.b16 %v412_v11  ;;  %v3938_v23 = vor.u32 %v5106_v12, %v3935_v13 }
  0x31   :  { %v3942_v24 = vor.u32 %v5157_v15, %v3941_v14  ;;  %v5358_v33 = vld [vmem:[#allocation5 + $0x7fc] sm:$0xf0]  ;;  %v5308_v34 = vld [vmem:[#allocation5 + $0x674] sm:$0xf]  ;;  %v5359_v37 = vld [vmem:[#allocation5 + $0x804] sm:$0xf0] }
  0x32   :  { %v2049_v29 = vpack.c.b16 %v1649_v21, %v1649_v21  ;;  %v5309_v38 = vld [vmem:[#allocation5 + $0x67c] sm:$0xf]  ;;  %v4759_v39 = vld [vmem:[#allocation5 + $0x808] sm:$0xf0]  ;;  %v4765_v21 = vld [vmem:[#allocation5 + $0x680] sm:$0xf] }
  0x33   :  { %2552 = vmatpush.bf16.xpose.msra.mxu0 %v3902_v49  ;;  %2565 = vmatpush.bf16.xpose.msra.mxu1 %v3906_v50  ;;  %v5356_v49 = vld [vmem:[#allocation5 + $0x7ec] sm:$0xf0]  ;;  %v5306_v50 = vld [vmem:[#allocation5 + $0x664] sm:$0xf] }
  0x34   :  { %2578 = vmatpush.bf16.xpose.msra.mxu2 %v3910_v51  ;;  %2591 = vmatpush.bf16.xpose.msra.mxu3 %v3914_v52  ;;  %v4735_v51 = vld [vmem:[#allocation5 + $0x7f0] sm:$0xf0]  ;;  %v4741_v52 = vld [vmem:[#allocation5 + $0x668] sm:$0xf]  ;;  %v94_v10 = vld [vmem:[#allocation2 + $0x10] sm:$0xff] }
  0x35   :  { %v4738_v57 = vor.u32 %v5306_v50, %v4735_v51  ;;  %v471_v30 = vld [vmem:[#allocation1] sm:$0xff]  ;;  %v5259_v51 = vld [vmem:[#allocation5 + $0x4e4] sm:$0xf0] }
  0x36   :  { %v4357_v50 = vld [vmem:[#allocation5 + $0x358] sm:$0xf] }
  0x37   :  { %v478_v9 = vld [vmem:[#allocation1 + $0x3f] sm:$0xff] }
  0x3a   :  { %2553 = vmatmul.bf16.vlgmr.msra.gmra.mxu0 %v461_v1  ;;  %2566 = vmatmul.bf16.vlgmr.msra.gmra.mxu1 %v462_v2  ;;  %v5257_v1 = vld [vmem:[#allocation5 + $0x4d4] sm:$0xf0]  ;;  %v5207_v2 = vld [vmem:[#allocation5 + $0x34c] sm:$0xf] }
  0x3b   :  { %2601 = vmatpush.bf16.xpose.msrb.mxu0 %v2038_v53  ;;  %2614 = vmatpush.bf16.xpose.msrb.mxu1 %v2039_v54  ;;  %v5357_v53 = vld [vmem:[#allocation5 + $0x7f4] sm:$0xf0]  ;;  %v5307_v54 = vld [vmem:[#allocation5 + $0x66c] sm:$0xf] }
  0x3c   :  { %2627 = vmatpush.bf16.xpose.msrb.mxu2 %v2040_v55  ;;  %2640 = vmatpush.bf16.xpose.msrb.mxu3 %v2041_v56  ;;  %v4743_v55 = vld [vmem:[#allocation5 + $0x7f8] sm:$0xf0]  ;;  %v4734_v56 = vor.u32 %v5356_v49, %v4733_v48  ;;  %v4742_v58 = vor.u32 %v5357_v53, %v4741_v52  ;;  %v5208_v48 = vld [vmem:[#allocation5 + $0x354] sm:$0xf]  ;;  %v4351_v49 = vld [vmem:[#allocation5 + $0x4e0] sm:$0xf0] }
  0x3d   :  { %2579 = vmatmul.bf16.vlgmr.msra.gmra.mxu2 %v463_v3  ;;  %2592 = vmatmul.bf16.vlgmr.msra.gmra.mxu3 %v464_v4  ;;  %v4746_v59 = vor.u32 %v5307_v54, %v4743_v55  ;;  %v4343_v3 = vld [vmem:[#allocation5 + $0x4d8] sm:$0xf0]  ;;  %v4334_v4 = vor.u32 %v5256_v61, %v4333_v60  ;;  %v4359_v53 = vld [vmem:[#allocation5 + $0x4e8] sm:$0xf0]  ;;  %v4354_v55 = vor.u32 %v5208_v48, %v4351_v49  ;;  %v5158_v60 = vld [vmem:[#allocation5 + $0x1bc] sm:$0xf0] }
  0x3e   :  { %v5209_v52 = vld [vmem:[#allocation5 + $0x35c] sm:$0xf]  ;;  %v5108_v61 = vld [vmem:[#allocation5 + $0x34] sm:$0xf]  ;;  %v5110_v49 = vld [vmem:[#allocation5 + $0x44] sm:$0xf] }
  0x3f   :  { %v416_v48 = vld [vmem:[#allocation5 + $0x9b8] sm:$0x11] }
  0x43   :  { %2602 = vmatpush.bf16.xpose.msrb.mxu0 %v4718_v5  ;;  %2615 = vmatpush.bf16.xpose.msrb.mxu1 %v4722_v6  ;;  %v4338_v5 = vor.u32 %v5206_v62, %v4335_v63  ;;  %v4342_v6 = vor.u32 %v5257_v1, %v4341_v0  ;;  %v3951_v62 = vld [vmem:[#allocation5 + $0x1c0] sm:$0xf0]  ;;  %v414_v63 = vld [vmem:[#allocation5 + $0x9a8] sm:$0x11]  ;;  %v3957_v0 = vld [vmem:[#allocation5 + $0x38] sm:$0xf] }
  0x44   :  { %2628 = vmatpush.bf16.xpose.msrb.mxu2 %v4726_v7  ;;  %2641 = vmatpush.bf16.xpose.msrb.mxu3 %v4730_v8  ;;  %v4346_v7 = vor.u32 %v5207_v2, %v4343_v3  ;;  %v411_v8 = vld [vmem:[#allocation5 + $0x990] sm:$0x11]  ;;  %v5159_v1 = vld [vmem:[#allocation5 + $0x1c4] sm:$0xf0]  ;;  %v5109_v2 = vld [vmem:[#allocation5 + $0x3c] sm:$0xf]  ;;  %v1653_v12 = vunpack.c.h.b16 %v414_v63  ;;  %v3954_v14 = vor.u32 %v5108_v61, %v3951_v62 }
  0x45   :  { %v3959_v3 = vld [vmem:[#allocation5 + $0x1c8] sm:$0xf0]  ;;  %v3958_v15 = vor.u32 %v5159_v1, %v3957_v0 }
  0x4b   :  { %2603 = vmatpush.bf16.xpose.msrb.mxu0 %v4318_v17  ;;  %2616 = vmatpush.bf16.xpose.msrb.mxu1 %v4322_v18  ;;  %v3943_v17 = vld [vmem:[#allocation5 + $0x1b8] sm:$0xf0]  ;;  %v1646_v18 = vunpack.c.l.b16 %v411_v8 }
  0x4c   :  { %2629 = vmatpush.bf16.xpose.msrb.mxu2 %v4326_v19  ;;  %2642 = vmatpush.bf16.xpose.msrb.mxu3 %v4330_v20  ;;  %v1647_v19 = vunpack.c.h.b16 %v411_v8  ;;  %v1648_v20 = vunpack.c.l.b16 %v412_v11  ;;  %v3946_v25 = vor.u32 %v5107_v16, %v3943_v17  ;;  %v476_v8 = vld [vmem:[#allocation1 + $0x2d] sm:$0xff]  ;;  %v1652_v11 = vunpack.c.l.b16 %v414_v63 }
  0x4d   :  { %v2046_v26 = vpack.c.b16 %v1646_v18, %v1646_v18  ;;  %v3962_v16 = vor.u32 %v5109_v2, %v3959_v3 }
  0x4e   :  { %v2047_v27 = vpack.c.b16 %v1647_v19, %v1647_v19  ;;  %v2048_v28 = vpack.c.b16 %v1648_v20, %v1648_v20  ;;  %v2052_v19 = vpack.c.b16 %v1652_v11, %v1652_v11  ;;  %v2053_v20 = vpack.c.b16 %v1653_v12, %v1653_v12  ;;  %v5313_v11 = vld [vmem:[#allocation5 + $0x69c] sm:$0xf]  ;;  %v4791_v12 = vld [vmem:[#allocation5 + $0x828] sm:$0xf0] }
  0x53   :  { %2604 = vmatpush.bf16.xpose.msrb.mxu0 %v3918_v40  ;;  %2617 = vmatpush.bf16.xpose.msrb.mxu1 %v3922_v41  ;;  %v473_v40 = vld [vmem:[#allocation1 + $0x12] sm:$0xff]  ;;  %v474_v41 = vld [vmem:[#allocation1 + $0x1b] sm:$0xff] }
  0x54   :  { %2630 = vmatpush.bf16.xpose.msrb.mxu2 %v3926_v42  ;;  %2643 = vmatpush.bf16.xpose.msrb.mxu3 %v3930_v43 }
  0x5a   :  { %2605 = vmatmul.bf16.vlgmr.msrb.gmra.mxu0 %v465_v32  ;;  %2618 = vmatmul.bf16.vlgmr.msrb.gmra.mxu1 %v466_v36  ;;  %v4749_v32 = vld [vmem:[#allocation5 + $0x670] sm:$0xf]  ;;  %v4757_v36 = vld [vmem:[#allocation5 + $0x678] sm:$0xf] }
  0x5b   :  { %2653 = vmatpush.bf16.xpose.msra.mxu0 %v2042_v44  ;;  %2666 = vmatpush.bf16.xpose.msra.mxu1 %v2043_v45  ;;  %v4750_v42 = vor.u32 %v5358_v33, %v4749_v32  ;;  %v4758_v44 = vor.u32 %v5359_v37, %v4757_v36  ;;  %v4762_v45 = vor.u32 %v5309_v38, %v4759_v39  ;;  %v4365_v33 = vld [vmem:[#allocation5 + $0x360] sm:$0xf]  ;;  %v4367_v36 = vld [vmem:[#allocation5 + $0x4f0] sm:$0xf0]  ;;  %v4373_v37 = vld [vmem:[#allocation5 + $0x368] sm:$0xf] }
  0x5c   :  { %2679 = vmatpush.bf16.xpose.msra.mxu2 %v2044_v46  ;;  %2692 = vmatpush.bf16.xpose.msra.mxu3 %v2045_v47  ;;  %v4349_v46 = vld [vmem:[#allocation5 + $0x350] sm:$0xf]  ;;  %v5258_v47 = vld [vmem:[#allocation5 + $0x4dc] sm:$0xf0]  ;;  %v5261_v38 = vld [vmem:[#allocation5 + $0x4f4] sm:$0xf0] }
  0x5d   :  { %2631 = vmatmul.bf16.vlgmr.msrb.gmra.mxu2 %v467_v31  ;;  %2644 = vmatmul.bf16.vlgmr.msrb.gmra.mxu3 %v468_v35  ;;  %v472_v31 = vld [vmem:[#allocation1 + $0x9] sm:$0xff]  ;;  %v4350_v54 = vor.u32 %v5258_v47, %v4349_v46  ;;  %v5211_v39 = vld [vmem:[#allocation5 + $0x36c] sm:$0xf]  ;;  %v5160_v47 = vld [vmem:[#allocation5 + $0x1cc] sm:$0xf0] }
  0x5e   :  { %v4751_v35 = vld [vmem:[#allocation5 + $0x800] sm:$0xf0]  ;;  %v3965_v46 = vld [vmem:[#allocation5 + $0x40] sm:$0xf] }
  0x5f   :  { %v4754_v43 = vor.u32 %v5308_v34, %v4751_v35  ;;  %v5260_v34 = vld [vmem:[#allocation5 + $0x4ec] sm:$0xf0]  ;;  %v5210_v35 = vld [vmem:[#allocation5 + $0x364] sm:$0xf] }
  0x63   :  { %2654 = vmatpush.bf16.xpose.msra.mxu0 %v4734_v56  ;;  %2667 = vmatpush.bf16.xpose.msra.mxu1 %v4738_v57  ;;  %v4358_v56 = vor.u32 %v5259_v51, %v4357_v50  ;;  %v4362_v57 = vor.u32 %v5209_v52, %v4359_v53  ;;  %v3967_v50 = vld [vmem:[#allocation5 + $0x1d0] sm:$0xf0]  ;;  %v3973_v51 = vld [vmem:[#allocation5 + $0x48] sm:$0xf]  ;;  %v5161_v52 = vld [vmem:[#allocation5 + $0x1d4] sm:$0xf0] }
  0x64   :  { %2680 = vmatpush.bf16.xpose.msra.mxu2 %v4742_v58  ;;  %2693 = vmatpush.bf16.xpose.msra.mxu3 %v4746_v59  ;;  %v413_v58 = vld [vmem:[#allocation5 + $0x9a0] sm:$0x11]  ;;  %v3949_v59 = vld [vmem:[#allocation5 + $0x30] sm:$0xf]  ;;  %v5111_v53 = vld [vmem:[#allocation5 + $0x4c] sm:$0xf]  ;;  %v3974_v61 = vor.u32 %v5161_v52, %v3973_v51 }
  0x65   :  { %v3950_v13 = vor.u32 %v5158_v60, %v3949_v59  ;;  %v3966_v59 = vor.u32 %v5160_v47, %v3965_v46  ;;  %v3970_v60 = vor.u32 %v5110_v49, %v3967_v50  ;;  %v95_v47 = vld [vmem:[#allocation2 + $0x18] sm:$0xff] }
  0x6b   :  { %2655 = vmatpush.bf16.xpose.msra.mxu0 %v4334_v4  ;;  %2668 = vmatpush.bf16.xpose.msra.mxu1 %v4338_v5  ;;  %v475_v4 = vld [vmem:[#allocation1 + $0x24] sm:$0xff]  ;;  %v477_v5 = vld [vmem:[#allocation1 + $0x36] sm:$0xff] }
  0x6c   :  { %2681 = vmatpush.bf16.xpose.msra.mxu2 %v4342_v6  ;;  %2694 = vmatpush.bf16.xpose.msra.mxu3 %v4346_v7  ;;  %v1650_v6 = vunpack.c.l.b16 %v413_v58  ;;  %v1651_v7 = vunpack.c.h.b16 %v413_v58  ;;  %480 = vst [vmem:[#allocation1] ss:$9 sm:$0xff] %v94_v10  ;;  %v1657_v58 = vunpack.c.h.b16 %v416_v48  ;;  %v5363_v10 = vld [vmem:[#allocation5 + $0x824] sm:$0xf0] }
  0x6e   :  { %v2050_v17 = vpack.c.b16 %v1650_v6, %v1650_v6  ;;  %v2051_v18 = vpack.c.b16 %v1651_v7, %v1651_v7  ;;  %v2057_v2 = vpack.c.b16 %v1657_v58, %v1657_v58  ;;  %v5362_v6 = vld [vmem:[#allocation5 + $0x81c] sm:$0xf0]  ;;  %v5312_v7 = vld [vmem:[#allocation5 + $0x694] sm:$0xf]  ;;  %v5410_v58 = vld [vmem:[#allocation7] ss:$0 sm:$0xff] }
  0x73   :  { %2656 = vmatpush.bf16.xpose.msra.mxu0 %v3934_v22  ;;  %2669 = vmatpush.bf16.xpose.msra.mxu1 %v3938_v23  ;;  %v5360_v22 = vld [vmem:[#allocation5 + $0x80c] sm:$0xf0]  ;;  %v5310_v23 = vld [vmem:[#allocation5 + $0x684] sm:$0xf]  ;;  %v481_v3 = vld [vmem:[#allocation1] sm:$0xff] }
  0x74   :  { %2682 = vmatpush.bf16.xpose.msra.mxu2 %v3942_v24  ;;  %2695 = vmatpush.bf16.xpose.msra.mxu3 %v3946_v25  ;;  %v4767_v24 = vld [vmem:[#allocation5 + $0x810] sm:$0xf0]  ;;  %v4773_v25 = vld [vmem:[#allocation5 + $0x688] sm:$0xf] }
  0x75   :  { %v488_v46 = vld [vmem:[#allocation1 + $0x3f] sm:$0xff] }
  0x7a   :  { %2657 = vmatmul.bf16.vlgmr.msra.gmra.mxu0 %v471_v30  ;;  %2670 = vmatmul.bf16.vlgmr.msra.gmra.mxu1 %v472_v31  ;;  %v4770_v30 = vor.u32 %v5310_v23, %v4767_v24  ;;  %v4389_v23 = vld [vmem:[#allocation5 + $0x378] sm:$0xf]  ;;  %v5263_v24 = vld [vmem:[#allocation5 + $0x504] sm:$0xf0] }
  0x7b   :  { %2705 = vmatpush.bf16.xpose.msrb.mxu0 %v2046_v26  ;;  %2718 = vmatpush.bf16.xpose.msrb.mxu1 %v2047_v27  ;;  %v5361_v26 = vld [vmem:[#allocation5 + $0x814] sm:$0xf0]  ;;  %v5311_v27 = vld [vmem:[#allocation5 + $0x68c] sm:$0xf] }
  0x7c   :  { %2731 = vmatpush.bf16.xpose.msrb.mxu2 %v2048_v28  ;;  %2744 = vmatpush.bf16.xpose.msrb.mxu3 %v2049_v29  ;;  %v4775_v28 = vld [vmem:[#allocation5 + $0x818] sm:$0xf0]  ;;  %v4766_v29 = vor.u32 %v5360_v22, %v4765_v21  ;;  %v4774_v31 = vor.u32 %v5361_v26, %v4773_v25  ;;  %v5212_v21 = vld [vmem:[#allocation5 + $0x374] sm:$0xf]  ;;  %v4383_v22 = vld [vmem:[#allocation5 + $0x500] sm:$0xf0] }
  0x7d   :  { %2683 = vmatmul.bf16.vlgmr.msra.gmra.mxu2 %v473_v40  ;;  %2696 = vmatmul.bf16.vlgmr.msra.gmra.mxu3 %v474_v41  ;;  %v4778_v32 = vor.u32 %v5311_v27, %v4775_v28  ;;  %v4375_v40 = vld [vmem:[#allocation5 + $0x4f8] sm:$0xf0]  ;;  %v4366_v41 = vor.u32 %v5260_v34, %v4365_v33  ;;  %v4391_v26 = vld [vmem:[#allocation5 + $0x508] sm:$0xf0]  ;;  %v4386_v28 = vor.u32 %v5212_v21, %v4383_v22  ;;  %v5162_v33 = vld [vmem:[#allocation5 + $0x1dc] sm:$0xf0] }
  0x7e   :  { %v5213_v25 = vld [vmem:[#allocation5 + $0x37c] sm:$0xf]  ;;  %v5112_v34 = vld [vmem:[#allocation5 + $0x54] sm:$0xf]  ;;  %v5265_v21 = vld [vmem:[#allocation5 + $0x514] sm:$0xf0] }
  0x7f   :  { %v5215_v22 = vld [vmem:[#allocation5 + $0x38c] sm:$0xf] }
  0x83   :  { %2706 = vmatpush.bf16.xpose.msrb.mxu0 %v4750_v42  ;;  %2719 = vmatpush.bf16.xpose.msrb.mxu1 %v4754_v43  ;;  %v4370_v42 = vor.u32 %v5210_v35, %v4367_v36  ;;  %v4374_v43 = vor.u32 %v5261_v38, %v4373_v37  ;;  %v3983_v35 = vld [vmem:[#allocation5 + $0x1e0] sm:$0xf0]  ;;  %v418_v36 = vld [vmem:[#allocation5 + $0x9c8] sm:$0x11]  ;;  %v3989_v37 = vld [vmem:[#allocation5 + $0x58] sm:$0xf] }
  0x84   :  { %2732 = vmatpush.bf16.xpose.msrb.mxu2 %v4758_v44  ;;  %2745 = vmatpush.bf16.xpose.msrb.mxu3 %v4762_v45  ;;  %v4378_v44 = vor.u32 %v5211_v39, %v4375_v40  ;;  %v415_v45 = vld [vmem:[#allocation5 + $0x9b0] sm:$0x11]  ;;  %v5163_v38 = vld [vmem:[#allocation5 + $0x1e4] sm:$0xf0]  ;;  %v5113_v39 = vld [vmem:[#allocation5 + $0x5c] sm:$0xf]  ;;  %v1661_v49 = vunpack.c.h.b16 %v418_v36  ;;  %v3986_v51 = vor.u32 %v5112_v34, %v3983_v35 }
  0x85   :  { %v3991_v40 = vld [vmem:[#allocation5 + $0x1e8] sm:$0xf0]  ;;  %v3990_v52 = vor.u32 %v5163_v38, %v3989_v37  ;;  %v420_v34 = vld [vmem:[#allocation5 + $0x9d8] sm:$0x11]  ;;  %v5114_v35 = vld [vmem:[#allocation5 + $0x64] sm:$0xf] }
  0x86   :  { %v4005_v37 = vld [vmem:[#allocation5 + $0x68] sm:$0xf]  ;;  %v5165_v38 = vld [vmem:[#allocation5 + $0x1f4] sm:$0xf0] }
  0x8b   :  { %2707 = vmatpush.bf16.xpose.msrb.mxu0 %v4350_v54  ;;  %2720 = vmatpush.bf16.xpose.msrb.mxu1 %v4354_v55  ;;  %v3975_v54 = vld [vmem:[#allocation5 + $0x1d8] sm:$0xf0]  ;;  %v1654_v55 = vunpack.c.l.b16 %v415_v45 }
  0x8c   :  { %2733 = vmatpush.bf16.xpose.msrb.mxu2 %v4358_v56  ;;  %2746 = vmatpush.bf16.xpose.msrb.mxu3 %v4362_v57  ;;  %v1655_v56 = vunpack.c.h.b16 %v415_v45  ;;  %v1656_v57 = vunpack.c.l.b16 %v416_v48  ;;  %v3978_v62 = vor.u32 %v5111_v53, %v3975_v54  ;;  %v486_v45 = vld [vmem:[#allocation1 + $0x2d] sm:$0xff]  ;;  %v1660_v48 = vunpack.c.l.b16 %v418_v36  ;;  %v3999_v36 = vld [vmem:[#allocation5 + $0x1f0] sm:$0xf0] }
  0x8d   :  { %v2054_v63 = vpack.c.b16 %v1654_v55, %v1654_v55  ;;  %v3994_v53 = vor.u32 %v5113_v39, %v3991_v40  ;;  %v5115_v39 = vld [vmem:[#allocation5 + $0x6c] sm:$0xf]  ;;  %v4007_v40 = vld [vmem:[#allocation5 + $0x1f8] sm:$0xf0] }
  0x8e   :  { %v2055_v0 = vpack.c.b16 %v1655_v56, %v1655_v56  ;;  %v2056_v1 = vpack.c.b16 %v1656_v57, %v1656_v57  ;;  %v2060_v56 = vpack.c.b16 %v1660_v48, %v1660_v48  ;;  %v2061_v57 = vpack.c.b16 %v1661_v49, %v1661_v49 }
  0x8f   :  { %v4010_v48 = vor.u32 %v5115_v39, %v4007_v40 }
  0x93   :  { %2708 = vmatpush.bf16.xpose.msrb.mxu0 %v3950_v13  ;;  %2721 = vmatpush.bf16.xpose.msrb.mxu1 %v3954_v14  ;;  %v483_v13 = vld [vmem:[#allocation1 + $0x12] sm:$0xff]  ;;  %v484_v14 = vld [vmem:[#allocation1 + $0x1b] sm:$0xff] }
  0x94   :  { %2734 = vmatpush.bf16.xpose.msrb.mxu2 %v3958_v15  ;;  %2747 = vmatpush.bf16.xpose.msrb.mxu3 %v3962_v16 }
  0x9a   :  { %2709 = vmatmul.bf16.vlgmr.msrb.gmra.mxu0 %v475_v4  ;;  %2722 = vmatmul.bf16.vlgmr.msrb.gmra.mxu1 %v476_v8  ;;  %v482_v4 = vld [vmem:[#allocation1 + $0x9] sm:$0xff] }
  0x9b   :  { %2757 = vmatpush.bf16.xpose.msra.mxu0 %v2050_v17  ;;  %2770 = vmatpush.bf16.xpose.msra.mxu1 %v2051_v18  ;;  %v4783_v8 = vld [vmem:[#allocation5 + $0x820] sm:$0xf0]  ;;  %v4794_v18 = vor.u32 %v5313_v11, %v4791_v12 }
  0x9c   :  { %2783 = vmatpush.bf16.xpose.msra.mxu2 %v2052_v19  ;;  %2796 = vmatpush.bf16.xpose.msra.mxu3 %v2053_v20  ;;  %v4786_v16 = vor.u32 %v5312_v7, %v4783_v8  ;;  %v4381_v19 = vld [vmem:[#allocation5 + $0x370] sm:$0xf]  ;;  %v5262_v20 = vld [vmem:[#allocation5 + $0x4fc] sm:$0xf0] }
  0x9d   :  { %2735 = vmatmul.bf16.vlgmr.msrb.gmra.mxu2 %v477_v5  ;;  %2748 = vmatmul.bf16.vlgmr.msrb.gmra.mxu3 %v478_v9  ;;  %v4781_v5 = vld [vmem:[#allocation5 + $0x690] sm:$0xf]  ;;  %v4789_v9 = vld [vmem:[#allocation5 + $0x698] sm:$0xf]  ;;  %v4382_v27 = vor.u32 %v5262_v20, %v4381_v19  ;;  %v4399_v19 = vld [vmem:[#allocation5 + $0x510] sm:$0xf0] }
  0x9e   :  { %v4782_v15 = vor.u32 %v5362_v6, %v4781_v5  ;;  %v4790_v17 = vor.u32 %v5363_v10, %v4789_v9  ;;  %v4807_v5 = vld [vmem:[#allocation5 + $0x838] sm:$0xf0]  ;;  %v4405_v20 = vld [vmem:[#allocation5 + $0x388] sm:$0xf] }
  0xa3   :  { %2758 = vmatpush.bf16.xpose.msra.mxu0 %v4766_v29  ;;  %2771 = vmatpush.bf16.xpose.msra.mxu1 %v4770_v30  ;;  %v4390_v29 = vor.u32 %v5263_v24, %v4389_v23  ;;  %v4394_v30 = vor.u32 %v5213_v25, %v4391_v26  ;;  %v4407_v23 = vld [vmem:[#allocation5 + $0x518] sm:$0xf0] }
  0xa4   :  { %2784 = vmatpush.bf16.xpose.msra.mxu2 %v4774_v31  ;;  %2797 = vmatpush.bf16.xpose.msra.mxu3 %v4778_v32  ;;  %v417_v31 = vld [vmem:[#allocation5 + $0x9c0] sm:$0x11]  ;;  %v3981_v32 = vld [vmem:[#allocation5 + $0x50] sm:$0xf] }
  0xa5   :  { %v3982_v50 = vor.u32 %v5162_v33, %v3981_v32  ;;  %v3997_v32 = vld [vmem:[#allocation5 + $0x60] sm:$0xf]  ;;  %v5164_v33 = vld [vmem:[#allocation5 + $0x1ec] sm:$0xf0] }
  0xab   :  { %2759 = vmatpush.bf16.xpose.msra.mxu0 %v4366_v41  ;;  %2772 = vmatpush.bf16.xpose.msra.mxu1 %v4370_v42  ;;  %v485_v41 = vld [vmem:[#allocation1 + $0x24] sm:$0xff]  ;;  %v487_v42 = vld [vmem:[#allocation1 + $0x36] sm:$0xff] }
  0xac   :  { %2785 = vmatpush.bf16.xpose.msra.mxu2 %v4374_v43  ;;  %2798 = vmatpush.bf16.xpose.msra.mxu3 %v4378_v44  ;;  %v1658_v43 = vunpack.c.l.b16 %v417_v31  ;;  %v1659_v44 = vunpack.c.h.b16 %v417_v31  ;;  %490 = vst [vmem:[#allocation1] ss:$9 sm:$0xff] %v95_v47  ;;  %v4006_v47 = vor.u32 %v5165_v38, %v4005_v37  ;;  %v5117_v37 = vld [vmem:[#allocation5 + $0x7c] sm:$0xf]  ;;  %v4023_v38 = vld [vmem:[#allocation5 + $0x208] sm:$0xf0] }
  0xae   :  { %v2058_v54 = vpack.c.b16 %v1658_v43, %v1658_v43  ;;  %v2059_v55 = vpack.c.b16 %v1659_v44, %v1659_v44  ;;  %v1664_v43 = vunpack.c.l.b16 %v420_v34  ;;  %v1665_v44 = vunpack.c.h.b16 %v420_v34 }
  0xb3   :  { %2760 = vmatpush.bf16.xpose.msra.mxu0 %v3966_v59  ;;  %2773 = vmatpush.bf16.xpose.msra.mxu1 %v3970_v60  ;;  %v4797_v59 = vld [vmem:[#allocation5 + $0x6a0] sm:$0xf]  ;;  %v5364_v60 = vld [vmem:[#allocation5 + $0x82c] sm:$0xf0]  ;;  %v495_v39 = vld [vmem:[#allocation1 + $0x24] sm:$0xff] }
  0xb4   :  { %2786 = vmatpush.bf16.xpose.msra.mxu2 %v3974_v61  ;;  %2799 = vmatpush.bf16.xpose.msra.mxu3 %v3978_v62  ;;  %v4798_v7 = vor.u32 %v5364_v60, %v4797_v59  ;;  %v5316_v59 = vld [vmem:[#allocation5 + $0x6b4] sm:$0xf]  ;;  %v4815_v60 = vld [vmem:[#allocation5 + $0x840] sm:$0xf0]  ;;  %v497_v40 = vld [vmem:[#allocation1 + $0x36] sm:$0xff] }
  0xb7   :  { %v2554_v61 = vpop.f32.mrf.mxu0  ;;  %v2567_v62 = vpop.f32.mrf.mxu1 }
  0xba   :  { %2761 = vmatmul.bf16.vlgmr.msra.gmra.mxu0 %v481_v3  ;;  %2774 = vmatmul.bf16.vlgmr.msra.gmra.mxu1 %v482_v4  ;;  %v5365_v3 = vld [vmem:[#allocation5 + $0x834] sm:$0xf0]  ;;  %v5315_v4 = vld [vmem:[#allocation5 + $0x6ac] sm:$0xf] }
  0xbb   :  { %2809 = vmatpush.bf16.xpose.msrb.mxu0 %v2054_v63  ;;  %2822 = vmatpush.bf16.xpose.msrb.mxu1 %v2055_v0  ;;  %v5314_v63 = vld [vmem:[#allocation5 + $0x6a4] sm:$0xf]  ;;  %v4799_v0 = vld [vmem:[#allocation5 + $0x830] sm:$0xf0]  ;;  %v4810_v10 = vor.u32 %v5315_v4, %v4807_v5 }
  0xbc   :  { %2835 = vmatpush.bf16.xpose.msrb.mxu2 %v2056_v1  ;;  %2848 = vmatpush.bf16.xpose.msrb.mxu3 %v2057_v2  ;;  %v4805_v1 = vld [vmem:[#allocation5 + $0x6a8] sm:$0xf]  ;;  %v2555_v2 = vadd.f32 %v5410_v58, %v2554_v61  ;;  %v4802_v8 = vor.u32 %v5314_v63, %v4799_v0  ;;  %v4821_v61 = vld [vmem:[#allocation5 + $0x6b8] sm:$0xf]  ;;  %v5317_v0 = vld [vmem:[#allocation5 + $0x6bc] sm:$0xf] }
  0xbd   :  { %2787 = vmatmul.bf16.vlgmr.msra.gmra.mxu2 %v483_v13  ;;  %2800 = vmatmul.bf16.vlgmr.msra.gmra.mxu3 %v484_v14  ;;  %v4806_v9 = vor.u32 %v5365_v3, %v4805_v1  ;;  %v4397_v13 = vld [vmem:[#allocation5 + $0x380] sm:$0xf]  ;;  %v5264_v14 = vld [vmem:[#allocation5 + $0x50c] sm:$0xf0]  ;;  %v5367_v63 = vld [vmem:[#allocation5 + $0x844] sm:$0xf0] }
  0xbe   :  { %v2568_v6 = vadd.f32 %v2567_v62, %v2555_v2  ;;  %v4398_v25 = vor.u32 %v5264_v14, %v4397_v13  ;;  %v4823_v1 = vld [vmem:[#allocation5 + $0x848] sm:$0xf0]  ;;  %v5266_v13 = vld [vmem:[#allocation5 + $0x51c] sm:$0xf0] }
  0xbf   :  { %v493_v2 = vld [vmem:[#allocation1 + $0x12] sm:$0xff]  ;;  %v494_v3 = vld [vmem:[#allocation1 + $0x1b] sm:$0xff] }
  0xc0   :  { %v2580_v11 = vpop.f32.mrf.mxu2  ;;  %v2593_v12 = vpop.f32.mrf.mxu3 }
  0xc3   :  { %2810 = vmatpush.bf16.xpose.msrb.mxu0 %v4782_v15  ;;  %2823 = vmatpush.bf16.xpose.msrb.mxu1 %v4786_v16  ;;  %v2581_v15 = vadd.f32 %v2580_v11, %v2568_v6  ;;  %v2556_v16 = vpop.f32.mrf.mxu0  ;;  %v4818_v6 = vor.u32 %v5316_v59, %v4815_v60  ;;  %v5368_v59 = vld [vmem:[#allocation5 + $0x84c] sm:$0xf0] }
  0xc4   :  { %2836 = vmatpush.bf16.xpose.msrb.mxu2 %v4790_v17  ;;  %2849 = vmatpush.bf16.xpose.msrb.mxu3 %v4794_v18  ;;  %v2569_v17 = vpop.f32.mrf.mxu1  ;;  %v5214_v18 = vld [vmem:[#allocation5 + $0x384] sm:$0xf]  ;;  %v5216_v16 = vld [vmem:[#allocation5 + $0x394] sm:$0xf] }
  0xc5   :  { %v2594_v24 = vadd.f32 %v2593_v12, %v2581_v15  ;;  %v4402_v26 = vor.u32 %v5214_v18, %v4399_v19  ;;  %v4413_v12 = vld [vmem:[#allocation5 + $0x390] sm:$0xf]  ;;  %v4415_v17 = vld [vmem:[#allocation5 + $0x520] sm:$0xf0]  ;;  %v4421_v18 = vld [vmem:[#allocation5 + $0x398] sm:$0xf] }
  0xc8   :  { %v2595_v31 = vpop.f32.mrf.mxu3 }
  0xc9   :  { %v4015_v31 = vld [vmem:[#allocation5 + $0x200] sm:$0xf0] }
  0xcb   :  { %2811 = vmatpush.bf16.xpose.msrb.mxu0 %v4382_v27  ;;  %2824 = vmatpush.bf16.xpose.msrb.mxu1 %v4386_v28  ;;  %v4406_v27 = vor.u32 %v5265_v21, %v4405_v20  ;;  %v4410_v28 = vor.u32 %v5215_v22, %v4407_v23  ;;  %v5267_v20 = vld [vmem:[#allocation5 + $0x524] sm:$0xf0]  ;;  %v5217_v21 = vld [vmem:[#allocation5 + $0x39c] sm:$0xf]  ;;  %v4423_v22 = vld [vmem:[#allocation5 + $0x528] sm:$0xf0]  ;;  %v4414_v23 = vor.u32 %v5266_v13, %v4413_v12 }
  0xcc   :  { %2837 = vmatpush.bf16.xpose.msrb.mxu2 %v4390_v29  ;;  %2850 = vmatpush.bf16.xpose.msrb.mxu3 %v4394_v30  ;;  %v419_v29 = vld [vmem:[#allocation5 + $0x9d0] sm:$0x11]  ;;  %v2582_v30 = vpop.f32.mrf.mxu2 }
  0xcd   :  { %v5116_v30 = vld [vmem:[#allocation5 + $0x74] sm:$0xf]  ;;  %v5268_v12 = vld [vmem:[#allocation5 + $0x52c] sm:$0xf0] }
  0xd3   :  { %2812 = vmatpush.bf16.xpose.msrb.mxu0 %v3982_v50  ;;  %2825 = vmatpush.bf16.xpose.msrb.mxu1 %v3986_v51  ;;  %v2064_v51 = vpack.c.b16 %v1664_v43, %v1664_v43  ;;  %v496_v43 = vld [vmem:[#allocation1 + $0x2d] sm:$0xff] }
  0xd4   :  { %2838 = vmatpush.bf16.xpose.msrb.mxu2 %v3990_v52  ;;  %2851 = vmatpush.bf16.xpose.msrb.mxu3 %v3994_v53  ;;  %v2065_v52 = vpack.c.b16 %v1665_v44, %v1665_v44  ;;  %v491_v53 = vld [vmem:[#allocation1] sm:$0xff] }
  0xd5   :  { %v498_v44 = vld [vmem:[#allocation1 + $0x3f] sm:$0xff] }
  0xd7   :  { %v2619_v58 = vpop.f32.mrf.mxu1 }
  0xda   :  { %2813 = vmatmul.bf16.vlgmr.msrb.gmra.mxu0 %v485_v41  ;;  %2826 = vmatmul.bf16.vlgmr.msrb.gmra.mxu1 %v486_v45  ;;  %v1662_v41 = vunpack.c.l.b16 %v419_v29  ;;  %v3998_v45 = vor.u32 %v5164_v33, %v3997_v32  ;;  %v422_v32 = vld [vmem:[#allocation5 + $0x9e8] sm:$0x11] }
  0xdb   :  { %2861 = vmatpush.bf16.xpose.msra.mxu0 %v2058_v54  ;;  %2874 = vmatpush.bf16.xpose.msra.mxu1 %v2059_v55  ;;  %v492_v54 = vld [vmem:[#allocation1 + $0x9] sm:$0xff]  ;;  %v4813_v55 = vld [vmem:[#allocation5 + $0x6b0] sm:$0xf] }
  0xdc   :  { %2887 = vmatpush.bf16.xpose.msra.mxu2 %v2060_v56  ;;  %2900 = vmatpush.bf16.xpose.msra.mxu3 %v2061_v57  ;;  %v2062_v49 = vpack.c.b16 %v1662_v41, %v1662_v41  ;;  %v5366_v56 = vld [vmem:[#allocation5 + $0x83c] sm:$0xf0]  ;;  %v2606_v57 = vpop.f32.mrf.mxu0 }
  0xdd   :  { %2839 = vmatmul.bf16.vlgmr.msrb.gmra.mxu2 %v487_v42  ;;  %2852 = vmatmul.bf16.vlgmr.msrb.gmra.mxu3 %v488_v46  ;;  %v1663_v42 = vunpack.c.h.b16 %v419_v29  ;;  %v4002_v46 = vor.u32 %v5114_v35, %v3999_v36  ;;  %v2607_v62 = vadd.f32 %v2606_v57, %v2594_v24  ;;  %v4814_v5 = vor.u32 %v5366_v56, %v4813_v55  ;;  %v5166_v29 = vld [vmem:[#allocation5 + $0x1fc] sm:$0xf0]  ;;  %v4021_v35 = vld [vmem:[#allocation5 + $0x78] sm:$0xf]  ;;  %v5167_v36 = vld [vmem:[#allocation5 + $0x204] sm:$0xf0] }
  0xde   :  { %v4418_v24 = vor.u32 %v5216_v16, %v4415_v17  ;;  %v4431_v16 = vld [vmem:[#allocation5 + $0x530] sm:$0xf0]  ;;  %v4437_v17 = vld [vmem:[#allocation5 + $0x3a8] sm:$0xf] }
  0xdf   :  { %v2063_v50 = vpack.c.b16 %v1663_v42, %v1663_v42  ;;  %v2620_v4 = vadd.f32 %v2619_v58, %v2607_v62  ;;  %v2621_v15 = vpop.f32.mrf.mxu1  ;;  %v4829_v58 = vld [vmem:[#allocation5 + $0x6c0] sm:$0xf]  ;;  %v4831_v62 = vld [vmem:[#allocation5 + $0x850] sm:$0xf0] }
  0xe0   :  { %v5218_v15 = vld [vmem:[#allocation5 + $0x3a4] sm:$0xf] }
  0xe3   :  { %2862 = vmatpush.bf16.xpose.msra.mxu0 %v4798_v7  ;;  %2875 = vmatpush.bf16.xpose.msra.mxu1 %v4802_v8  ;;  %v4822_v7 = vor.u32 %v5367_v63, %v4821_v61  ;;  %v4826_v8 = vor.u32 %v5317_v0, %v4823_v1  ;;  %v5318_v61 = vld [vmem:[#allocation5 + $0x6c4] sm:$0xf]  ;;  %v4837_v63 = vld [vmem:[#allocation5 + $0x6c8] sm:$0xf]  ;;  %v5369_v0 = vld [vmem:[#allocation5 + $0x854] sm:$0xf0] }
  0xe4   :  { %2888 = vmatpush.bf16.xpose.msra.mxu2 %v4806_v9  ;;  %2901 = vmatpush.bf16.xpose.msra.mxu3 %v4810_v10  ;;  %v2632_v9 = vpop.f32.mrf.mxu2  ;;  %v2645_v10 = vpop.f32.mrf.mxu3  ;;  %v5319_v1 = vld [vmem:[#allocation5 + $0x6cc] sm:$0xf] }
  0xe5   :  { %v2633_v11 = vadd.f32 %v2632_v9, %v2620_v4  ;;  %v2608_v14 = vpop.f32.mrf.mxu0  ;;  %v4830_v4 = vor.u32 %v5368_v59, %v4829_v58  ;;  %v4847_v58 = vld [vmem:[#allocation5 + $0x860] sm:$0xf0]  ;;  %v4853_v59 = vld [vmem:[#allocation5 + $0x6d8] sm:$0xf] }
  0xe7   :  { %v2646_v19 = vadd.f32 %v2645_v10, %v2633_v11  ;;  %v4429_v11 = vld [vmem:[#allocation5 + $0x3a0] sm:$0xf] }
  0xeb   :  { %2863 = vmatpush.bf16.xpose.msra.mxu0 %v4398_v25  ;;  %2876 = vmatpush.bf16.xpose.msra.mxu1 %v4402_v26  ;;  %v4422_v25 = vor.u32 %v5267_v20, %v4421_v18  ;;  %v4426_v26 = vor.u32 %v5217_v21, %v4423_v22  ;;  %v5219_v20 = vld [vmem:[#allocation5 + $0x3ac] sm:$0xf]  ;;  %v4439_v21 = vld [vmem:[#allocation5 + $0x538] sm:$0xf0]  ;;  %v4430_v22 = vor.u32 %v5268_v12, %v4429_v11 }
  0xec   :  { %2889 = vmatpush.bf16.xpose.msra.mxu2 %v4406_v27  ;;  %2902 = vmatpush.bf16.xpose.msra.mxu3 %v4410_v28  ;;  %v421_v27 = vld [vmem:[#allocation5 + $0x9e0] sm:$0x11]  ;;  %v4013_v28 = vld [vmem:[#allocation5 + $0x70] sm:$0xf]  ;;  %v2634_v33 = vpop.f32.mrf.mxu2  ;;  %v2647_v34 = vpop.f32.mrf.mxu3 }
  0xed   :  { %v1666_v41 = vunpack.c.l.b16 %v421_v27  ;;  %v1667_v42 = vunpack.c.h.b16 %v421_v27  ;;  %v4031_v33 = vld [vmem:[#allocation5 + $0x210] sm:$0xf0]  ;;  %v4037_v34 = vld [vmem:[#allocation5 + $0x88] sm:$0xf] }
  0xf3   :  { %2864 = vmatpush.bf16.xpose.msra.mxu0 %v3998_v45  ;;  %2877 = vmatpush.bf16.xpose.msra.mxu1 %v4002_v46  ;;  %v96_v45 = vld [vmem:[#allocation2 + $0x20] sm:$0xff]  ;;  %v1668_v46 = vunpack.c.l.b16 %v422_v32 }
  0xf4   :  { %2890 = vmatpush.bf16.xpose.msra.mxu2 %v4006_v47  ;;  %2903 = vmatpush.bf16.xpose.msra.mxu3 %v4010_v48  ;;  %v1669_v47 = vunpack.c.h.b16 %v422_v32  ;;  %500 = vst [vmem:[#allocation1] ss:$9 sm:$0xff] %v96_v45  ;;  %v4014_v48 = vor.u32 %v5166_v29, %v4013_v28  ;;  %v4029_v29 = vld [vmem:[#allocation5 + $0x80] sm:$0xf]  ;;  %v5118_v32 = vld [vmem:[#allocation5 + $0x84] sm:$0xf] }
  0xf6   :  { %v2069_v55 = vpack.c.b16 %v1669_v47, %v1669_v47 }
  0xf7   :  { %v2658_v56 = vpop.f32.mrf.mxu0  ;;  %v2671_v57 = vpop.f32.mrf.mxu1 }
  0xf8   :  { %v2659_v60 = vadd.f32 %v2658_v56, %v2646_v19  ;;  %v5269_v19 = vld [vmem:[#allocation5 + $0x534] sm:$0xf0] }
  0xfa   :  { %2865 = vmatmul.bf16.vlgmr.msra.gmra.mxu0 %v491_v53  ;;  %2878 = vmatmul.bf16.vlgmr.msra.gmra.mxu1 %v492_v54  ;;  %v2067_v53 = vpack.c.b16 %v1667_v42, %v1667_v42  ;;  %v2068_v54 = vpack.c.b16 %v1668_v46, %v1668_v46 }
  0xfb   :  { %2913 = vmatpush.bf16.xpose.msrb.mxu0 %v2062_v49  ;;  %2926 = vmatpush.bf16.xpose.msrb.mxu1 %v2063_v50  ;;  %v4018_v49 = vor.u32 %v5116_v30, %v4015_v31  ;;  %v4022_v50 = vor.u32 %v5167_v36, %v4021_v35  ;;  %v5168_v30 = vld [vmem:[#allocation5 + $0x20c] sm:$0xf0]  ;;  %v424_v31 = vld [vmem:[#allocation5 + $0x9f8] sm:$0x11]  ;;  %v5119_v36 = vld [vmem:[#allocation5 + $0x8c] sm:$0xf] }
  0xfc   :  { %2939 = vmatpush.bf16.xpose.msrb.mxu2 %v2064_v51  ;;  %2952 = vmatpush.bf16.xpose.msrb.mxu3 %v2065_v52  ;;  %v4026_v51 = vor.u32 %v5117_v37, %v4023_v38  ;;  %v2066_v52 = vpack.c.b16 %v1666_v41, %v1666_v41  ;;  %v5169_v35 = vld [vmem:[#allocation5 + $0x214] sm:$0xf0]  ;;  %v4039_v37 = vld [vmem:[#allocation5 + $0x218] sm:$0xf0]  ;;  %v1673_v41 = vunpack.c.h.b16 %v424_v31  ;;  %v4030_v42 = vor.u32 %v5168_v30, %v4029_v29  ;;  %v426_v29 = vld [vmem:[#allocation5 + $0xa08] sm:$0x11] }
  0xfd   :  { %2891 = vmatmul.bf16.vlgmr.msra.gmra.mxu2 %v493_v2  ;;  %2904 = vmatmul.bf16.vlgmr.msra.gmra.mxu3 %v494_v3  ;;  %v4839_v2 = vld [vmem:[#allocation5 + $0x858] sm:$0xf0]  ;;  %v2672_v3 = vadd.f32 %v2671_v57, %v2659_v60  ;;  %v4042_v45 = vor.u32 %v5119_v36, %v4039_v37  ;;  %v5320_v57 = vld [vmem:[#allocation5 + $0x6d4] sm:$0xf]  ;;  %v5371_v60 = vld [vmem:[#allocation5 + $0x864] sm:$0xf0] }
  0xfe   :  { %v505_v36 = vld [vmem:[#allocation1 + $0x24] sm:$0xff]  ;;  %v507_v37 = vld [vmem:[#allocation1 + $0x36] sm:$0xff] }
  0xff   :  { %v2660_v13 = vpop.f32.mrf.mxu0  ;;  %v2673_v14 = vpop.f32.mrf.mxu1 }
 0x100   :  { %v2697_v9 = vpop.f32.mrf.mxu3  ;;  %v5220_v13 = vld [vmem:[#allocation5 + $0x3b4] sm:$0xf]  ;;  %v4447_v14 = vld [vmem:[#allocation5 + $0x540] sm:$0xf0] }
 0x103   :  { %2914 = vmatpush.bf16.xpose.msrb.mxu0 %v4814_v5  ;;  %2927 = vmatpush.bf16.xpose.msrb.mxu1 %v4818_v6  ;;  %v4834_v5 = vor.u32 %v5318_v61, %v4831_v62  ;;  %v4838_v6 = vor.u32 %v5369_v0, %v4837_v63  ;;  %v5321_v61 = vld [vmem:[#allocation5 + $0x6dc] sm:$0xf]  ;;  %v4855_v62 = vld [vmem:[#allocation5 + $0x868] sm:$0xf0] }
 0x104   :  { %2940 = vmatpush.bf16.xpose.msrb.mxu2 %v4822_v7  ;;  %2953 = vmatpush.bf16.xpose.msrb.mxu3 %v4826_v8  ;;  %v4842_v7 = vor.u32 %v5319_v1, %v4839_v2  ;;  %v2684_v8 = vpop.f32.mrf.mxu2  ;;  %v503_v63 = vld [vmem:[#allocation1 + $0x12] sm:$0xff]  ;;  %v504_v1 = vld [vmem:[#allocation1 + $0x1b] sm:$0xff] }
 0x105   :  { %v2685_v10 = vadd.f32 %v2684_v8, %v2672_v3  ;;  %v4850_v3 = vor.u32 %v5320_v57, %v4847_v58  ;;  %v5322_v58 = vld [vmem:[#allocation5 + $0x6e4] sm:$0xf] }
 0x107   :  { %v2698_v18 = vadd.f32 %v2697_v9, %v2685_v10  ;;  %v4445_v9 = vld [vmem:[#allocation5 + $0x3b0] sm:$0xf]  ;;  %v5270_v10 = vld [vmem:[#allocation5 + $0x53c] sm:$0xf0] }
 0x108   :  { %v2699_v28 = vpop.f32.mrf.mxu3 }
 0x109   :  { %v4047_v28 = vld [vmem:[#allocation5 + $0x220] sm:$0xf0] }
 0x10b   :  { %2915 = vmatpush.bf16.xpose.msrb.mxu0 %v4414_v23  ;;  %2928 = vmatpush.bf16.xpose.msrb.mxu1 %v4418_v24  ;;  %v4434_v23 = vor.u32 %v5218_v15, %v4431_v16  ;;  %v4438_v24 = vor.u32 %v5269_v19, %v4437_v17  ;;  %v4453_v15 = vld [vmem:[#allocation5 + $0x3b8] sm:$0xf]  ;;  %v5271_v17 = vld [vmem:[#allocation5 + $0x544] sm:$0xf0]  ;;  %v4455_v19 = vld [vmem:[#allocation5 + $0x548] sm:$0xf0] }
 0x10c   :  { %2941 = vmatpush.bf16.xpose.msrb.mxu2 %v4422_v25  ;;  %2954 = vmatpush.bf16.xpose.msrb.mxu3 %v4426_v26  ;;  %v4442_v25 = vor.u32 %v5219_v20, %v4439_v21  ;;  %v423_v26 = vld [vmem:[#allocation5 + $0x9f0] sm:$0x11]  ;;  %v2686_v27 = vpop.f32.mrf.mxu2  ;;  %v4446_v20 = vor.u32 %v5270_v10, %v4445_v9  ;;  %v4450_v21 = vor.u32 %v5220_v13, %v4447_v14  ;;  %v4469_v14 = vld [vmem:[#allocation5 + $0x3c8] sm:$0xf] }
 0x10d   :  { %v1670_v38 = vunpack.c.l.b16 %v423_v26  ;;  %v5120_v27 = vld [vmem:[#allocation5 + $0x94] sm:$0xf]  ;;  %v5272_v9 = vld [vmem:[#allocation5 + $0x54c] sm:$0xf0] }
 0x10e   :  { %v4463_v13 = vld [vmem:[#allocation5 + $0x550] sm:$0xf0] }
 0x10f   :  { %v2070_v46 = vpack.c.b16 %v1670_v38, %v1670_v38 }
 0x113   :  { %2916 = vmatpush.bf16.xpose.msrb.mxu0 %v4014_v48  ;;  %2929 = vmatpush.bf16.xpose.msrb.mxu1 %v4018_v49  ;;  %v2073_v49 = vpack.c.b16 %v1673_v41, %v1673_v41  ;;  %v508_v41 = vld [vmem:[#allocation1 + $0x3f] sm:$0xff] }
 0x114   :  { %2942 = vmatpush.bf16.xpose.msrb.mxu2 %v4022_v50  ;;  %2955 = vmatpush.bf16.xpose.msrb.mxu3 %v4026_v51  ;;  %v501_v51 = vld [vmem:[#allocation1] sm:$0xff] }
 0x117   :  { %v2710_v50 = vpop.f32.mrf.mxu0 }
 0x118   :  { %v2711_v56 = vadd.f32 %v2710_v50, %v2698_v18  ;;  %v5221_v18 = vld [vmem:[#allocation5 + $0x3bc] sm:$0xf] }
 0x11a   :  { %2917 = vmatmul.bf16.vlgmr.msrb.gmra.mxu0 %v495_v39  ;;  %2930 = vmatmul.bf16.vlgmr.msrb.gmra.mxu1 %v496_v43  ;;  %v1671_v39 = vunpack.c.h.b16 %v423_v26  ;;  %v4034_v43 = vor.u32 %v5118_v32, %v4031_v33  ;;  %v5170_v26 = vld [vmem:[#allocation5 + $0x21c] sm:$0xf0]  ;;  %v4053_v32 = vld [vmem:[#allocation5 + $0x98] sm:$0xf]  ;;  %v5171_v33 = vld [vmem:[#allocation5 + $0x224] sm:$0xf0] }
 0x11b   :  { %2965 = vmatpush.bf16.xpose.msra.mxu0 %v2066_v52  ;;  %2978 = vmatpush.bf16.xpose.msra.mxu1 %v2067_v53  ;;  %v2723_v52 = vpop.f32.mrf.mxu1  ;;  %v502_v53 = vld [vmem:[#allocation1 + $0x9] sm:$0xff] }
 0x11c   :  { %2991 = vmatpush.bf16.xpose.msra.mxu2 %v2068_v54  ;;  %3004 = vmatpush.bf16.xpose.msra.mxu3 %v2069_v55  ;;  %v2071_v47 = vpack.c.b16 %v1671_v39, %v1671_v39  ;;  %v4845_v54 = vld [vmem:[#allocation5 + $0x6d0] sm:$0xf]  ;;  %v5370_v55 = vld [vmem:[#allocation5 + $0x85c] sm:$0xf0]  ;;  %v2724_v0 = vadd.f32 %v2723_v52, %v2711_v56 }
 0x11d   :  { %2943 = vmatmul.bf16.vlgmr.msrb.gmra.mxu2 %v497_v40  ;;  %2956 = vmatmul.bf16.vlgmr.msrb.gmra.mxu3 %v498_v44  ;;  %v1672_v40 = vunpack.c.l.b16 %v424_v31  ;;  %v4038_v44 = vor.u32 %v5169_v35, %v4037_v34  ;;  %v4846_v2 = vor.u32 %v5370_v55, %v4845_v54  ;;  %v5121_v34 = vld [vmem:[#allocation5 + $0x9c] sm:$0xf]  ;;  %v4055_v35 = vld [vmem:[#allocation5 + $0x228] sm:$0xf0]  ;;  %v4861_v55 = vld [vmem:[#allocation5 + $0x6e0] sm:$0xf] }
 0x11e   :  { %v5372_v56 = vld [vmem:[#allocation5 + $0x86c] sm:$0xf0] }
 0x11f   :  { %v2072_v48 = vpack.c.b16 %v1672_v40, %v1672_v40  ;;  %v2712_v11 = vpop.f32.mrf.mxu0  ;;  %v506_v40 = vld [vmem:[#allocation1 + $0x2d] sm:$0xff] }
 0x123   :  { %2966 = vmatpush.bf16.xpose.msra.mxu0 %v4830_v4  ;;  %2979 = vmatpush.bf16.xpose.msra.mxu1 %v4834_v5  ;;  %v4854_v4 = vor.u32 %v5371_v60, %v4853_v59  ;;  %v4858_v5 = vor.u32 %v5321_v61, %v4855_v62  ;;  %v2725_v12 = vpop.f32.mrf.mxu1  ;;  %v4863_v59 = vld [vmem:[#allocation5 + $0x870] sm:$0xf0]  ;;  %v4869_v60 = vld [vmem:[#allocation5 + $0x6e8] sm:$0xf]  ;;  %v5373_v61 = vld [vmem:[#allocation5 + $0x874] sm:$0xf0] }
 0x124   :  { %2992 = vmatpush.bf16.xpose.msra.mxu2 %v4838_v6  ;;  %3005 = vmatpush.bf16.xpose.msra.mxu3 %v4842_v7  ;;  %v2736_v6 = vpop.f32.mrf.mxu2  ;;  %v2749_v7 = vpop.f32.mrf.mxu3  ;;  %v5323_v62 = vld [vmem:[#allocation5 + $0x6ec] sm:$0xf]  ;;  %v5222_v12 = vld [vmem:[#allocation5 + $0x3c4] sm:$0xf] }
 0x125   :  { %v2737_v8 = vadd.f32 %v2736_v6, %v2724_v0 }
 0x127   :  { %v2750_v16 = vadd.f32 %v2749_v7, %v2737_v8  ;;  %v4461_v8 = vld [vmem:[#allocation5 + $0x3c0] sm:$0xf] }
 0x12b   :  { %2967 = vmatpush.bf16.xpose.msra.mxu0 %v4430_v22  ;;  %2980 = vmatpush.bf16.xpose.msra.mxu1 %v4434_v23  ;;  %v4454_v22 = vor.u32 %v5271_v17, %v4453_v15  ;;  %v4458_v23 = vor.u32 %v5221_v18, %v4455_v19  ;;  %v5223_v17 = vld [vmem:[#allocation5 + $0x3cc] sm:$0xf]  ;;  %v4471_v18 = vld [vmem:[#allocation5 + $0x558] sm:$0xf0]  ;;  %v4462_v19 = vor.u32 %v5272_v9, %v4461_v8 }
 0x12c   :  { %2993 = vmatpush.bf16.xpose.msra.mxu2 %v4438_v24  ;;  %3006 = vmatpush.bf16.xpose.msra.mxu3 %v4442_v25  ;;  %v425_v24 = vld [vmem:[#allocation5 + $0xa00] sm:$0x11]  ;;  %v4045_v25 = vld [vmem:[#allocation5 + $0x90] sm:$0xf]  ;;  %v2738_v30 = vpop.f32.mrf.mxu2  ;;  %v2751_v31 = vpop.f32.mrf.mxu3 }
 0x12d   :  { %v1674_v38 = vunpack.c.l.b16 %v425_v24  ;;  %v1675_v39 = vunpack.c.h.b16 %v425_v24  ;;  %v4063_v30 = vld [vmem:[#allocation5 + $0x230] sm:$0xf0]  ;;  %v4069_v31 = vld [vmem:[#allocation5 + $0xa8] sm:$0xf] }
 0x12f   :  { %v2075_v50 = vpack.c.b16 %v1675_v39, %v1675_v39 }
 0x133   :  { %2968 = vmatpush.bf16.xpose.msra.mxu0 %v4030_v42  ;;  %2981 = vmatpush.bf16.xpose.msra.mxu1 %v4034_v43  ;;  %v97_v42 = vld [vmem:[#allocation2 + $0x28] sm:$0xff]  ;;  %v1676_v43 = vunpack.c.l.b16 %v426_v29 }
 0x134   :  { %2994 = vmatpush.bf16.xpose.msra.mxu2 %v4038_v44  ;;  %3007 = vmatpush.bf16.xpose.msra.mxu3 %v4042_v45  ;;  %v1677_v44 = vunpack.c.h.b16 %v426_v29  ;;  %510 = vst [vmem:[#allocation1] ss:$9 sm:$0xff] %v97_v42  ;;  %v4046_v45 = vor.u32 %v5170_v26, %v4045_v25  ;;  %v4061_v26 = vld [vmem:[#allocation5 + $0xa0] sm:$0xf]  ;;  %v5122_v29 = vld [vmem:[#allocation5 + $0xa4] sm:$0xf] }
 0x136   :  { %v2077_v52 = vpack.c.b16 %v1677_v44, %v1677_v44 }
 0x137   :  { %v2775_v54 = vpop.f32.mrf.mxu1 }
 0x13a   :  { %2969 = vmatmul.bf16.vlgmr.msra.gmra.mxu0 %v501_v51  ;;  %2982 = vmatmul.bf16.vlgmr.msra.gmra.mxu1 %v502_v53  ;;  %v2076_v51 = vpack.c.b16 %v1676_v43, %v1676_v43  ;;  %v2762_v53 = vpop.f32.mrf.mxu0 }
 0x13b   :  { %3017 = vmatpush.bf16.xpose.msrb.mxu0 %v2070_v46  ;;  %3030 = vmatpush.bf16.xpose.msrb.mxu1 %v2071_v47  ;;  %v4050_v46 = vor.u32 %v5120_v27, %v4047_v28  ;;  %v4054_v47 = vor.u32 %v5171_v33, %v4053_v32  ;;  %v2763_v57 = vadd.f32 %v2762_v53, %v2750_v16  ;;  %v5273_v16 = vld [vmem:[#allocation5 + $0x554] sm:$0xf0]  ;;  %v5172_v27 = vld [vmem:[#allocation5 + $0x22c] sm:$0xf0]  ;;  %v5123_v33 = vld [vmem:[#allocation5 + $0xac] sm:$0xf] }
 0x13c   :  { %3043 = vmatpush.bf16.xpose.msrb.mxu2 %v2072_v48  ;;  %3056 = vmatpush.bf16.xpose.msrb.mxu3 %v2073_v49  ;;  %v4058_v48 = vor.u32 %v5121_v34, %v4055_v35  ;;  %v2074_v49 = vpack.c.b16 %v1674_v38, %v1674_v38  ;;  %v428_v28 = vld [vmem:[#allocation5 + $0xa18] sm:$0x11]  ;;  %v4062_v39 = vor.u32 %v5172_v27, %v4061_v26  ;;  %v430_v26 = vld [vmem:[#allocation5 + $0xa28] sm:$0x11] }
 0x13d   :  { %2995 = vmatmul.bf16.vlgmr.msra.gmra.mxu2 %v503_v63  ;;  %3008 = vmatmul.bf16.vlgmr.msra.gmra.mxu3 %v504_v1  ;;  %v4871_v63 = vld [vmem:[#allocation5 + $0x878] sm:$0xf0]  ;;  %v2776_v0 = vadd.f32 %v2775_v54, %v2763_v57  ;;  %v4862_v1 = vor.u32 %v5372_v56, %v4861_v55  ;;  %v5173_v32 = vld [vmem:[#allocation5 + $0x234] sm:$0xf0]  ;;  %v1681_v38 = vunpack.c.h.b16 %v428_v28  ;;  %v5324_v54 = vld [vmem:[#allocation5 + $0x6f4] sm:$0xf] }
 0x13e   :  { %v4071_v34 = vld [vmem:[#allocation5 + $0x238] sm:$0xf0]  ;;  %v4879_v55 = vld [vmem:[#allocation5 + $0x880] sm:$0xf0]  ;;  %v4885_v56 = vld [vmem:[#allocation5 + $0x6f8] sm:$0xf] }
 0x13f   :  { %v2777_v11 = vpop.f32.mrf.mxu1  ;;  %v4074_v42 = vor.u32 %v5123_v33, %v4071_v34  ;;  %v5375_v57 = vld [vmem:[#allocation5 + $0x884] sm:$0xf0]  ;;  %v515_v33 = vld [vmem:[#allocation1 + $0x24] sm:$0xff] }
 0x140   :  { %v2801_v6 = vpop.f32.mrf.mxu3  ;;  %v4479_v11 = vld [vmem:[#allocation5 + $0x560] sm:$0xf0]  ;;  %v517_v34 = vld [vmem:[#allocation1 + $0x36] sm:$0xff] }
 0x142   :  { %v2764_v10 = vpop.f32.mrf.mxu0 }
 0x143   :  { %3018 = vmatpush.bf16.xpose.msrb.mxu0 %v4846_v2  ;;  %3031 = vmatpush.bf16.xpose.msrb.mxu1 %v4850_v3  ;;  %v4866_v2 = vor.u32 %v5322_v58, %v4863_v59  ;;  %v4870_v3 = vor.u32 %v5373_v61, %v4869_v60  ;;  %v5325_v58 = vld [vmem:[#allocation5 + $0x6fc] sm:$0xf]  ;;  %v4887_v59 = vld [vmem:[#allocation5 + $0x888] sm:$0xf0]  ;;  %v5224_v10 = vld [vmem:[#allocation5 + $0x3d4] sm:$0xf] }
 0x144   :  { %3044 = vmatpush.bf16.xpose.msrb.mxu2 %v4854_v4  ;;  %3057 = vmatpush.bf16.xpose.msrb.mxu3 %v4858_v5  ;;  %v4874_v4 = vor.u32 %v5323_v62, %v4871_v63  ;;  %v2788_v5 = vpop.f32.mrf.mxu2  ;;  %v513_v60 = vld [vmem:[#allocation1 + $0x12] sm:$0xff]  ;;  %v514_v62 = vld [vmem:[#allocation1 + $0x1b] sm:$0xff] }
 0x145   :  { %v2789_v7 = vadd.f32 %v2788_v5, %v2776_v0  ;;  %v4882_v0 = vor.u32 %v5324_v54, %v4879_v55  ;;  %v5326_v55 = vld [vmem:[#allocation5 + $0x704] sm:$0xf] }
 0x147   :  { %v2802_v15 = vadd.f32 %v2801_v6, %v2789_v7  ;;  %v4477_v6 = vld [vmem:[#allocation5 + $0x3d0] sm:$0xf]  ;;  %v5274_v7 = vld [vmem:[#allocation5 + $0x55c] sm:$0xf0] }
 0x148   :  { %v2803_v25 = vpop.f32.mrf.mxu3 }
 0x149   :  { %v4079_v25 = vld [vmem:[#allocation5 + $0x240] sm:$0xf0] }
 0x14b   :  { %3019 = vmatpush.bf16.xpose.msrb.mxu0 %v4446_v20  ;;  %3032 = vmatpush.bf16.xpose.msrb.mxu1 %v4450_v21  ;;  %v4466_v20 = vor.u32 %v5222_v12, %v4463_v13  ;;  %v4470_v21 = vor.u32 %v5273_v16, %v4469_v14  ;;  %v4485_v12 = vld [vmem:[#allocation5 + $0x3d8] sm:$0xf]  ;;  %v5275_v14 = vld [vmem:[#allocation5 + $0x564] sm:$0xf0]  ;;  %v4487_v16 = vld [vmem:[#allocation5 + $0x568] sm:$0xf0] }
 0x14c   :  { %3045 = vmatpush.bf16.xpose.msrb.mxu2 %v4454_v22  ;;  %3058 = vmatpush.bf16.xpose.msrb.mxu3 %v4458_v23  ;;  %v4474_v22 = vor.u32 %v5223_v17, %v4471_v18  ;;  %v427_v23 = vld [vmem:[#allocation5 + $0xa10] sm:$0x11]  ;;  %v2790_v24 = vpop.f32.mrf.mxu2  ;;  %v4478_v17 = vor.u32 %v5274_v7, %v4477_v6  ;;  %v4482_v18 = vor.u32 %v5224_v10, %v4479_v11  ;;  %v4501_v11 = vld [vmem:[#allocation5 + $0x3e8] sm:$0xf] }
 0x14d   :  { %v1678_v35 = vunpack.c.l.b16 %v427_v23  ;;  %v5124_v24 = vld [vmem:[#allocation5 + $0xb4] sm:$0xf]  ;;  %v5276_v6 = vld [vmem:[#allocation5 + $0x56c] sm:$0xf0] }
 0x14e   :  { %v4495_v10 = vld [vmem:[#allocation5 + $0x570] sm:$0xf0] }
 0x14f   :  { %v2078_v43 = vpack.c.b16 %v1678_v35, %v1678_v35 }
 0x153   :  { %3020 = vmatpush.bf16.xpose.msrb.mxu0 %v4046_v45  ;;  %3033 = vmatpush.bf16.xpose.msrb.mxu1 %v4050_v46  ;;  %v2081_v46 = vpack.c.b16 %v1681_v38, %v1681_v38  ;;  %v518_v38 = vld [vmem:[#allocation1 + $0x3f] sm:$0xff] }
 0x154   :  { %3046 = vmatpush.bf16.xpose.msrb.mxu2 %v4054_v47  ;;  %3059 = vmatpush.bf16.xpose.msrb.mxu3 %v4058_v48  ;;  %v511_v48 = vld [vmem:[#allocation1] sm:$0xff] }
 0x157   :  { %v2814_v47 = vpop.f32.mrf.mxu0 }
 0x158   :  { %v2815_v53 = vadd.f32 %v2814_v47, %v2802_v15  ;;  %v5225_v15 = vld [vmem:[#allocation5 + $0x3dc] sm:$0xf] }
 0x15a   :  { %3021 = vmatmul.bf16.vlgmr.msrb.gmra.mxu0 %v505_v36  ;;  %3034 = vmatmul.bf16.vlgmr.msrb.gmra.mxu1 %v506_v40  ;;  %v1679_v36 = vunpack.c.h.b16 %v427_v23  ;;  %v4066_v40 = vor.u32 %v5122_v29, %v4063_v30  ;;  %v5174_v23 = vld [vmem:[#allocation5 + $0x23c] sm:$0xf0]  ;;  %v4085_v29 = vld [vmem:[#allocation5 + $0xb8] sm:$0xf]  ;;  %v5175_v30 = vld [vmem:[#allocation5 + $0x244] sm:$0xf0] }
 0x15b   :  { %3069 = vmatpush.bf16.xpose.msra.mxu0 %v2074_v49  ;;  %3082 = vmatpush.bf16.xpose.msra.mxu1 %v2075_v50  ;;  %v2827_v49 = vpop.f32.mrf.mxu1  ;;  %v512_v50 = vld [vmem:[#allocation1 + $0x9] sm:$0xff] }
 0x15c   :  { %3095 = vmatpush.bf16.xpose.msra.mxu2 %v2076_v51  ;;  %3108 = vmatpush.bf16.xpose.msra.mxu3 %v2077_v52  ;;  %v2079_v44 = vpack.c.b16 %v1679_v36, %v1679_v36  ;;  %v4877_v51 = vld [vmem:[#allocation5 + $0x6f0] sm:$0xf]  ;;  %v5374_v52 = vld [vmem:[#allocation5 + $0x87c] sm:$0xf0]  ;;  %v2828_v61 = vadd.f32 %v2827_v49, %v2815_v53 }
 0x15d   :  { %3047 = vmatmul.bf16.vlgmr.msrb.gmra.mxu2 %v507_v37  ;;  %3060 = vmatmul.bf16.vlgmr.msrb.gmra.mxu3 %v508_v41  ;;  %v1680_v37 = vunpack.c.l.b16 %v428_v28  ;;  %v4070_v41 = vor.u32 %v5173_v32, %v4069_v31  ;;  %v4878_v63 = vor.u32 %v5374_v52, %v4877_v51  ;;  %v5125_v31 = vld [vmem:[#allocation5 + $0xbc] sm:$0xf]  ;;  %v4087_v32 = vld [vmem:[#allocation5 + $0x248] sm:$0xf0]  ;;  %v4893_v52 = vld [vmem:[#allocation5 + $0x700] sm:$0xf] }
 0x15e   :  { %v5376_v53 = vld [vmem:[#allocation5 + $0x88c] sm:$0xf0] }
 0x15f   :  { %v2080_v45 = vpack.c.b16 %v1680_v37, %v1680_v37  ;;  %v2816_v8 = vpop.f32.mrf.mxu0  ;;  %v516_v37 = vld [vmem:[#allocation1 + $0x2d] sm:$0xff] }
 0x163   :  { %3070 = vmatpush.bf16.xpose.msra.mxu0 %v4862_v1  ;;  %3083 = vmatpush.bf16.xpose.msra.mxu1 %v4866_v2  ;;  %v4886_v1 = vor.u32 %v5375_v57, %v4885_v56  ;;  %v4890_v2 = vor.u32 %v5325_v58, %v4887_v59  ;;  %v2829_v9 = vpop.f32.mrf.mxu1  ;;  %v4895_v56 = vld [vmem:[#allocation5 + $0x890] sm:$0xf0]  ;;  %v4901_v57 = vld [vmem:[#allocation5 + $0x708] sm:$0xf]  ;;  %v5377_v58 = vld [vmem:[#allocation5 + $0x894] sm:$0xf0] }
 0x164   :  { %3096 = vmatpush.bf16.xpose.msra.mxu2 %v4870_v3  ;;  %3109 = vmatpush.bf16.xpose.msra.mxu3 %v4874_v4  ;;  %v2840_v3 = vpop.f32.mrf.mxu2  ;;  %v2853_v4 = vpop.f32.mrf.mxu3  ;;  %v5327_v59 = vld [vmem:[#allocation5 + $0x70c] sm:$0xf]  ;;  %v5226_v9 = vld [vmem:[#allocation5 + $0x3e4] sm:$0xf] }
 0x165   :  { %v2841_v5 = vadd.f32 %v2840_v3, %v2828_v61 }
 0x167   :  { %v2854_v13 = vadd.f32 %v2853_v4, %v2841_v5  ;;  %v4493_v5 = vld [vmem:[#allocation5 + $0x3e0] sm:$0xf] }
 0x16b   :  { %3071 = vmatpush.bf16.xpose.msra.mxu0 %v4462_v19  ;;  %3084 = vmatpush.bf16.xpose.msra.mxu1 %v4466_v20  ;;  %v4486_v19 = vor.u32 %v5275_v14, %v4485_v12  ;;  %v4490_v20 = vor.u32 %v5225_v15, %v4487_v16  ;;  %v5227_v14 = vld [vmem:[#allocation5 + $0x3ec] sm:$0xf]  ;;  %v4503_v15 = vld [vmem:[#allocation5 + $0x578] sm:$0xf0]  ;;  %v4494_v16 = vor.u32 %v5276_v6, %v4493_v5 }
 0x16c   :  { %3097 = vmatpush.bf16.xpose.msra.mxu2 %v4470_v21  ;;  %3110 = vmatpush.bf16.xpose.msra.mxu3 %v4474_v22  ;;  %v429_v21 = vld [vmem:[#allocation5 + $0xa20] sm:$0x11]  ;;  %v4077_v22 = vld [vmem:[#allocation5 + $0xb0] sm:$0xf]  ;;  %v2842_v27 = vpop.f32.mrf.mxu2  ;;  %v2855_v28 = vpop.f32.mrf.mxu3 }
 0x16d   :  { %v1682_v35 = vunpack.c.l.b16 %v429_v21  ;;  %v1683_v36 = vunpack.c.h.b16 %v429_v21  ;;  %v4095_v27 = vld [vmem:[#allocation5 + $0x250] sm:$0xf0]  ;;  %v4101_v28 = vld [vmem:[#allocation5 + $0xc8] sm:$0xf] }
 0x16f   :  { %v2083_v47 = vpack.c.b16 %v1683_v36, %v1683_v36 }
 0x173   :  { %3072 = vmatpush.bf16.xpose.msra.mxu0 %v4062_v39  ;;  %3085 = vmatpush.bf16.xpose.msra.mxu1 %v4066_v40  ;;  %v98_v39 = vld [vmem:[#allocation2 + $0x30] sm:$0xff]  ;;  %v1684_v40 = vunpack.c.l.b16 %v430_v26 }
 0x174   :  { %3098 = vmatpush.bf16.xpose.msra.mxu2 %v4070_v41  ;;  %3111 = vmatpush.bf16.xpose.msra.mxu3 %v4074_v42  ;;  %v1685_v41 = vunpack.c.h.b16 %v430_v26  ;;  %520 = vst [vmem:[#allocation1] ss:$9 sm:$0xff] %v98_v39  ;;  %v4078_v42 = vor.u32 %v5174_v23, %v4077_v22  ;;  %v4093_v23 = vld [vmem:[#allocation5 + $0xc0] sm:$0xf]  ;;  %v5126_v26 = vld [vmem:[#allocation5 + $0xc4] sm:$0xf] }
 0x176   :  { %v2085_v49 = vpack.c.b16 %v1685_v41, %v1685_v41 }
 0x177   :  { %v2879_v51 = vpop.f32.mrf.mxu1 }
 0x17a   :  { %3073 = vmatmul.bf16.vlgmr.msra.gmra.mxu0 %v511_v48  ;;  %3086 = vmatmul.bf16.vlgmr.msra.gmra.mxu1 %v512_v50  ;;  %v2084_v48 = vpack.c.b16 %v1684_v40, %v1684_v40  ;;  %v2866_v50 = vpop.f32.mrf.mxu0 }
 0x17b   :  { %3121 = vmatpush.bf16.xpose.msrb.mxu0 %v2078_v43  ;;  %3134 = vmatpush.bf16.xpose.msrb.mxu1 %v2079_v44  ;;  %v4082_v43 = vor.u32 %v5124_v24, %v4079_v25  ;;  %v4086_v44 = vor.u32 %v5175_v30, %v4085_v29  ;;  %v2867_v54 = vadd.f32 %v2866_v50, %v2854_v13  ;;  %v5277_v13 = vld [vmem:[#allocation5 + $0x574] sm:$0xf0]  ;;  %v5176_v24 = vld [vmem:[#allocation5 + $0x24c] sm:$0xf0]  ;;  %v5127_v30 = vld [vmem:[#allocation5 + $0xcc] sm:$0xf] }
 0x17c   :  { %3147 = vmatpush.bf16.xpose.msrb.mxu2 %v2080_v45  ;;  %3160 = vmatpush.bf16.xpose.msrb.mxu3 %v2081_v46  ;;  %v4090_v45 = vor.u32 %v5125_v31, %v4087_v32  ;;  %v2082_v46 = vpack.c.b16 %v1682_v35, %v1682_v35  ;;  %v432_v25 = vld [vmem:[#allocation5 + $0xa38] sm:$0x11]  ;;  %v4094_v36 = vor.u32 %v5176_v24, %v4093_v23  ;;  %v434_v23 = vld [vmem:[#allocation5 + $0xa48] sm:$0x11] }
 0x17d   :  { %3099 = vmatmul.bf16.vlgmr.msra.gmra.mxu2 %v513_v60  ;;  %3112 = vmatmul.bf16.vlgmr.msra.gmra.mxu3 %v514_v62  ;;  %v4903_v60 = vld [vmem:[#allocation5 + $0x898] sm:$0xf0]  ;;  %v2880_v61 = vadd.f32 %v2879_v51, %v2867_v54  ;;  %v4894_v62 = vor.u32 %v5376_v53, %v4893_v52  ;;  %v5177_v29 = vld [vmem:[#allocation5 + $0x254] sm:$0xf0]  ;;  %v1689_v35 = vunpack.c.h.b16 %v432_v25  ;;  %v5328_v51 = vld [vmem:[#allocation5 + $0x714] sm:$0xf] }
 0x17e   :  { %v4103_v31 = vld [vmem:[#allocation5 + $0x258] sm:$0xf0]  ;;  %v4911_v52 = vld [vmem:[#allocation5 + $0x8a0] sm:$0xf0]  ;;  %v4917_v53 = vld [vmem:[#allocation5 + $0x718] sm:$0xf] }
 0x17f   :  { %v2881_v8 = vpop.f32.mrf.mxu1  ;;  %v4106_v39 = vor.u32 %v5127_v30, %v4103_v31  ;;  %v5379_v54 = vld [vmem:[#allocation5 + $0x8a4] sm:$0xf0]  ;;  %v525_v30 = vld [vmem:[#allocation1 + $0x24] sm:$0xff] }
 0x180   :  { %v2905_v3 = vpop.f32.mrf.mxu3  ;;  %v4511_v8 = vld [vmem:[#allocation5 + $0x580] sm:$0xf0]  ;;  %v527_v31 = vld [vmem:[#allocation1 + $0x36] sm:$0xff] }
 0x182   :  { %v2868_v7 = vpop.f32.mrf.mxu0 }
 0x183   :  { %3122 = vmatpush.bf16.xpose.msrb.mxu0 %v4878_v63  ;;  %3135 = vmatpush.bf16.xpose.msrb.mxu1 %v4882_v0  ;;  %v4898_v63 = vor.u32 %v5326_v55, %v4895_v56  ;;  %v4902_v0 = vor.u32 %v5377_v58, %v4901_v57  ;;  %v5329_v55 = vld [vmem:[#allocation5 + $0x71c] sm:$0xf]  ;;  %v4919_v56 = vld [vmem:[#allocation5 + $0x8a8] sm:$0xf0]  ;;  %v5228_v7 = vld [vmem:[#allocation5 + $0x3f4] sm:$0xf] }
 0x184   :  { %3148 = vmatpush.bf16.xpose.msrb.mxu2 %v4886_v1  ;;  %3161 = vmatpush.bf16.xpose.msrb.mxu3 %v4890_v2  ;;  %v4906_v1 = vor.u32 %v5327_v59, %v4903_v60  ;;  %v2892_v2 = vpop.f32.mrf.mxu2  ;;  %v523_v57 = vld [vmem:[#allocation1 + $0x12] sm:$0xff]  ;;  %v524_v59 = vld [vmem:[#allocation1 + $0x1b] sm:$0xff] }
 0x185   :  { %v2893_v4 = vadd.f32 %v2892_v2, %v2880_v61  ;;  %v4914_v61 = vor.u32 %v5328_v51, %v4911_v52  ;;  %v5330_v52 = vld [vmem:[#allocation5 + $0x724] sm:$0xf] }
 0x187   :  { %v2906_v12 = vadd.f32 %v2905_v3, %v2893_v4  ;;  %v4509_v3 = vld [vmem:[#allocation5 + $0x3f0] sm:$0xf]  ;;  %v5278_v4 = vld [vmem:[#allocation5 + $0x57c] sm:$0xf0] }
 0x188   :  { %v2907_v22 = vpop.f32.mrf.mxu3 }
 0x189   :  { %v4111_v22 = vld [vmem:[#allocation5 + $0x260] sm:$0xf0] }
 0x18b   :  { %3123 = vmatpush.bf16.xpose.msrb.mxu0 %v4478_v17  ;;  %3136 = vmatpush.bf16.xpose.msrb.mxu1 %v4482_v18  ;;  %v4498_v17 = vor.u32 %v5226_v9, %v4495_v10  ;;  %v4502_v18 = vor.u32 %v5277_v13, %v4501_v11  ;;  %v4517_v9 = vld [vmem:[#allocation5 + $0x3f8] sm:$0xf]  ;;  %v5279_v11 = vld [vmem:[#allocation5 + $0x584] sm:$0xf0]  ;;  %v4519_v13 = vld [vmem:[#allocation5 + $0x588] sm:$0xf0] }
 0x18c   :  { %3149 = vmatpush.bf16.xpose.msrb.mxu2 %v4486_v19  ;;  %3162 = vmatpush.bf16.xpose.msrb.mxu3 %v4490_v20  ;;  %v4506_v19 = vor.u32 %v5227_v14, %v4503_v15  ;;  %v431_v20 = vld [vmem:[#allocation5 + $0xa30] sm:$0x11]  ;;  %v2894_v21 = vpop.f32.mrf.mxu2  ;;  %v4510_v14 = vor.u32 %v5278_v4, %v4509_v3  ;;  %v4514_v15 = vor.u32 %v5228_v7, %v4511_v8  ;;  %v4533_v8 = vld [vmem:[#allocation5 + $0x408] sm:$0xf] }
 0x18d   :  { %v1686_v32 = vunpack.c.l.b16 %v431_v20  ;;  %v5128_v21 = vld [vmem:[#allocation5 + $0xd4] sm:$0xf]  ;;  %v5280_v3 = vld [vmem:[#allocation5 + $0x58c] sm:$0xf0] }
 0x18e   :  { %v4527_v7 = vld [vmem:[#allocation5 + $0x590] sm:$0xf0] }
 0x18f   :  { %v2086_v40 = vpack.c.b16 %v1686_v32, %v1686_v32 }
 0x193   :  { %3124 = vmatpush.bf16.xpose.msrb.mxu0 %v4078_v42  ;;  %3137 = vmatpush.bf16.xpose.msrb.mxu1 %v4082_v43  ;;  %v2089_v43 = vpack.c.b16 %v1689_v35, %v1689_v35  ;;  %v528_v35 = vld [vmem:[#allocation1 + $0x3f] sm:$0xff] }
 0x194   :  { %3150 = vmatpush.bf16.xpose.msrb.mxu2 %v4086_v44  ;;  %3163 = vmatpush.bf16.xpose.msrb.mxu3 %v4090_v45  ;;  %v521_v45 = vld [vmem:[#allocation1] sm:$0xff] }
 0x197   :  { %v2918_v44 = vpop.f32.mrf.mxu0 }
 0x198   :  { %v2919_v50 = vadd.f32 %v2918_v44, %v2906_v12  ;;  %v5229_v12 = vld [vmem:[#allocation5 + $0x3fc] sm:$0xf] }
 0x19a   :  { %3125 = vmatmul.bf16.vlgmr.msrb.gmra.mxu0 %v515_v33  ;;  %3138 = vmatmul.bf16.vlgmr.msrb.gmra.mxu1 %v516_v37  ;;  %v1687_v33 = vunpack.c.h.b16 %v431_v20  ;;  %v4098_v37 = vor.u32 %v5126_v26, %v4095_v27  ;;  %v5178_v20 = vld [vmem:[#allocation5 + $0x25c] sm:$0xf0]  ;;  %v4117_v26 = vld [vmem:[#allocation5 + $0xd8] sm:$0xf]  ;;  %v5179_v27 = vld [vmem:[#allocation5 + $0x264] sm:$0xf0] }
 0x19b   :  { %3173 = vmatpush.bf16.xpose.msra.mxu0 %v2082_v46  ;;  %3186 = vmatpush.bf16.xpose.msra.mxu1 %v2083_v47  ;;  %v2931_v46 = vpop.f32.mrf.mxu1  ;;  %v522_v47 = vld [vmem:[#allocation1 + $0x9] sm:$0xff] }
 0x19c   :  { %3199 = vmatpush.bf16.xpose.msra.mxu2 %v2084_v48  ;;  %3212 = vmatpush.bf16.xpose.msra.mxu3 %v2085_v49  ;;  %v2087_v41 = vpack.c.b16 %v1687_v33, %v1687_v33  ;;  %v4909_v48 = vld [vmem:[#allocation5 + $0x710] sm:$0xf]  ;;  %v5378_v49 = vld [vmem:[#allocation5 + $0x89c] sm:$0xf0]  ;;  %v2932_v58 = vadd.f32 %v2931_v46, %v2919_v50 }
 0x19d   :  { %3151 = vmatmul.bf16.vlgmr.msrb.gmra.mxu2 %v517_v34  ;;  %3164 = vmatmul.bf16.vlgmr.msrb.gmra.mxu3 %v518_v38  ;;  %v1688_v34 = vunpack.c.l.b16 %v432_v25  ;;  %v4102_v38 = vor.u32 %v5177_v29, %v4101_v28  ;;  %v4910_v60 = vor.u32 %v5378_v49, %v4909_v48  ;;  %v5129_v28 = vld [vmem:[#allocation5 + $0xdc] sm:$0xf]  ;;  %v4119_v29 = vld [vmem:[#allocation5 + $0x268] sm:$0xf0]  ;;  %v4925_v49 = vld [vmem:[#allocation5 + $0x720] sm:$0xf] }
 0x19e   :  { %v5380_v50 = vld [vmem:[#allocation5 + $0x8ac] sm:$0xf0] }
 0x19f   :  { %v2088_v42 = vpack.c.b16 %v1688_v34, %v1688_v34  ;;  %v2920_v5 = vpop.f32.mrf.mxu0  ;;  %v526_v34 = vld [vmem:[#allocation1 + $0x2d] sm:$0xff] }
 0x1a3   :  { %3174 = vmatpush.bf16.xpose.msra.mxu0 %v4894_v62  ;;  %3187 = vmatpush.bf16.xpose.msra.mxu1 %v4898_v63  ;;  %v4918_v62 = vor.u32 %v5379_v54, %v4917_v53  ;;  %v4922_v63 = vor.u32 %v5329_v55, %v4919_v56  ;;  %v2933_v6 = vpop.f32.mrf.mxu1  ;;  %v4927_v53 = vld [vmem:[#allocation5 + $0x8b0] sm:$0xf0]  ;;  %v4933_v54 = vld [vmem:[#allocation5 + $0x728] sm:$0xf]  ;;  %v5381_v55 = vld [vmem:[#allocation5 + $0x8b4] sm:$0xf0] }
 0x1a4   :  { %3200 = vmatpush.bf16.xpose.msra.mxu2 %v4902_v0  ;;  %3213 = vmatpush.bf16.xpose.msra.mxu3 %v4906_v1  ;;  %v2944_v0 = vpop.f32.mrf.mxu2  ;;  %v2957_v1 = vpop.f32.mrf.mxu3  ;;  %v5331_v56 = vld [vmem:[#allocation5 + $0x72c] sm:$0xf]  ;;  %v5230_v6 = vld [vmem:[#allocation5 + $0x404] sm:$0xf] }
 0x1a5   :  { %v2945_v2 = vadd.f32 %v2944_v0, %v2932_v58 }
 0x1a7   :  { %v2958_v10 = vadd.f32 %v2957_v1, %v2945_v2  ;;  %v4525_v2 = vld [vmem:[#allocation5 + $0x400] sm:$0xf] }
 0x1ab   :  { %3175 = vmatpush.bf16.xpose.msra.mxu0 %v4494_v16  ;;  %3188 = vmatpush.bf16.xpose.msra.mxu1 %v4498_v17  ;;  %v4518_v16 = vor.u32 %v5279_v11, %v4517_v9  ;;  %v4522_v17 = vor.u32 %v5229_v12, %v4519_v13  ;;  %v5231_v11 = vld [vmem:[#allocation5 + $0x40c] sm:$0xf]  ;;  %v4535_v12 = vld [vmem:[#allocation5 + $0x598] sm:$0xf0]  ;;  %v4526_v13 = vor.u32 %v5280_v3, %v4525_v2 }
 0x1ac   :  { %3201 = vmatpush.bf16.xpose.msra.mxu2 %v4502_v18  ;;  %3214 = vmatpush.bf16.xpose.msra.mxu3 %v4506_v19  ;;  %v433_v18 = vld [vmem:[#allocation5 + $0xa40] sm:$0x11]  ;;  %v4109_v19 = vld [vmem:[#allocation5 + $0xd0] sm:$0xf]  ;;  %v2946_v24 = vpop.f32.mrf.mxu2  ;;  %v2959_v25 = vpop.f32.mrf.mxu3 }
 0x1ad   :  { %v1690_v32 = vunpack.c.l.b16 %v433_v18  ;;  %v1691_v33 = vunpack.c.h.b16 %v433_v18  ;;  %v4127_v24 = vld [vmem:[#allocation5 + $0x270] sm:$0xf0]  ;;  %v4133_v25 = vld [vmem:[#allocation5 + $0xe8] sm:$0xf] }
 0x1af   :  { %v2091_v44 = vpack.c.b16 %v1691_v33, %v1691_v33 }
 0x1b3   :  { %3176 = vmatpush.bf16.xpose.msra.mxu0 %v4094_v36  ;;  %3189 = vmatpush.bf16.xpose.msra.mxu1 %v4098_v37  ;;  %v99_v36 = vld [vmem:[#allocation2 + $0x38] sm:$0xff]  ;;  %v1692_v37 = vunpack.c.l.b16 %v434_v23 }
 0x1b4   :  { %3202 = vmatpush.bf16.xpose.msra.mxu2 %v4102_v38  ;;  %3215 = vmatpush.bf16.xpose.msra.mxu3 %v4106_v39  ;;  %v1693_v38 = vunpack.c.h.b16 %v434_v23  ;;  %530 = vst [vmem:[#allocation1] ss:$9 sm:$0xff] %v99_v36  ;;  %v4110_v39 = vor.u32 %v5178_v20, %v4109_v19  ;;  %v4125_v20 = vld [vmem:[#allocation5 + $0xe0] sm:$0xf]  ;;  %v5130_v23 = vld [vmem:[#allocation5 + $0xe4] sm:$0xf] }
 0x1b6   :  { %v2093_v46 = vpack.c.b16 %v1693_v38, %v1693_v38 }
 0x1b7   :  { %v2983_v48 = vpop.f32.mrf.mxu1 }
 0x1ba   :  { %3177 = vmatmul.bf16.vlgmr.msra.gmra.mxu0 %v521_v45  ;;  %3190 = vmatmul.bf16.vlgmr.msra.gmra.mxu1 %v522_v47  ;;  %v2092_v45 = vpack.c.b16 %v1692_v37, %v1692_v37  ;;  %v2970_v47 = vpop.f32.mrf.mxu0 }
 0x1bb   :  { %3225 = vmatpush.bf16.xpose.msrb.mxu0 %v2086_v40  ;;  %3238 = vmatpush.bf16.xpose.msrb.mxu1 %v2087_v41  ;;  %v4114_v40 = vor.u32 %v5128_v21, %v4111_v22  ;;  %v4118_v41 = vor.u32 %v5179_v27, %v4117_v26  ;;  %v2971_v51 = vadd.f32 %v2970_v47, %v2958_v10  ;;  %v5281_v10 = vld [vmem:[#allocation5 + $0x594] sm:$0xf0]  ;;  %v5180_v21 = vld [vmem:[#allocation5 + $0x26c] sm:$0xf0]  ;;  %v5131_v27 = vld [vmem:[#allocation5 + $0xec] sm:$0xf] }
 0x1bc   :  { %3251 = vmatpush.bf16.xpose.msrb.mxu2 %v2088_v42  ;;  %3264 = vmatpush.bf16.xpose.msrb.mxu3 %v2089_v43  ;;  %v4122_v42 = vor.u32 %v5129_v28, %v4119_v29  ;;  %v2090_v43 = vpack.c.b16 %v1690_v32, %v1690_v32  ;;  %v436_v22 = vld [vmem:[#allocation5 + $0xa58] sm:$0x11]  ;;  %v4126_v33 = vor.u32 %v5180_v21, %v4125_v20  ;;  %v438_v20 = vld [vmem:[#allocation5 + $0xa68] sm:$0x11] }
 0x1bd   :  { %3203 = vmatmul.bf16.vlgmr.msra.gmra.mxu2 %v523_v57  ;;  %3216 = vmatmul.bf16.vlgmr.msra.gmra.mxu3 %v524_v59  ;;  %v4935_v57 = vld [vmem:[#allocation5 + $0x8b8] sm:$0xf0]  ;;  %v2984_v58 = vadd.f32 %v2983_v48, %v2971_v51  ;;  %v4926_v59 = vor.u32 %v5380_v50, %v4925_v49  ;;  %v5181_v26 = vld [vmem:[#allocation5 + $0x274] sm:$0xf0]  ;;  %v1697_v32 = vunpack.c.h.b16 %v436_v22  ;;  %v5332_v48 = vld [vmem:[#allocation5 + $0x734] sm:$0xf] }
 0x1be   :  { %v4135_v28 = vld [vmem:[#allocation5 + $0x278] sm:$0xf0]  ;;  %v4943_v49 = vld [vmem:[#allocation5 + $0x8c0] sm:$0xf0]  ;;  %v4949_v50 = vld [vmem:[#allocation5 + $0x738] sm:$0xf] }
 0x1bf   :  { %v2985_v5 = vpop.f32.mrf.mxu1  ;;  %v4138_v36 = vor.u32 %v5131_v27, %v4135_v28  ;;  %v5383_v51 = vld [vmem:[#allocation5 + $0x8c4] sm:$0xf0]  ;;  %v535_v27 = vld [vmem:[#allocation1 + $0x24] sm:$0xff] }
 0x1c0   :  { %v3009_v0 = vpop.f32.mrf.mxu3  ;;  %v4543_v5 = vld [vmem:[#allocation5 + $0x5a0] sm:$0xf0]  ;;  %v537_v28 = vld [vmem:[#allocation1 + $0x36] sm:$0xff] }
 0x1c2   :  { %v2972_v4 = vpop.f32.mrf.mxu0 }
 0x1c3   :  { %3226 = vmatpush.bf16.xpose.msrb.mxu0 %v4910_v60  ;;  %3239 = vmatpush.bf16.xpose.msrb.mxu1 %v4914_v61  ;;  %v4930_v60 = vor.u32 %v5330_v52, %v4927_v53  ;;  %v4934_v61 = vor.u32 %v5381_v55, %v4933_v54  ;;  %v5333_v52 = vld [vmem:[#allocation5 + $0x73c] sm:$0xf]  ;;  %v4951_v53 = vld [vmem:[#allocation5 + $0x8c8] sm:$0xf0]  ;;  %v5232_v4 = vld [vmem:[#allocation5 + $0x414] sm:$0xf] }
 0x1c4   :  { %3252 = vmatpush.bf16.xpose.msrb.mxu2 %v4918_v62  ;;  %3265 = vmatpush.bf16.xpose.msrb.mxu3 %v4922_v63  ;;  %v4938_v62 = vor.u32 %v5331_v56, %v4935_v57  ;;  %v2996_v63 = vpop.f32.mrf.mxu2  ;;  %v533_v54 = vld [vmem:[#allocation1 + $0x12] sm:$0xff]  ;;  %v534_v56 = vld [vmem:[#allocation1 + $0x1b] sm:$0xff] }
 0x1c5   :  { %v2997_v1 = vadd.f32 %v2996_v63, %v2984_v58  ;;  %v4946_v58 = vor.u32 %v5332_v48, %v4943_v49  ;;  %v5334_v49 = vld [vmem:[#allocation5 + $0x744] sm:$0xf] }
 0x1c7   :  { %v3010_v9 = vadd.f32 %v3009_v0, %v2997_v1  ;;  %v4541_v0 = vld [vmem:[#allocation5 + $0x410] sm:$0xf]  ;;  %v5282_v1 = vld [vmem:[#allocation5 + $0x59c] sm:$0xf0] }
 0x1c8   :  { %v3011_v19 = vpop.f32.mrf.mxu3 }
 0x1c9   :  { %v4143_v19 = vld [vmem:[#allocation5 + $0x280] sm:$0xf0] }
 0x1cb   :  { %3227 = vmatpush.bf16.xpose.msrb.mxu0 %v4510_v14  ;;  %3240 = vmatpush.bf16.xpose.msrb.mxu1 %v4514_v15  ;;  %v4530_v14 = vor.u32 %v5230_v6, %v4527_v7  ;;  %v4534_v15 = vor.u32 %v5281_v10, %v4533_v8  ;;  %v4549_v6 = vld [vmem:[#allocation5 + $0x418] sm:$0xf]  ;;  %v5283_v8 = vld [vmem:[#allocation5 + $0x5a4] sm:$0xf0]  ;;  %v4551_v10 = vld [vmem:[#allocation5 + $0x5a8] sm:$0xf0] }
 0x1cc   :  { %3253 = vmatpush.bf16.xpose.msrb.mxu2 %v4518_v16  ;;  %3266 = vmatpush.bf16.xpose.msrb.mxu3 %v4522_v17  ;;  %v4538_v16 = vor.u32 %v5231_v11, %v4535_v12  ;;  %v435_v17 = vld [vmem:[#allocation5 + $0xa50] sm:$0x11]  ;;  %v2998_v18 = vpop.f32.mrf.mxu2  ;;  %v4542_v11 = vor.u32 %v5282_v1, %v4541_v0  ;;  %v4546_v12 = vor.u32 %v5232_v4, %v4543_v5  ;;  %v4565_v5 = vld [vmem:[#allocation5 + $0x428] sm:$0xf] }
 0x1cd   :  { %v1694_v29 = vunpack.c.l.b16 %v435_v17  ;;  %v5132_v18 = vld [vmem:[#allocation5 + $0xf4] sm:$0xf]  ;;  %v5284_v0 = vld [vmem:[#allocation5 + $0x5ac] sm:$0xf0] }
 0x1ce   :  { %v4559_v4 = vld [vmem:[#allocation5 + $0x5b0] sm:$0xf0] }
 0x1cf   :  { %v2094_v37 = vpack.c.b16 %v1694_v29, %v1694_v29 }
 0x1d3   :  { %3228 = vmatpush.bf16.xpose.msrb.mxu0 %v4110_v39  ;;  %3241 = vmatpush.bf16.xpose.msrb.mxu1 %v4114_v40  ;;  %v2097_v40 = vpack.c.b16 %v1697_v32, %v1697_v32  ;;  %v538_v32 = vld [vmem:[#allocation1 + $0x3f] sm:$0xff] }
 0x1d4   :  { %3254 = vmatpush.bf16.xpose.msrb.mxu2 %v4118_v41  ;;  %3267 = vmatpush.bf16.xpose.msrb.mxu3 %v4122_v42  ;;  %v531_v42 = vld [vmem:[#allocation1] sm:$0xff] }
 0x1d7   :  { %v3022_v41 = vpop.f32.mrf.mxu0 }
 0x1d8   :  { %v3023_v47 = vadd.f32 %v3022_v41, %v3010_v9  ;;  %v5233_v9 = vld [vmem:[#allocation5 + $0x41c] sm:$0xf] }
 0x1da   :  { %3229 = vmatmul.bf16.vlgmr.msrb.gmra.mxu0 %v525_v30  ;;  %3242 = vmatmul.bf16.vlgmr.msrb.gmra.mxu1 %v526_v34  ;;  %v1695_v30 = vunpack.c.h.b16 %v435_v17  ;;  %v4130_v34 = vor.u32 %v5130_v23, %v4127_v24  ;;  %v5182_v17 = vld [vmem:[#allocation5 + $0x27c] sm:$0xf0]  ;;  %v4149_v23 = vld [vmem:[#allocation5 + $0xf8] sm:$0xf]  ;;  %v5183_v24 = vld [vmem:[#allocation5 + $0x284] sm:$0xf0] }
 0x1db   :  { %3277 = vmatpush.bf16.xpose.msra.mxu0 %v2090_v43  ;;  %3290 = vmatpush.bf16.xpose.msra.mxu1 %v2091_v44  ;;  %v3035_v43 = vpop.f32.mrf.mxu1  ;;  %v532_v44 = vld [vmem:[#allocation1 + $0x9] sm:$0xff] }
 0x1dc   :  { %3303 = vmatpush.bf16.xpose.msra.mxu2 %v2092_v45  ;;  %3316 = vmatpush.bf16.xpose.msra.mxu3 %v2093_v46  ;;  %v2095_v38 = vpack.c.b16 %v1695_v30, %v1695_v30  ;;  %v4941_v45 = vld [vmem:[#allocation5 + $0x730] sm:$0xf]  ;;  %v5382_v46 = vld [vmem:[#allocation5 + $0x8bc] sm:$0xf0]  ;;  %v3036_v55 = vadd.f32 %v3035_v43, %v3023_v47 }
 0x1dd   :  { %3255 = vmatmul.bf16.vlgmr.msrb.gmra.mxu2 %v527_v31  ;;  %3268 = vmatmul.bf16.vlgmr.msrb.gmra.mxu3 %v528_v35  ;;  %v1696_v31 = vunpack.c.l.b16 %v436_v22  ;;  %v4134_v35 = vor.u32 %v5181_v26, %v4133_v25  ;;  %v4942_v57 = vor.u32 %v5382_v46, %v4941_v45  ;;  %v5133_v25 = vld [vmem:[#allocation5 + $0xfc] sm:$0xf]  ;;  %v4151_v26 = vld [vmem:[#allocation5 + $0x288] sm:$0xf0]  ;;  %v4957_v46 = vld [vmem:[#allocation5 + $0x740] sm:$0xf] }
 0x1de   :  { %v5384_v47 = vld [vmem:[#allocation5 + $0x8cc] sm:$0xf0] }
 0x1df   :  { %v2096_v39 = vpack.c.b16 %v1696_v31, %v1696_v31  ;;  %v3024_v2 = vpop.f32.mrf.mxu0  ;;  %v536_v31 = vld [vmem:[#allocation1 + $0x2d] sm:$0xff] }
 0x1e3   :  { %3278 = vmatpush.bf16.xpose.msra.mxu0 %v4926_v59  ;;  %3291 = vmatpush.bf16.xpose.msra.mxu1 %v4930_v60  ;;  %v4950_v59 = vor.u32 %v5383_v51, %v4949_v50  ;;  %v4954_v60 = vor.u32 %v5333_v52, %v4951_v53  ;;  %v3037_v3 = vpop.f32.mrf.mxu1  ;;  %v4959_v50 = vld [vmem:[#allocation5 + $0x8d0] sm:$0xf0]  ;;  %v4965_v51 = vld [vmem:[#allocation5 + $0x748] sm:$0xf]  ;;  %v5385_v52 = vld [vmem:[#allocation5 + $0x8d4] sm:$0xf0] }
 0x1e4   :  { %3304 = vmatpush.bf16.xpose.msra.mxu2 %v4934_v61  ;;  %3317 = vmatpush.bf16.xpose.msra.mxu3 %v4938_v62  ;;  %v3048_v61 = vpop.f32.mrf.mxu2  ;;  %v3061_v62 = vpop.f32.mrf.mxu3  ;;  %v5335_v53 = vld [vmem:[#allocation5 + $0x74c] sm:$0xf]  ;;  %v5234_v3 = vld [vmem:[#allocation5 + $0x424] sm:$0xf] }
 0x1e5   :  { %v3049_v63 = vadd.f32 %v3048_v61, %v3036_v55 }
 0x1e7   :  { %v3062_v7 = vadd.f32 %v3061_v62, %v3049_v63  ;;  %v4557_v63 = vld [vmem:[#allocation5 + $0x420] sm:$0xf] }
 0x1eb   :  { %3279 = vmatpush.bf16.xpose.msra.mxu0 %v4526_v13  ;;  %3292 = vmatpush.bf16.xpose.msra.mxu1 %v4530_v14  ;;  %v4550_v13 = vor.u32 %v5283_v8, %v4549_v6  ;;  %v4554_v14 = vor.u32 %v5233_v9, %v4551_v10  ;;  %v5235_v8 = vld [vmem:[#allocation5 + $0x42c] sm:$0xf]  ;;  %v4567_v9 = vld [vmem:[#allocation5 + $0x5b8] sm:$0xf0]  ;;  %v4558_v10 = vor.u32 %v5284_v0, %v4557_v63 }
 0x1ec   :  { %3305 = vmatpush.bf16.xpose.msra.mxu2 %v4534_v15  ;;  %3318 = vmatpush.bf16.xpose.msra.mxu3 %v4538_v16  ;;  %v437_v15 = vld [vmem:[#allocation5 + $0xa60] sm:$0x11]  ;;  %v4141_v16 = vld [vmem:[#allocation5 + $0xf0] sm:$0xf]  ;;  %v3050_v21 = vpop.f32.mrf.mxu2  ;;  %v3063_v22 = vpop.f32.mrf.mxu3 }
 0x1ed   :  { %v1698_v29 = vunpack.c.l.b16 %v437_v15  ;;  %v1699_v30 = vunpack.c.h.b16 %v437_v15  ;;  %v4159_v21 = vld [vmem:[#allocation5 + $0x290] sm:$0xf0]  ;;  %v4165_v22 = vld [vmem:[#allocation5 + $0x108] sm:$0xf] }
 0x1ef   :  { %v2099_v41 = vpack.c.b16 %v1699_v30, %v1699_v30 }
 0x1f3   :  { %3280 = vmatpush.bf16.xpose.msra.mxu0 %v4126_v33  ;;  %3293 = vmatpush.bf16.xpose.msra.mxu1 %v4130_v34  ;;  %v100_v33 = vld [vmem:[#allocation2 + $0x40] sm:$0xff]  ;;  %v1700_v34 = vunpack.c.l.b16 %v438_v20 }
 0x1f4   :  { %3306 = vmatpush.bf16.xpose.msra.mxu2 %v4134_v35  ;;  %3319 = vmatpush.bf16.xpose.msra.mxu3 %v4138_v36  ;;  %v1701_v35 = vunpack.c.h.b16 %v438_v20  ;;  %540 = vst [vmem:[#allocation1] ss:$9 sm:$0xff] %v100_v33  ;;  %v4142_v36 = vor.u32 %v5182_v17, %v4141_v16  ;;  %v4157_v17 = vld [vmem:[#allocation5 + $0x100] sm:$0xf]  ;;  %v5134_v20 = vld [vmem:[#allocation5 + $0x104] sm:$0xf] }
 0x1f6   :  { %v2101_v43 = vpack.c.b16 %v1701_v35, %v1701_v35 }
 0x1f7   :  { %v3087_v45 = vpop.f32.mrf.mxu1 }
 0x1fa   :  { %3281 = vmatmul.bf16.vlgmr.msra.gmra.mxu0 %v531_v42  ;;  %3294 = vmatmul.bf16.vlgmr.msra.gmra.mxu1 %v532_v44  ;;  %v2100_v42 = vpack.c.b16 %v1700_v34, %v1700_v34  ;;  %v3074_v44 = vpop.f32.mrf.mxu0 }
 0x1fb   :  { %3329 = vmatpush.bf16.xpose.msrb.mxu0 %v2094_v37  ;;  %3342 = vmatpush.bf16.xpose.msrb.mxu1 %v2095_v38  ;;  %v4146_v37 = vor.u32 %v5132_v18, %v4143_v19  ;;  %v4150_v38 = vor.u32 %v5183_v24, %v4149_v23  ;;  %v3075_v48 = vadd.f32 %v3074_v44, %v3062_v7  ;;  %v5285_v7 = vld [vmem:[#allocation5 + $0x5b4] sm:$0xf0]  ;;  %v5184_v18 = vld [vmem:[#allocation5 + $0x28c] sm:$0xf0]  ;;  %v5135_v24 = vld [vmem:[#allocation5 + $0x10c] sm:$0xf] }
 0x1fc   :  { %3355 = vmatpush.bf16.xpose.msrb.mxu2 %v2096_v39  ;;  %3368 = vmatpush.bf16.xpose.msrb.mxu3 %v2097_v40  ;;  %v4154_v39 = vor.u32 %v5133_v25, %v4151_v26  ;;  %v2098_v40 = vpack.c.b16 %v1698_v29, %v1698_v29  ;;  %v440_v19 = vld [vmem:[#allocation5 + $0xa78] sm:$0x11]  ;;  %v4158_v30 = vor.u32 %v5184_v18, %v4157_v17  ;;  %v442_v17 = vld [vmem:[#allocation5 + $0xa88] sm:$0x11] }
 0x1fd   :  { %3307 = vmatmul.bf16.vlgmr.msra.gmra.mxu2 %v533_v54  ;;  %3320 = vmatmul.bf16.vlgmr.msra.gmra.mxu3 %v534_v56  ;;  %v4967_v54 = vld [vmem:[#allocation5 + $0x8d8] sm:$0xf0]  ;;  %v3088_v55 = vadd.f32 %v3087_v45, %v3075_v48  ;;  %v4958_v56 = vor.u32 %v5384_v47, %v4957_v46  ;;  %v5185_v23 = vld [vmem:[#allocation5 + $0x294] sm:$0xf0]  ;;  %v1705_v29 = vunpack.c.h.b16 %v440_v19  ;;  %v5336_v45 = vld [vmem:[#allocation5 + $0x754] sm:$0xf] }
 0x1fe   :  { %v4167_v25 = vld [vmem:[#allocation5 + $0x298] sm:$0xf0]  ;;  %v4975_v46 = vld [vmem:[#allocation5 + $0x8e0] sm:$0xf0]  ;;  %v4981_v47 = vld [vmem:[#allocation5 + $0x758] sm:$0xf] }
 0x1ff   :  { %v3089_v2 = vpop.f32.mrf.mxu1  ;;  %v4170_v33 = vor.u32 %v5135_v24, %v4167_v25  ;;  %v5387_v48 = vld [vmem:[#allocation5 + $0x8e4] sm:$0xf0]  ;;  %v545_v24 = vld [vmem:[#allocation1 + $0x24] sm:$0xff] }
 0x200   :  { %v3113_v61 = vpop.f32.mrf.mxu3  ;;  %v4575_v2 = vld [vmem:[#allocation5 + $0x5c0] sm:$0xf0]  ;;  %v547_v25 = vld [vmem:[#allocation1 + $0x36] sm:$0xff] }
 0x202   :  { %v3076_v1 = vpop.f32.mrf.mxu0 }
 0x203   :  { %3330 = vmatpush.bf16.xpose.msrb.mxu0 %v4942_v57  ;;  %3343 = vmatpush.bf16.xpose.msrb.mxu1 %v4946_v58  ;;  %v4962_v57 = vor.u32 %v5334_v49, %v4959_v50  ;;  %v4966_v58 = vor.u32 %v5385_v52, %v4965_v51  ;;  %v5337_v49 = vld [vmem:[#allocation5 + $0x75c] sm:$0xf]  ;;  %v4983_v50 = vld [vmem:[#allocation5 + $0x8e8] sm:$0xf0]  ;;  %v5236_v1 = vld [vmem:[#allocation5 + $0x434] sm:$0xf] }
 0x204   :  { %3356 = vmatpush.bf16.xpose.msrb.mxu2 %v4950_v59  ;;  %3369 = vmatpush.bf16.xpose.msrb.mxu3 %v4954_v60  ;;  %v4970_v59 = vor.u32 %v5335_v53, %v4967_v54  ;;  %v3100_v60 = vpop.f32.mrf.mxu2  ;;  %v543_v51 = vld [vmem:[#allocation1 + $0x12] sm:$0xff]  ;;  %v544_v53 = vld [vmem:[#allocation1 + $0x1b] sm:$0xff] }
 0x205   :  { %v3101_v62 = vadd.f32 %v3100_v60, %v3088_v55  ;;  %v4978_v55 = vor.u32 %v5336_v45, %v4975_v46  ;;  %v5338_v46 = vld [vmem:[#allocation5 + $0x764] sm:$0xf] }
 0x207   :  { %v3114_v6 = vadd.f32 %v3113_v61, %v3101_v62  ;;  %v4573_v61 = vld [vmem:[#allocation5 + $0x430] sm:$0xf]  ;;  %v5286_v62 = vld [vmem:[#allocation5 + $0x5bc] sm:$0xf0] }
 0x208   :  { %v3115_v16 = vpop.f32.mrf.mxu3 }
 0x209   :  { %v4175_v16 = vld [vmem:[#allocation5 + $0x2a0] sm:$0xf0] }
 0x20b   :  { %3331 = vmatpush.bf16.xpose.msrb.mxu0 %v4542_v11  ;;  %3344 = vmatpush.bf16.xpose.msrb.mxu1 %v4546_v12  ;;  %v4562_v11 = vor.u32 %v5234_v3, %v4559_v4  ;;  %v4566_v12 = vor.u32 %v5285_v7, %v4565_v5  ;;  %v4581_v3 = vld [vmem:[#allocation5 + $0x438] sm:$0xf]  ;;  %v5287_v5 = vld [vmem:[#allocation5 + $0x5c4] sm:$0xf0]  ;;  %v4583_v7 = vld [vmem:[#allocation5 + $0x5c8] sm:$0xf0] }
 0x20c   :  { %3357 = vmatpush.bf16.xpose.msrb.mxu2 %v4550_v13  ;;  %3370 = vmatpush.bf16.xpose.msrb.mxu3 %v4554_v14  ;;  %v4570_v13 = vor.u32 %v5235_v8, %v4567_v9  ;;  %v439_v14 = vld [vmem:[#allocation5 + $0xa70] sm:$0x11]  ;;  %v3102_v15 = vpop.f32.mrf.mxu2  ;;  %v4574_v8 = vor.u32 %v5286_v62, %v4573_v61  ;;  %v4578_v9 = vor.u32 %v5236_v1, %v4575_v2  ;;  %v4597_v2 = vld [vmem:[#allocation5 + $0x448] sm:$0xf] }
 0x20d   :  { %v1702_v26 = vunpack.c.l.b16 %v439_v14  ;;  %v5136_v15 = vld [vmem:[#allocation5 + $0x114] sm:$0xf]  ;;  %v5288_v61 = vld [vmem:[#allocation5 + $0x5cc] sm:$0xf0] }
 0x20e   :  { %v4591_v1 = vld [vmem:[#allocation5 + $0x5d0] sm:$0xf0] }
 0x20f   :  { %v2102_v34 = vpack.c.b16 %v1702_v26, %v1702_v26 }
 0x213   :  { %3332 = vmatpush.bf16.xpose.msrb.mxu0 %v4142_v36  ;;  %3345 = vmatpush.bf16.xpose.msrb.mxu1 %v4146_v37  ;;  %v2105_v37 = vpack.c.b16 %v1705_v29, %v1705_v29  ;;  %v548_v29 = vld [vmem:[#allocation1 + $0x3f] sm:$0xff] }
 0x214   :  { %3358 = vmatpush.bf16.xpose.msrb.mxu2 %v4150_v38  ;;  %3371 = vmatpush.bf16.xpose.msrb.mxu3 %v4154_v39  ;;  %v541_v39 = vld [vmem:[#allocation1] sm:$0xff] }
 0x217   :  { %v3126_v38 = vpop.f32.mrf.mxu0 }
 0x218   :  { %v3127_v44 = vadd.f32 %v3126_v38, %v3114_v6  ;;  %v5237_v6 = vld [vmem:[#allocation5 + $0x43c] sm:$0xf] }
 0x21a   :  { %3333 = vmatmul.bf16.vlgmr.msrb.gmra.mxu0 %v535_v27  ;;  %3346 = vmatmul.bf16.vlgmr.msrb.gmra.mxu1 %v536_v31  ;;  %v1703_v27 = vunpack.c.h.b16 %v439_v14  ;;  %v4162_v31 = vor.u32 %v5134_v20, %v4159_v21  ;;  %v5186_v14 = vld [vmem:[#allocation5 + $0x29c] sm:$0xf0]  ;;  %v4181_v20 = vld [vmem:[#allocation5 + $0x118] sm:$0xf]  ;;  %v5187_v21 = vld [vmem:[#allocation5 + $0x2a4] sm:$0xf0] }
 0x21b   :  { %3381 = vmatpush.bf16.xpose.msra.mxu0 %v2098_v40  ;;  %3394 = vmatpush.bf16.xpose.msra.mxu1 %v2099_v41  ;;  %v3139_v40 = vpop.f32.mrf.mxu1  ;;  %v542_v41 = vld [vmem:[#allocation1 + $0x9] sm:$0xff] }
 0x21c   :  { %3407 = vmatpush.bf16.xpose.msra.mxu2 %v2100_v42  ;;  %3420 = vmatpush.bf16.xpose.msra.mxu3 %v2101_v43  ;;  %v2103_v35 = vpack.c.b16 %v1703_v27, %v1703_v27  ;;  %v4973_v42 = vld [vmem:[#allocation5 + $0x750] sm:$0xf]  ;;  %v5386_v43 = vld [vmem:[#allocation5 + $0x8dc] sm:$0xf0]  ;;  %v3140_v52 = vadd.f32 %v3139_v40, %v3127_v44 }
 0x21d   :  { %3359 = vmatmul.bf16.vlgmr.msrb.gmra.mxu2 %v537_v28  ;;  %3372 = vmatmul.bf16.vlgmr.msrb.gmra.mxu3 %v538_v32  ;;  %v1704_v28 = vunpack.c.l.b16 %v440_v19  ;;  %v4166_v32 = vor.u32 %v5185_v23, %v4165_v22  ;;  %v4974_v54 = vor.u32 %v5386_v43, %v4973_v42  ;;  %v5137_v22 = vld [vmem:[#allocation5 + $0x11c] sm:$0xf]  ;;  %v4183_v23 = vld [vmem:[#allocation5 + $0x2a8] sm:$0xf0]  ;;  %v4989_v43 = vld [vmem:[#allocation5 + $0x760] sm:$0xf] }
 0x21e   :  { %v5388_v44 = vld [vmem:[#allocation5 + $0x8ec] sm:$0xf0] }
 0x21f   :  { %v2104_v36 = vpack.c.b16 %v1704_v28, %v1704_v28  ;;  %v3128_v63 = vpop.f32.mrf.mxu0  ;;  %v546_v28 = vld [vmem:[#allocation1 + $0x2d] sm:$0xff] }
 0x223   :  { %3382 = vmatpush.bf16.xpose.msra.mxu0 %v4958_v56  ;;  %3395 = vmatpush.bf16.xpose.msra.mxu1 %v4962_v57  ;;  %v4982_v56 = vor.u32 %v5387_v48, %v4981_v47  ;;  %v4986_v57 = vor.u32 %v5337_v49, %v4983_v50  ;;  %v3141_v0 = vpop.f32.mrf.mxu1  ;;  %v4991_v47 = vld [vmem:[#allocation5 + $0x8f0] sm:$0xf0]  ;;  %v4997_v48 = vld [vmem:[#allocation5 + $0x768] sm:$0xf]  ;;  %v5389_v49 = vld [vmem:[#allocation5 + $0x8f4] sm:$0xf0] }
 0x224   :  { %3408 = vmatpush.bf16.xpose.msra.mxu2 %v4966_v58  ;;  %3421 = vmatpush.bf16.xpose.msra.mxu3 %v4970_v59  ;;  %v3152_v58 = vpop.f32.mrf.mxu2  ;;  %v3165_v59 = vpop.f32.mrf.mxu3  ;;  %v5339_v50 = vld [vmem:[#allocation5 + $0x76c] sm:$0xf]  ;;  %v5238_v0 = vld [vmem:[#allocation5 + $0x444] sm:$0xf] }
 0x225   :  { %v3153_v60 = vadd.f32 %v3152_v58, %v3140_v52 }
 0x227   :  { %v3166_v4 = vadd.f32 %v3165_v59, %v3153_v60  ;;  %v4589_v60 = vld [vmem:[#allocation5 + $0x440] sm:$0xf] }
 0x22b   :  { %3383 = vmatpush.bf16.xpose.msra.mxu0 %v4558_v10  ;;  %3396 = vmatpush.bf16.xpose.msra.mxu1 %v4562_v11  ;;  %v4582_v10 = vor.u32 %v5287_v5, %v4581_v3  ;;  %v4586_v11 = vor.u32 %v5237_v6, %v4583_v7  ;;  %v5239_v5 = vld [vmem:[#allocation5 + $0x44c] sm:$0xf]  ;;  %v4599_v6 = vld [vmem:[#allocation5 + $0x5d8] sm:$0xf0]  ;;  %v4590_v7 = vor.u32 %v5288_v61, %v4589_v60 }
 0x22c   :  { %3409 = vmatpush.bf16.xpose.msra.mxu2 %v4566_v12  ;;  %3422 = vmatpush.bf16.xpose.msra.mxu3 %v4570_v13  ;;  %v441_v12 = vld [vmem:[#allocation5 + $0xa80] sm:$0x11]  ;;  %v4173_v13 = vld [vmem:[#allocation5 + $0x110] sm:$0xf]  ;;  %v3154_v18 = vpop.f32.mrf.mxu2  ;;  %v3167_v19 = vpop.f32.mrf.mxu3 }
 0x22d   :  { %v1706_v26 = vunpack.c.l.b16 %v441_v12  ;;  %v1707_v27 = vunpack.c.h.b16 %v441_v12  ;;  %v4191_v18 = vld [vmem:[#allocation5 + $0x2b0] sm:$0xf0]  ;;  %v4197_v19 = vld [vmem:[#allocation5 + $0x128] sm:$0xf] }
 0x22f   :  { %v2107_v38 = vpack.c.b16 %v1707_v27, %v1707_v27 }
 0x233   :  { %3384 = vmatpush.bf16.xpose.msra.mxu0 %v4158_v30  ;;  %3397 = vmatpush.bf16.xpose.msra.mxu1 %v4162_v31  ;;  %v101_v30 = vld [vmem:[#allocation2 + $0x48] sm:$0xff]  ;;  %v1708_v31 = vunpack.c.l.b16 %v442_v17 }
 0x234   :  { %3410 = vmatpush.bf16.xpose.msra.mxu2 %v4166_v32  ;;  %3423 = vmatpush.bf16.xpose.msra.mxu3 %v4170_v33  ;;  %v1709_v32 = vunpack.c.h.b16 %v442_v17  ;;  %550 = vst [vmem:[#allocation1] ss:$9 sm:$0xff] %v101_v30  ;;  %v4174_v33 = vor.u32 %v5186_v14, %v4173_v13  ;;  %v4189_v14 = vld [vmem:[#allocation5 + $0x120] sm:$0xf]  ;;  %v5138_v17 = vld [vmem:[#allocation5 + $0x124] sm:$0xf] }
 0x236   :  { %v2109_v40 = vpack.c.b16 %v1709_v32, %v1709_v32 }
 0x237   :  { %v3191_v42 = vpop.f32.mrf.mxu1 }
 0x23a   :  { %3385 = vmatmul.bf16.vlgmr.msra.gmra.mxu0 %v541_v39  ;;  %3398 = vmatmul.bf16.vlgmr.msra.gmra.mxu1 %v542_v41  ;;  %v2108_v39 = vpack.c.b16 %v1708_v31, %v1708_v31  ;;  %v3178_v41 = vpop.f32.mrf.mxu0 }
 0x23b   :  { %3433 = vmatpush.bf16.xpose.msrb.mxu0 %v2102_v34  ;;  %3446 = vmatpush.bf16.xpose.msrb.mxu1 %v2103_v35  ;;  %v4178_v34 = vor.u32 %v5136_v15, %v4175_v16  ;;  %v4182_v35 = vor.u32 %v5187_v21, %v4181_v20  ;;  %v3179_v45 = vadd.f32 %v3178_v41, %v3166_v4  ;;  %v5289_v4 = vld [vmem:[#allocation5 + $0x5d4] sm:$0xf0]  ;;  %v5188_v15 = vld [vmem:[#allocation5 + $0x2ac] sm:$0xf0]  ;;  %v5139_v21 = vld [vmem:[#allocation5 + $0x12c] sm:$0xf] }
 0x23c   :  { %3459 = vmatpush.bf16.xpose.msrb.mxu2 %v2104_v36  ;;  %3472 = vmatpush.bf16.xpose.msrb.mxu3 %v2105_v37  ;;  %v4186_v36 = vor.u32 %v5137_v22, %v4183_v23  ;;  %v2106_v37 = vpack.c.b16 %v1706_v26, %v1706_v26  ;;  %v444_v16 = vld [vmem:[#allocation5 + $0xa98] sm:$0x11]  ;;  %v4190_v27 = vor.u32 %v5188_v15, %v4189_v14  ;;  %v446_v14 = vld [vmem:[#allocation5 + $0xaa8] sm:$0x11] }
 0x23d   :  { %3411 = vmatmul.bf16.vlgmr.msra.gmra.mxu2 %v543_v51  ;;  %3424 = vmatmul.bf16.vlgmr.msra.gmra.mxu3 %v544_v53  ;;  %v4999_v51 = vld [vmem:[#allocation5 + $0x8f8] sm:$0xf0]  ;;  %v3192_v52 = vadd.f32 %v3191_v42, %v3179_v45  ;;  %v4990_v53 = vor.u32 %v5388_v44, %v4989_v43  ;;  %v5189_v20 = vld [vmem:[#allocation5 + $0x2b4] sm:$0xf0]  ;;  %v1713_v26 = vunpack.c.h.b16 %v444_v16  ;;  %v5340_v42 = vld [vmem:[#allocation5 + $0x774] sm:$0xf] }
 0x23e   :  { %v4199_v22 = vld [vmem:[#allocation5 + $0x2b8] sm:$0xf0]  ;;  %v5007_v43 = vld [vmem:[#allocation5 + $0x900] sm:$0xf0]  ;;  %v5013_v44 = vld [vmem:[#allocation5 + $0x778] sm:$0xf] }
 0x23f   :  { %v3193_v63 = vpop.f32.mrf.mxu1  ;;  %v4202_v30 = vor.u32 %v5139_v21, %v4199_v22  ;;  %v5391_v45 = vld [vmem:[#allocation5 + $0x904] sm:$0xf0]  ;;  %v555_v21 = vld [vmem:[#allocation1 + $0x24] sm:$0xff] }
 0x240   :  { %v3217_v58 = vpop.f32.mrf.mxu3  ;;  %v4607_v63 = vld [vmem:[#allocation5 + $0x5e0] sm:$0xf0]  ;;  %v557_v22 = vld [vmem:[#allocation1 + $0x36] sm:$0xff] }
 0x242   :  { %v3180_v62 = vpop.f32.mrf.mxu0 }
 0x243   :  { %3434 = vmatpush.bf16.xpose.msrb.mxu0 %v4974_v54  ;;  %3447 = vmatpush.bf16.xpose.msrb.mxu1 %v4978_v55  ;;  %v4994_v54 = vor.u32 %v5338_v46, %v4991_v47  ;;  %v4998_v55 = vor.u32 %v5389_v49, %v4997_v48  ;;  %v5341_v46 = vld [vmem:[#allocation5 + $0x77c] sm:$0xf]  ;;  %v5015_v47 = vld [vmem:[#allocation5 + $0x908] sm:$0xf0]  ;;  %v5240_v62 = vld [vmem:[#allocation5 + $0x454] sm:$0xf] }
 0x244   :  { %3460 = vmatpush.bf16.xpose.msrb.mxu2 %v4982_v56  ;;  %3473 = vmatpush.bf16.xpose.msrb.mxu3 %v4986_v57  ;;  %v5002_v56 = vor.u32 %v5339_v50, %v4999_v51  ;;  %v3204_v57 = vpop.f32.mrf.mxu2  ;;  %v553_v48 = vld [vmem:[#allocation1 + $0x12] sm:$0xff]  ;;  %v554_v50 = vld [vmem:[#allocation1 + $0x1b] sm:$0xff] }
 0x245   :  { %v3205_v59 = vadd.f32 %v3204_v57, %v3192_v52  ;;  %v5010_v52 = vor.u32 %v5340_v42, %v5007_v43  ;;  %v5342_v43 = vld [vmem:[#allocation5 + $0x784] sm:$0xf] }
 0x247   :  { %v3218_v3 = vadd.f32 %v3217_v58, %v3205_v59  ;;  %v4605_v58 = vld [vmem:[#allocation5 + $0x450] sm:$0xf]  ;;  %v5290_v59 = vld [vmem:[#allocation5 + $0x5dc] sm:$0xf0] }
 0x248   :  { %v3219_v13 = vpop.f32.mrf.mxu3 }
 0x249   :  { %v4207_v13 = vld [vmem:[#allocation5 + $0x2c0] sm:$0xf0] }
 0x24b   :  { %3435 = vmatpush.bf16.xpose.msrb.mxu0 %v4574_v8  ;;  %3448 = vmatpush.bf16.xpose.msrb.mxu1 %v4578_v9  ;;  %v4594_v8 = vor.u32 %v5238_v0, %v4591_v1  ;;  %v4598_v9 = vor.u32 %v5289_v4, %v4597_v2  ;;  %v4613_v0 = vld [vmem:[#allocation5 + $0x458] sm:$0xf]  ;;  %v5291_v2 = vld [vmem:[#allocation5 + $0x5e4] sm:$0xf0]  ;;  %v4615_v4 = vld [vmem:[#allocation5 + $0x5e8] sm:$0xf0] }
 0x24c   :  { %3461 = vmatpush.bf16.xpose.msrb.mxu2 %v4582_v10  ;;  %3474 = vmatpush.bf16.xpose.msrb.mxu3 %v4586_v11  ;;  %v4602_v10 = vor.u32 %v5239_v5, %v4599_v6  ;;  %v443_v11 = vld [vmem:[#allocation5 + $0xa90] sm:$0x11]  ;;  %v3206_v12 = vpop.f32.mrf.mxu2  ;;  %v4606_v5 = vor.u32 %v5290_v59, %v4605_v58  ;;  %v4610_v6 = vor.u32 %v5240_v62, %v4607_v63  ;;  %v4629_v63 = vld [vmem:[#allocation5 + $0x468] sm:$0xf] }
 0x24d   :  { %v1710_v23 = vunpack.c.l.b16 %v443_v11  ;;  %v5140_v12 = vld [vmem:[#allocation5 + $0x134] sm:$0xf]  ;;  %v5292_v58 = vld [vmem:[#allocation5 + $0x5ec] sm:$0xf0] }
 0x24e   :  { %v4623_v62 = vld [vmem:[#allocation5 + $0x5f0] sm:$0xf0] }
 0x24f   :  { %v2110_v31 = vpack.c.b16 %v1710_v23, %v1710_v23 }
 0x253   :  { %3436 = vmatpush.bf16.xpose.msrb.mxu0 %v4174_v33  ;;  %3449 = vmatpush.bf16.xpose.msrb.mxu1 %v4178_v34  ;;  %v2113_v34 = vpack.c.b16 %v1713_v26, %v1713_v26  ;;  %v558_v26 = vld [vmem:[#allocation1 + $0x3f] sm:$0xff] }
 0x254   :  { %3462 = vmatpush.bf16.xpose.msrb.mxu2 %v4182_v35  ;;  %3475 = vmatpush.bf16.xpose.msrb.mxu3 %v4186_v36  ;;  %v551_v36 = vld [vmem:[#allocation1] sm:$0xff] }
 0x257   :  { %v3230_v35 = vpop.f32.mrf.mxu0 }
 0x258   :  { %v3231_v41 = vadd.f32 %v3230_v35, %v3218_v3  ;;  %v5241_v3 = vld [vmem:[#allocation5 + $0x45c] sm:$0xf] }
 0x25a   :  { %3437 = vmatmul.bf16.vlgmr.msrb.gmra.mxu0 %v545_v24  ;;  %3450 = vmatmul.bf16.vlgmr.msrb.gmra.mxu1 %v546_v28  ;;  %v1711_v24 = vunpack.c.h.b16 %v443_v11  ;;  %v4194_v28 = vor.u32 %v5138_v17, %v4191_v18  ;;  %v5190_v11 = vld [vmem:[#allocation5 + $0x2bc] sm:$0xf0]  ;;  %v4213_v17 = vld [vmem:[#allocation5 + $0x138] sm:$0xf]  ;;  %v5191_v18 = vld [vmem:[#allocation5 + $0x2c4] sm:$0xf0] }
 0x25b   :  { %3485 = vmatpush.bf16.xpose.msra.mxu0 %v2106_v37  ;;  %3498 = vmatpush.bf16.xpose.msra.mxu1 %v2107_v38  ;;  %v3243_v37 = vpop.f32.mrf.mxu1  ;;  %v552_v38 = vld [vmem:[#allocation1 + $0x9] sm:$0xff] }
 0x25c   :  { %3511 = vmatpush.bf16.xpose.msra.mxu2 %v2108_v39  ;;  %3524 = vmatpush.bf16.xpose.msra.mxu3 %v2109_v40  ;;  %v2111_v32 = vpack.c.b16 %v1711_v24, %v1711_v24  ;;  %v5005_v39 = vld [vmem:[#allocation5 + $0x770] sm:$0xf]  ;;  %v5390_v40 = vld [vmem:[#allocation5 + $0x8fc] sm:$0xf0]  ;;  %v3244_v49 = vadd.f32 %v3243_v37, %v3231_v41 }
 0x25d   :  { %3463 = vmatmul.bf16.vlgmr.msrb.gmra.mxu2 %v547_v25  ;;  %3476 = vmatmul.bf16.vlgmr.msrb.gmra.mxu3 %v548_v29  ;;  %v1712_v25 = vunpack.c.l.b16 %v444_v16  ;;  %v4198_v29 = vor.u32 %v5189_v20, %v4197_v19  ;;  %v5006_v51 = vor.u32 %v5390_v40, %v5005_v39  ;;  %v5141_v19 = vld [vmem:[#allocation5 + $0x13c] sm:$0xf]  ;;  %v4215_v20 = vld [vmem:[#allocation5 + $0x2c8] sm:$0xf0]  ;;  %v5021_v40 = vld [vmem:[#allocation5 + $0x780] sm:$0xf] }
 0x25e   :  { %v5392_v41 = vld [vmem:[#allocation5 + $0x90c] sm:$0xf0] }
 0x25f   :  { %v2112_v33 = vpack.c.b16 %v1712_v25, %v1712_v25  ;;  %v3232_v60 = vpop.f32.mrf.mxu0  ;;  %v556_v25 = vld [vmem:[#allocation1 + $0x2d] sm:$0xff] }
 0x263   :  { %3486 = vmatpush.bf16.xpose.msra.mxu0 %v4990_v53  ;;  %3499 = vmatpush.bf16.xpose.msra.mxu1 %v4994_v54  ;;  %v5014_v53 = vor.u32 %v5391_v45, %v5013_v44  ;;  %v5018_v54 = vor.u32 %v5341_v46, %v5015_v47  ;;  %v3245_v61 = vpop.f32.mrf.mxu1  ;;  %v5023_v44 = vld [vmem:[#allocation5 + $0x910] sm:$0xf0]  ;;  %v5029_v45 = vld [vmem:[#allocation5 + $0x788] sm:$0xf]  ;;  %v5393_v46 = vld [vmem:[#allocation5 + $0x914] sm:$0xf0] }
 0x264   :  { %3512 = vmatpush.bf16.xpose.msra.mxu2 %v4998_v55  ;;  %3525 = vmatpush.bf16.xpose.msra.mxu3 %v5002_v56  ;;  %v3256_v55 = vpop.f32.mrf.mxu2  ;;  %v3269_v56 = vpop.f32.mrf.mxu3  ;;  %v5343_v47 = vld [vmem:[#allocation5 + $0x78c] sm:$0xf]  ;;  %v5242_v61 = vld [vmem:[#allocation5 + $0x464] sm:$0xf] }
 0x265   :  { %v3257_v57 = vadd.f32 %v3256_v55, %v3244_v49 }
 0x267   :  { %v3270_v1 = vadd.f32 %v3269_v56, %v3257_v57  ;;  %v4621_v57 = vld [vmem:[#allocation5 + $0x460] sm:$0xf] }
 0x26b   :  { %3487 = vmatpush.bf16.xpose.msra.mxu0 %v4590_v7  ;;  %3500 = vmatpush.bf16.xpose.msra.mxu1 %v4594_v8  ;;  %v4614_v7 = vor.u32 %v5291_v2, %v4613_v0  ;;  %v4618_v8 = vor.u32 %v5241_v3, %v4615_v4  ;;  %v5243_v2 = vld [vmem:[#allocation5 + $0x46c] sm:$0xf]  ;;  %v4631_v3 = vld [vmem:[#allocation5 + $0x5f8] sm:$0xf0]  ;;  %v4622_v4 = vor.u32 %v5292_v58, %v4621_v57 }
 0x26c   :  { %3513 = vmatpush.bf16.xpose.msra.mxu2 %v4598_v9  ;;  %3526 = vmatpush.bf16.xpose.msra.mxu3 %v4602_v10  ;;  %v445_v9 = vld [vmem:[#allocation5 + $0xaa0] sm:$0x11]  ;;  %v4205_v10 = vld [vmem:[#allocation5 + $0x130] sm:$0xf]  ;;  %v3258_v15 = vpop.f32.mrf.mxu2  ;;  %v3271_v16 = vpop.f32.mrf.mxu3 }
 0x26d   :  { %v1714_v23 = vunpack.c.l.b16 %v445_v9  ;;  %v1715_v24 = vunpack.c.h.b16 %v445_v9  ;;  %v4223_v15 = vld [vmem:[#allocation5 + $0x2d0] sm:$0xf0]  ;;  %v4229_v16 = vld [vmem:[#allocation5 + $0x148] sm:$0xf] }
 0x26f   :  { %v2115_v35 = vpack.c.b16 %v1715_v24, %v1715_v24 }
 0x273   :  { %3488 = vmatpush.bf16.xpose.msra.mxu0 %v4190_v27  ;;  %3501 = vmatpush.bf16.xpose.msra.mxu1 %v4194_v28  ;;  %v102_v27 = vld [vmem:[#allocation2 + $0x50] sm:$0xff]  ;;  %v1716_v28 = vunpack.c.l.b16 %v446_v14 }
 0x274   :  { %3514 = vmatpush.bf16.xpose.msra.mxu2 %v4198_v29  ;;  %3527 = vmatpush.bf16.xpose.msra.mxu3 %v4202_v30  ;;  %v1717_v29 = vunpack.c.h.b16 %v446_v14  ;;  %560 = vst [vmem:[#allocation1] ss:$9 sm:$0xff] %v102_v27  ;;  %v4206_v30 = vor.u32 %v5190_v11, %v4205_v10  ;;  %v4221_v11 = vld [vmem:[#allocation5 + $0x140] sm:$0xf]  ;;  %v5142_v14 = vld [vmem:[#allocation5 + $0x144] sm:$0xf] }
 0x276   :  { %v2117_v37 = vpack.c.b16 %v1717_v29, %v1717_v29 }
 0x277   :  { %v3295_v39 = vpop.f32.mrf.mxu1 }
 0x27a   :  { %3489 = vmatmul.bf16.vlgmr.msra.gmra.mxu0 %v551_v36  ;;  %3502 = vmatmul.bf16.vlgmr.msra.gmra.mxu1 %v552_v38  ;;  %v2116_v36 = vpack.c.b16 %v1716_v28, %v1716_v28  ;;  %v3282_v38 = vpop.f32.mrf.mxu0 }
 0x27b   :  { %3537 = vmatpush.bf16.xpose.msrb.mxu0 %v2110_v31  ;;  %3550 = vmatpush.bf16.xpose.msrb.mxu1 %v2111_v32  ;;  %v4210_v31 = vor.u32 %v5140_v12, %v4207_v13  ;;  %v4214_v32 = vor.u32 %v5191_v18, %v4213_v17  ;;  %v3283_v42 = vadd.f32 %v3282_v38, %v3270_v1  ;;  %v5293_v1 = vld [vmem:[#allocation5 + $0x5f4] sm:$0xf0]  ;;  %v5192_v12 = vld [vmem:[#allocation5 + $0x2cc] sm:$0xf0]  ;;  %v5143_v18 = vld [vmem:[#allocation5 + $0x14c] sm:$0xf] }
 0x27c   :  { %3563 = vmatpush.bf16.xpose.msrb.mxu2 %v2112_v33  ;;  %3576 = vmatpush.bf16.xpose.msrb.mxu3 %v2113_v34  ;;  %v4218_v33 = vor.u32 %v5141_v19, %v4215_v20  ;;  %v2114_v34 = vpack.c.b16 %v1714_v23, %v1714_v23  ;;  %v448_v13 = vld [vmem:[#allocation5 + $0xab8] sm:$0x11]  ;;  %v4222_v24 = vor.u32 %v5192_v12, %v4221_v11  ;;  %v450_v11 = vld [vmem:[#allocation5 + $0xac8] sm:$0x11] }
 0x27d   :  { %3515 = vmatmul.bf16.vlgmr.msra.gmra.mxu2 %v553_v48  ;;  %3528 = vmatmul.bf16.vlgmr.msra.gmra.mxu3 %v554_v50  ;;  %v5031_v48 = vld [vmem:[#allocation5 + $0x918] sm:$0xf0]  ;;  %v3296_v49 = vadd.f32 %v3295_v39, %v3283_v42  ;;  %v5022_v50 = vor.u32 %v5392_v41, %v5021_v40  ;;  %v5193_v17 = vld [vmem:[#allocation5 + $0x2d4] sm:$0xf0]  ;;  %v1721_v23 = vunpack.c.h.b16 %v448_v13  ;;  %v5344_v39 = vld [vmem:[#allocation5 + $0x794] sm:$0xf] }
 0x27e   :  { %v4231_v19 = vld [vmem:[#allocation5 + $0x2d8] sm:$0xf0]  ;;  %v5039_v40 = vld [vmem:[#allocation5 + $0x920] sm:$0xf0]  ;;  %v5045_v41 = vld [vmem:[#allocation5 + $0x798] sm:$0xf] }
 0x27f   :  { %v3297_v60 = vpop.f32.mrf.mxu1  ;;  %v4234_v27 = vor.u32 %v5143_v18, %v4231_v19  ;;  %v5395_v42 = vld [vmem:[#allocation5 + $0x924] sm:$0xf0]  ;;  %v565_v18 = vld [vmem:[#allocation1 + $0x24] sm:$0xff] }
 0x280   :  { %v3321_v55 = vpop.f32.mrf.mxu3  ;;  %v4639_v60 = vld [vmem:[#allocation5 + $0x600] sm:$0xf0]  ;;  %v567_v19 = vld [vmem:[#allocation1 + $0x36] sm:$0xff] }
 0x282   :  { %v3284_v59 = vpop.f32.mrf.mxu0 }
 0x283   :  { %3538 = vmatpush.bf16.xpose.msrb.mxu0 %v5006_v51  ;;  %3551 = vmatpush.bf16.xpose.msrb.mxu1 %v5010_v52  ;;  %v5026_v51 = vor.u32 %v5342_v43, %v5023_v44  ;;  %v5030_v52 = vor.u32 %v5393_v46, %v5029_v45  ;;  %v5345_v43 = vld [vmem:[#allocation5 + $0x79c] sm:$0xf]  ;;  %v5047_v44 = vld [vmem:[#allocation5 + $0x928] sm:$0xf0]  ;;  %v5244_v59 = vld [vmem:[#allocation5 + $0x474] sm:$0xf] }
 0x284   :  { %3564 = vmatpush.bf16.xpose.msrb.mxu2 %v5014_v53  ;;  %3577 = vmatpush.bf16.xpose.msrb.mxu3 %v5018_v54  ;;  %v5034_v53 = vor.u32 %v5343_v47, %v5031_v48  ;;  %v3308_v54 = vpop.f32.mrf.mxu2  ;;  %v563_v45 = vld [vmem:[#allocation1 + $0x12] sm:$0xff]  ;;  %v564_v47 = vld [vmem:[#allocation1 + $0x1b] sm:$0xff] }
 0x285   :  { %v3309_v56 = vadd.f32 %v3308_v54, %v3296_v49  ;;  %v5042_v49 = vor.u32 %v5344_v39, %v5039_v40  ;;  %v5346_v40 = vld [vmem:[#allocation5 + $0x7a4] sm:$0xf] }
 0x287   :  { %v3322_v0 = vadd.f32 %v3321_v55, %v3309_v56  ;;  %v4637_v55 = vld [vmem:[#allocation5 + $0x470] sm:$0xf]  ;;  %v5294_v56 = vld [vmem:[#allocation5 + $0x5fc] sm:$0xf0] }
 0x288   :  { %v3323_v10 = vpop.f32.mrf.mxu3 }
 0x289   :  { %v4239_v10 = vld [vmem:[#allocation5 + $0x2e0] sm:$0xf0] }
 0x28b   :  { %3539 = vmatpush.bf16.xpose.msrb.mxu0 %v4606_v5  ;;  %3552 = vmatpush.bf16.xpose.msrb.mxu1 %v4610_v6  ;;  %v4626_v5 = vor.u32 %v5242_v61, %v4623_v62  ;;  %v4630_v6 = vor.u32 %v5293_v1, %v4629_v63  ;;  %v4645_v61 = vld [vmem:[#allocation5 + $0x478] sm:$0xf]  ;;  %v5295_v63 = vld [vmem:[#allocation5 + $0x604] sm:$0xf0]  ;;  %v4647_v1 = vld [vmem:[#allocation5 + $0x608] sm:$0xf0] }
 0x28c   :  { %3565 = vmatpush.bf16.xpose.msrb.mxu2 %v4614_v7  ;;  %3578 = vmatpush.bf16.xpose.msrb.mxu3 %v4618_v8  ;;  %v4634_v7 = vor.u32 %v5243_v2, %v4631_v3  ;;  %v447_v8 = vld [vmem:[#allocation5 + $0xab0] sm:$0x11]  ;;  %v3310_v9 = vpop.f32.mrf.mxu2  ;;  %v4638_v2 = vor.u32 %v5294_v56, %v4637_v55  ;;  %v4642_v3 = vor.u32 %v5244_v59, %v4639_v60  ;;  %v4661_v60 = vld [vmem:[#allocation5 + $0x488] sm:$0xf] }
 0x28d   :  { %v1718_v20 = vunpack.c.l.b16 %v447_v8  ;;  %v5144_v9 = vld [vmem:[#allocation5 + $0x154] sm:$0xf]  ;;  %v5296_v55 = vld [vmem:[#allocation5 + $0x60c] sm:$0xf0] }
 0x28e   :  { %v4655_v59 = vld [vmem:[#allocation5 + $0x610] sm:$0xf0] }
 0x28f   :  { %v2118_v28 = vpack.c.b16 %v1718_v20, %v1718_v20 }
 0x293   :  { %3540 = vmatpush.bf16.xpose.msrb.mxu0 %v4206_v30  ;;  %3553 = vmatpush.bf16.xpose.msrb.mxu1 %v4210_v31  ;;  %v2121_v31 = vpack.c.b16 %v1721_v23, %v1721_v23  ;;  %v568_v23 = vld [vmem:[#allocation1 + $0x3f] sm:$0xff] }
 0x294   :  { %3566 = vmatpush.bf16.xpose.msrb.mxu2 %v4214_v32  ;;  %3579 = vmatpush.bf16.xpose.msrb.mxu3 %v4218_v33  ;;  %v561_v33 = vld [vmem:[#allocation1] sm:$0xff] }
 0x297   :  { %v3334_v32 = vpop.f32.mrf.mxu0 }
 0x298   :  { %v3335_v38 = vadd.f32 %v3334_v32, %v3322_v0  ;;  %v5245_v0 = vld [vmem:[#allocation5 + $0x47c] sm:$0xf] }
 0x29a   :  { %3541 = vmatmul.bf16.vlgmr.msrb.gmra.mxu0 %v555_v21  ;;  %3554 = vmatmul.bf16.vlgmr.msrb.gmra.mxu1 %v556_v25  ;;  %v1719_v21 = vunpack.c.h.b16 %v447_v8  ;;  %v4226_v25 = vor.u32 %v5142_v14, %v4223_v15  ;;  %v5194_v8 = vld [vmem:[#allocation5 + $0x2dc] sm:$0xf0]  ;;  %v4245_v14 = vld [vmem:[#allocation5 + $0x158] sm:$0xf]  ;;  %v5195_v15 = vld [vmem:[#allocation5 + $0x2e4] sm:$0xf0] }
 0x29b   :  { %3589 = vmatpush.bf16.xpose.msra.mxu0 %v2114_v34  ;;  %3602 = vmatpush.bf16.xpose.msra.mxu1 %v2115_v35  ;;  %v3347_v34 = vpop.f32.mrf.mxu1  ;;  %v562_v35 = vld [vmem:[#allocation1 + $0x9] sm:$0xff] }
 0x29c   :  { %3615 = vmatpush.bf16.xpose.msra.mxu2 %v2116_v36  ;;  %3628 = vmatpush.bf16.xpose.msra.mxu3 %v2117_v37  ;;  %v2119_v29 = vpack.c.b16 %v1719_v21, %v1719_v21  ;;  %v5037_v36 = vld [vmem:[#allocation5 + $0x790] sm:$0xf]  ;;  %v5394_v37 = vld [vmem:[#allocation5 + $0x91c] sm:$0xf0]  ;;  %v3348_v46 = vadd.f32 %v3347_v34, %v3335_v38 }
 0x29d   :  { %3567 = vmatmul.bf16.vlgmr.msrb.gmra.mxu2 %v557_v22  ;;  %3580 = vmatmul.bf16.vlgmr.msrb.gmra.mxu3 %v558_v26  ;;  %v1720_v22 = vunpack.c.l.b16 %v448_v13  ;;  %v4230_v26 = vor.u32 %v5193_v17, %v4229_v16  ;;  %v5038_v48 = vor.u32 %v5394_v37, %v5037_v36  ;;  %v5145_v16 = vld [vmem:[#allocation5 + $0x15c] sm:$0xf]  ;;  %v4247_v17 = vld [vmem:[#allocation5 + $0x2e8] sm:$0xf0]  ;;  %v5053_v37 = vld [vmem:[#allocation5 + $0x7a0] sm:$0xf] }
 0x29e   :  { %v5396_v38 = vld [vmem:[#allocation5 + $0x92c] sm:$0xf0] }
 0x29f   :  { %v2120_v30 = vpack.c.b16 %v1720_v22, %v1720_v22  ;;  %v3336_v57 = vpop.f32.mrf.mxu0  ;;  %v566_v22 = vld [vmem:[#allocation1 + $0x2d] sm:$0xff] }
 0x2a3   :  { %3590 = vmatpush.bf16.xpose.msra.mxu0 %v5022_v50  ;;  %3603 = vmatpush.bf16.xpose.msra.mxu1 %v5026_v51  ;;  %v5046_v50 = vor.u32 %v5395_v42, %v5045_v41  ;;  %v5050_v51 = vor.u32 %v5345_v43, %v5047_v44  ;;  %v3349_v58 = vpop.f32.mrf.mxu1  ;;  %v5055_v41 = vld [vmem:[#allocation5 + $0x930] sm:$0xf0]  ;;  %v5061_v42 = vld [vmem:[#allocation5 + $0x7a8] sm:$0xf]  ;;  %v5397_v43 = vld [vmem:[#allocation5 + $0x934] sm:$0xf0] }
 0x2a4   :  { %3616 = vmatpush.bf16.xpose.msra.mxu2 %v5030_v52  ;;  %3629 = vmatpush.bf16.xpose.msra.mxu3 %v5034_v53  ;;  %v3360_v52 = vpop.f32.mrf.mxu2  ;;  %v3373_v53 = vpop.f32.mrf.mxu3  ;;  %v5347_v44 = vld [vmem:[#allocation5 + $0x7ac] sm:$0xf]  ;;  %v5246_v58 = vld [vmem:[#allocation5 + $0x484] sm:$0xf] }
 0x2a5   :  { %v3361_v54 = vadd.f32 %v3360_v52, %v3348_v46 }
 0x2a7   :  { %v3374_v62 = vadd.f32 %v3373_v53, %v3361_v54  ;;  %v4653_v54 = vld [vmem:[#allocation5 + $0x480] sm:$0xf] }
 0x2ab   :  { %3591 = vmatpush.bf16.xpose.msra.mxu0 %v4622_v4  ;;  %3604 = vmatpush.bf16.xpose.msra.mxu1 %v4626_v5  ;;  %v4646_v4 = vor.u32 %v5295_v63, %v4645_v61  ;;  %v4650_v5 = vor.u32 %v5245_v0, %v4647_v1  ;;  %v5247_v63 = vld [vmem:[#allocation5 + $0x48c] sm:$0xf]  ;;  %v4663_v0 = vld [vmem:[#allocation5 + $0x618] sm:$0xf0]  ;;  %v4654_v1 = vor.u32 %v5296_v55, %v4653_v54 }
 0x2ac   :  { %3617 = vmatpush.bf16.xpose.msra.mxu2 %v4630_v6  ;;  %3630 = vmatpush.bf16.xpose.msra.mxu3 %v4634_v7  ;;  %v449_v6 = vld [vmem:[#allocation5 + $0xac0] sm:$0x11]  ;;  %v4237_v7 = vld [vmem:[#allocation5 + $0x150] sm:$0xf]  ;;  %v3362_v12 = vpop.f32.mrf.mxu2  ;;  %v3375_v13 = vpop.f32.mrf.mxu3 }
 0x2ad   :  { %v1722_v20 = vunpack.c.l.b16 %v449_v6  ;;  %v1723_v21 = vunpack.c.h.b16 %v449_v6  ;;  %v4255_v12 = vld [vmem:[#allocation5 + $0x2f0] sm:$0xf0]  ;;  %v4261_v13 = vld [vmem:[#allocation5 + $0x168] sm:$0xf] }
 0x2af   :  { %v2123_v32 = vpack.c.b16 %v1723_v21, %v1723_v21 }
 0x2b3   :  { %3592 = vmatpush.bf16.xpose.msra.mxu0 %v4222_v24  ;;  %3605 = vmatpush.bf16.xpose.msra.mxu1 %v4226_v25  ;;  %v103_v24 = vld [vmem:[#allocation2 + $0x58] sm:$0xff]  ;;  %v1724_v25 = vunpack.c.l.b16 %v450_v11 }
 0x2b4   :  { %3618 = vmatpush.bf16.xpose.msra.mxu2 %v4230_v26  ;;  %3631 = vmatpush.bf16.xpose.msra.mxu3 %v4234_v27  ;;  %v1725_v26 = vunpack.c.h.b16 %v450_v11  ;;  %570 = vst [vmem:[#allocation1] ss:$9 sm:$0xff] %v103_v24  ;;  %v4238_v27 = vor.u32 %v5194_v8, %v4237_v7  ;;  %v4253_v8 = vld [vmem:[#allocation5 + $0x160] sm:$0xf]  ;;  %v5146_v11 = vld [vmem:[#allocation5 + $0x164] sm:$0xf] }
 0x2b6   :  { %v2125_v34 = vpack.c.b16 %v1725_v26, %v1725_v26 }
 0x2b7   :  { %v3399_v36 = vpop.f32.mrf.mxu1 }
 0x2ba   :  { %3593 = vmatmul.bf16.vlgmr.msra.gmra.mxu0 %v561_v33  ;;  %3606 = vmatmul.bf16.vlgmr.msra.gmra.mxu1 %v562_v35  ;;  %v2124_v33 = vpack.c.b16 %v1724_v25, %v1724_v25  ;;  %v3386_v35 = vpop.f32.mrf.mxu0 }
 0x2bb   :  { %3641 = vmatpush.bf16.xpose.msrb.mxu0 %v2118_v28  ;;  %3654 = vmatpush.bf16.xpose.msrb.mxu1 %v2119_v29  ;;  %v4242_v28 = vor.u32 %v5144_v9, %v4239_v10  ;;  %v4246_v29 = vor.u32 %v5195_v15, %v4245_v14  ;;  %v3387_v39 = vadd.f32 %v3386_v35, %v3374_v62  ;;  %v5297_v62 = vld [vmem:[#allocation5 + $0x614] sm:$0xf0]  ;;  %v5196_v9 = vld [vmem:[#allocation5 + $0x2ec] sm:$0xf0]  ;;  %v5147_v15 = vld [vmem:[#allocation5 + $0x16c] sm:$0xf] }
 0x2bc   :  { %3667 = vmatpush.bf16.xpose.msrb.mxu2 %v2120_v30  ;;  %3680 = vmatpush.bf16.xpose.msrb.mxu3 %v2121_v31  ;;  %v4250_v30 = vor.u32 %v5145_v16, %v4247_v17  ;;  %v2122_v31 = vpack.c.b16 %v1722_v20, %v1722_v20  ;;  %v452_v10 = vld [vmem:[#allocation5 + $0xad8] sm:$0x11]  ;;  %v4254_v21 = vor.u32 %v5196_v9, %v4253_v8  ;;  %v453_v8 = vld [vmem:[#allocation5 + $0xae0] sm:$0x11] }
 0x2bd   :  { %3619 = vmatmul.bf16.vlgmr.msra.gmra.mxu2 %v563_v45  ;;  %3632 = vmatmul.bf16.vlgmr.msra.gmra.mxu3 %v564_v47  ;;  %v5063_v45 = vld [vmem:[#allocation5 + $0x938] sm:$0xf0]  ;;  %v3400_v46 = vadd.f32 %v3399_v36, %v3387_v39  ;;  %v5054_v47 = vor.u32 %v5396_v38, %v5053_v37  ;;  %v5197_v14 = vld [vmem:[#allocation5 + $0x2f4] sm:$0xf0]  ;;  %v1729_v20 = vunpack.c.h.b16 %v452_v10  ;;  %v5348_v36 = vld [vmem:[#allocation5 + $0x7b4] sm:$0xf] }
 0x2be   :  { %v4263_v16 = vld [vmem:[#allocation5 + $0x2f8] sm:$0xf0]  ;;  %v5071_v37 = vld [vmem:[#allocation5 + $0x940] sm:$0xf0]  ;;  %v5077_v38 = vld [vmem:[#allocation5 + $0x7b8] sm:$0xf] }
 0x2bf   :  { %v3401_v57 = vpop.f32.mrf.mxu1  ;;  %v4266_v24 = vor.u32 %v5147_v15, %v4263_v16  ;;  %v5399_v39 = vld [vmem:[#allocation5 + $0x944] sm:$0xf0] }
 0x2c0   :  { %v3425_v52 = vpop.f32.mrf.mxu3  ;;  %v4671_v57 = vld [vmem:[#allocation5 + $0x620] sm:$0xf0]  ;;  %v577_v15 = vld [vmem:[#allocation1 + $0x36] sm:$0xff] }
 0x2c1   :  { %v576_v16 = vld [vmem:[#allocation1 + $0x2d] sm:$0xff] }
 0x2c2   :  { %v3388_v56 = vpop.f32.mrf.mxu0 }
 0x2c3   :  { %3642 = vmatpush.bf16.xpose.msrb.mxu0 %v5038_v48  ;;  %3655 = vmatpush.bf16.xpose.msrb.mxu1 %v5042_v49  ;;  %v5058_v48 = vor.u32 %v5346_v40, %v5055_v41  ;;  %v5062_v49 = vor.u32 %v5397_v43, %v5061_v42  ;;  %v5349_v40 = vld [vmem:[#allocation5 + $0x7bc] sm:$0xf]  ;;  %v5079_v41 = vld [vmem:[#allocation5 + $0x948] sm:$0xf0]  ;;  %v5248_v56 = vld [vmem:[#allocation5 + $0x494] sm:$0xf] }
 0x2c4   :  { %3668 = vmatpush.bf16.xpose.msrb.mxu2 %v5046_v50  ;;  %3681 = vmatpush.bf16.xpose.msrb.mxu3 %v5050_v51  ;;  %v5066_v50 = vor.u32 %v5347_v44, %v5063_v45  ;;  %v3412_v51 = vpop.f32.mrf.mxu2  ;;  %v573_v42 = vld [vmem:[#allocation1 + $0x12] sm:$0xff]  ;;  %v574_v44 = vld [vmem:[#allocation1 + $0x1b] sm:$0xff] }
 0x2c5   :  { %v3413_v53 = vadd.f32 %v3412_v51, %v3400_v46  ;;  %v5074_v46 = vor.u32 %v5348_v36, %v5071_v37  ;;  %v5085_v37 = vld [vmem:[#allocation5 + $0x7c0] sm:$0xf] }
 0x2c7   :  { %v3426_v61 = vadd.f32 %v3425_v52, %v3413_v53  ;;  %v4669_v52 = vld [vmem:[#allocation5 + $0x490] sm:$0xf]  ;;  %v5298_v53 = vld [vmem:[#allocation5 + $0x61c] sm:$0xf0] }
 0x2c8   :  { %v3427_v7 = vpop.f32.mrf.mxu3 }
 0x2c9   :  { %v4271_v7 = vld [vmem:[#allocation5 + $0x300] sm:$0xf0] }
 0x2cb   :  { %3643 = vmatpush.bf16.xpose.msrb.mxu0 %v4638_v2  ;;  %3656 = vmatpush.bf16.xpose.msrb.mxu1 %v4642_v3  ;;  %v4658_v2 = vor.u32 %v5246_v58, %v4655_v59  ;;  %v4662_v3 = vor.u32 %v5297_v62, %v4661_v60  ;;  %v4677_v58 = vld [vmem:[#allocation5 + $0x498] sm:$0xf]  ;;  %v5299_v60 = vld [vmem:[#allocation5 + $0x624] sm:$0xf0]  ;;  %v4679_v62 = vld [vmem:[#allocation5 + $0x628] sm:$0xf0] }
 0x2cc   :  { %3669 = vmatpush.bf16.xpose.msrb.mxu2 %v4646_v4  ;;  %3682 = vmatpush.bf16.xpose.msrb.mxu3 %v4650_v5  ;;  %v4666_v4 = vor.u32 %v5247_v63, %v4663_v0  ;;  %v451_v5 = vld [vmem:[#allocation5 + $0xad0] sm:$0x11]  ;;  %v3414_v6 = vpop.f32.mrf.mxu2  ;;  %v4670_v63 = vor.u32 %v5298_v53, %v4669_v52  ;;  %v4674_v0 = vor.u32 %v5248_v56, %v4671_v57  ;;  %v5251_v52 = vld [vmem:[#allocation5 + $0x4ac] sm:$0xf]  ;;  %v4695_v53 = vld [vmem:[#allocation5 + $0x638] sm:$0xf0] }
 0x2cd   :  { %v1726_v17 = vunpack.c.l.b16 %v451_v5  ;;  %v5148_v6 = vld [vmem:[#allocation5 + $0x174] sm:$0xf] }
 0x2cf   :  { %v2126_v25 = vpack.c.b16 %v1726_v17, %v1726_v17  ;;  %v578_v17 = vld [vmem:[#allocation1 + $0x3f] sm:$0xff] }
 0x2d3   :  { %3644 = vmatpush.bf16.xpose.msrb.mxu0 %v4238_v27  ;;  %3657 = vmatpush.bf16.xpose.msrb.mxu1 %v4242_v28  ;;  %v2129_v28 = vpack.c.b16 %v1729_v20, %v1729_v20  ;;  %v4279_v20 = vld [vmem:[#allocation5 + $0x308] sm:$0xf0] }
 0x2d4   :  { %3670 = vmatpush.bf16.xpose.msrb.mxu2 %v4246_v29  ;;  %3683 = vmatpush.bf16.xpose.msrb.mxu3 %v4250_v30  ;;  %v571_v30 = vld [vmem:[#allocation1] sm:$0xff] }
 0x2d7   :  { %v3438_v29 = vpop.f32.mrf.mxu0 }
 0x2d8   :  { %v3439_v35 = vadd.f32 %v3438_v29, %v3426_v61  ;;  %v5249_v61 = vld [vmem:[#allocation5 + $0x49c] sm:$0xf] }
 0x2da   :  { %3645 = vmatmul.bf16.vlgmr.msrb.gmra.mxu0 %v565_v18  ;;  %3658 = vmatmul.bf16.vlgmr.msrb.gmra.mxu1 %v566_v22  ;;  %v1727_v18 = vunpack.c.h.b16 %v451_v5  ;;  %v4258_v22 = vor.u32 %v5146_v11, %v4255_v12  ;;  %v5198_v5 = vld [vmem:[#allocation5 + $0x2fc] sm:$0xf0]  ;;  %v4277_v11 = vld [vmem:[#allocation5 + $0x178] sm:$0xf]  ;;  %v5199_v12 = vld [vmem:[#allocation5 + $0x304] sm:$0xf0] }
 0x2db   :  { %3693 = vmatpush.bf16.xpose.msra.mxu0 %v2122_v31  ;;  %3706 = vmatpush.bf16.xpose.msra.mxu1 %v2123_v32  ;;  %v3451_v31 = vpop.f32.mrf.mxu1  ;;  %v572_v32 = vld [vmem:[#allocation1 + $0x9] sm:$0xff] }
 0x2dc   :  { %3719 = vmatpush.bf16.xpose.msra.mxu2 %v2124_v33  ;;  %3732 = vmatpush.bf16.xpose.msra.mxu3 %v2125_v34  ;;  %v2127_v26 = vpack.c.b16 %v1727_v18, %v1727_v18  ;;  %v5069_v33 = vld [vmem:[#allocation5 + $0x7b0] sm:$0xf]  ;;  %v5398_v34 = vld [vmem:[#allocation5 + $0x93c] sm:$0xf0]  ;;  %v3452_v43 = vadd.f32 %v3451_v31, %v3439_v35  ;;  %v104_v18 = vld [vmem:[#allocation2 + $0x60] sm:$0xf] }
 0x2dd   :  { %3671 = vmatmul.bf16.vlgmr.msrb.gmra.mxu2 %v567_v19  ;;  %3684 = vmatmul.bf16.vlgmr.msrb.gmra.mxu3 %v568_v23  ;;  %v1728_v19 = vunpack.c.l.b16 %v452_v10  ;;  %v4262_v23 = vor.u32 %v5197_v14, %v4261_v13  ;;  %v5070_v45 = vor.u32 %v5398_v34, %v5069_v33  ;;  %v575_v14 = vld [vmem:[#allocation1 + $0x24] sm:$0xff]  ;;  %v5351_v33 = vld [vmem:[#allocation5 + $0x7cc] sm:$0xf] }
 0x2de   :  { %580 = vst [vmem:[#allocation1] ss:$9 sm:$0xff] %v104_v18  ;;  %v5095_v34 = vld [vmem:[#allocation5 + $0x958] sm:$0xf0] }
 0x2df   :  { %v2128_v27 = vpack.c.b16 %v1728_v19, %v1728_v19  ;;  %v3440_v54 = vpop.f32.mrf.mxu0  ;;  %v5149_v19 = vld [vmem:[#allocation5 + $0x17c] sm:$0xf] }
 0x2e3   :  { %3694 = vmatpush.bf16.xpose.msra.mxu0 %v5054_v47  ;;  %3707 = vmatpush.bf16.xpose.msra.mxu1 %v5058_v48  ;;  %v5078_v47 = vor.u32 %v5399_v39, %v5077_v38  ;;  %v5082_v48 = vor.u32 %v5349_v40, %v5079_v41  ;;  %v3453_v55 = vpop.f32.mrf.mxu1  ;;  %v5400_v39 = vld [vmem:[#allocation5 + $0x94c] sm:$0xf0]  ;;  %v5350_v40 = vld [vmem:[#allocation5 + $0x7c4] sm:$0xf]  ;;  %v5087_v41 = vld [vmem:[#allocation5 + $0x950] sm:$0xf0] }
 0x2e4   :  { %3720 = vmatpush.bf16.xpose.msra.mxu2 %v5062_v49  ;;  %3733 = vmatpush.bf16.xpose.msra.mxu3 %v5066_v50  ;;  %v3464_v49 = vpop.f32.mrf.mxu2  ;;  %v3477_v50 = vpop.f32.mrf.mxu3  ;;  %v4685_v55 = vld [vmem:[#allocation5 + $0x4a0] sm:$0xf] }
 0x2e5   :  { %v3465_v51 = vadd.f32 %v3464_v49, %v3452_v43  ;;  %v5401_v43 = vld [vmem:[#allocation5 + $0x954] sm:$0xf0] }
 0x2e7   :  { %v3478_v59 = vadd.f32 %v3477_v50, %v3465_v51 }
 0x2eb   :  { %3695 = vmatpush.bf16.xpose.msra.mxu0 %v4654_v1  ;;  %3708 = vmatpush.bf16.xpose.msra.mxu1 %v4658_v2  ;;  %v4678_v1 = vor.u32 %v5299_v60, %v4677_v58  ;;  %v4682_v2 = vor.u32 %v5249_v61, %v4679_v62  ;;  %v5300_v58 = vld [vmem:[#allocation5 + $0x62c] sm:$0xf0]  ;;  %v4687_v60 = vld [vmem:[#allocation5 + $0x630] sm:$0xf0]  ;;  %v4693_v62 = vld [vmem:[#allocation5 + $0x4a8] sm:$0xf] }
 0x2ec   :  { %3721 = vmatpush.bf16.xpose.msra.mxu2 %v4662_v3  ;;  %3734 = vmatpush.bf16.xpose.msra.mxu3 %v4666_v4  ;;  %v454_v3 = vld [vmem:[#allocation5 + $0xae8] sm:$0x11]  ;;  %v4269_v4 = vld [vmem:[#allocation5 + $0x170] sm:$0xf]  ;;  %v3466_v9 = vpop.f32.mrf.mxu2  ;;  %v3479_v10 = vpop.f32.mrf.mxu3 }
 0x2ed   :  { %v1733_v13 = vunpack.c.h.b16 %v454_v3  ;;  %v4285_v9 = vld [vmem:[#allocation5 + $0x180] sm:$0xf]  ;;  %v5200_v10 = vld [vmem:[#allocation5 + $0x30c] sm:$0xf0] }
 0x2f3   :  { %3696 = vmatpush.bf16.xpose.msra.mxu0 %v4254_v21  ;;  %3709 = vmatpush.bf16.xpose.msra.mxu1 %v4258_v22  ;;  %v1730_v21 = vunpack.c.l.b16 %v453_v8  ;;  %v1731_v22 = vunpack.c.h.b16 %v453_v8 }
 0x2f4   :  { %3722 = vmatpush.bf16.xpose.msra.mxu2 %v4262_v23  ;;  %3735 = vmatpush.bf16.xpose.msra.mxu3 %v4266_v24  ;;  %v1732_v23 = vunpack.c.l.b16 %v454_v3  ;;  %v4270_v24 = vor.u32 %v5198_v5, %v4269_v4  ;;  %v5151_v5 = vld [vmem:[#allocation5 + $0x18c] sm:$0xf] }
 0x2f5   :  { %v2130_v29 = vpack.c.b16 %v1730_v21, %v1730_v21 }
 0x2f6   :  { %v2132_v31 = vpack.c.b16 %v1732_v23, %v1732_v23  ;;  %v581_v23 = vld [vmem:[#allocation1] sm:$0xff] }
 0x2f7   :  { %v3490_v35 = vpop.f32.mrf.mxu0  ;;  %v3503_v36 = vpop.f32.mrf.mxu1 }
 0x2f8   :  { %v3491_v38 = vadd.f32 %v3490_v35, %v3478_v59  ;;  %v5250_v59 = vld [vmem:[#allocation5 + $0x4a4] sm:$0xf] }
 0x2fa   :  { %3697 = vmatmul.bf16.vlgmr.msra.gmra.mxu0 %v571_v30  ;;  %3710 = vmatmul.bf16.vlgmr.msra.gmra.mxu1 %v572_v32  ;;  %v2131_v30 = vpack.c.b16 %v1731_v22, %v1731_v22 }
 0x2fb   :  { %3745 = vmatpush.bf16.xpose.msrb.mxu0 %v2126_v25  ;;  %3758 = vmatpush.bf16.xpose.msrb.mxu1 %v2127_v26  ;;  %v4274_v25 = vor.u32 %v5148_v6, %v4271_v7  ;;  %v2133_v26 = vpack.c.b16 %v1733_v13, %v1733_v13  ;;  %v4295_v6 = vld [vmem:[#allocation5 + $0x318] sm:$0xf0]  ;;  %v4293_v13 = vld [vmem:[#allocation5 + $0x188] sm:$0xf] }
 0x2fc   :  { %3771 = vmatpush.bf16.xpose.msrb.mxu2 %v2128_v27  ;;  %3784 = vmatpush.bf16.xpose.msrb.mxu3 %v2129_v28  ;;  %v4278_v27 = vor.u32 %v5199_v12, %v4277_v11  ;;  %v4282_v28 = vor.u32 %v5149_v19, %v4279_v20  ;;  %v5150_v11 = vld [vmem:[#allocation5 + $0x184] sm:$0xf]  ;;  %v4287_v12 = vld [vmem:[#allocation5 + $0x310] sm:$0xf0] }
 0x2fd   :  { %3723 = vmatmul.bf16.vlgmr.msra.gmra.mxu2 %v573_v42  ;;  %3736 = vmatmul.bf16.vlgmr.msra.gmra.mxu3 %v574_v44  ;;  %v2543_v32 = vsel %vm2530_vm0, %v2133_v26, 0  ;;  %v5093_v42 = vld [vmem:[#allocation5 + $0x7c8] sm:$0xf]  ;;  %v5098_v44 = vor.u32 %v5351_v33, %v5095_v34  ;;  %v584_v26 = vld [vmem:[#allocation1 + $0x1b] sm:$0xff] }
 0x2ff   :  { %v2540_v49 = vsel %vm2530_vm0, %v5098_v44, 0  ;;  %v3492_v56 = vpop.f32.mrf.mxu0  ;;  %v3505_v57 = vpop.f32.mrf.mxu1 }
 0x300   :  { %v3516_v50 = vpop.f32.mrf.mxu2  ;;  %v3529_v51 = vpop.f32.mrf.mxu3 }
 0x303   :  { %3746 = vmatpush.bf16.xpose.msrb.mxu0 %v5070_v45  ;;  %3759 = vmatpush.bf16.xpose.msrb.mxu1 %v5074_v46  ;;  %v3504_v45 = vadd.f32 %v3503_v36, %v3491_v38  ;;  %v5086_v46 = vor.u32 %v5400_v39, %v5085_v37 }
 0x304   :  { %3772 = vmatpush.bf16.xpose.msrb.mxu2 %v5078_v47  ;;  %3785 = vmatpush.bf16.xpose.msrb.mxu3 %v5082_v48  ;;  %v5090_v47 = vor.u32 %v5350_v40, %v5087_v41  ;;  %v5094_v48 = vor.u32 %v5401_v43, %v5093_v42 }
 0x305   :  { %v3517_v54 = vadd.f32 %v3516_v50, %v3504_v45 }
 0x307   :  { %v3530_v61 = vadd.f32 %v3529_v51, %v3517_v54 }
 0x308   :  { %v3518_v7 = vpop.f32.mrf.mxu2  ;;  %v3531_v8 = vpop.f32.mrf.mxu3 }
 0x30b   :  { %3747 = vmatpush.bf16.xpose.msrb.mxu0 %v4670_v63  ;;  %3760 = vmatpush.bf16.xpose.msrb.mxu1 %v4674_v0  ;;  %v5301_v63 = vld [vmem:[#allocation5 + $0x634] sm:$0xf0]  ;;  %v4698_v0 = vor.u32 %v5251_v52, %v4695_v53 }
 0x30c   :  { %3773 = vmatpush.bf16.xpose.msrb.mxu2 %v4678_v1  ;;  %3786 = vmatpush.bf16.xpose.msrb.mxu3 %v4682_v2  ;;  %v4686_v1 = vor.u32 %v5300_v58, %v4685_v55  ;;  %v4690_v2 = vor.u32 %v5250_v59, %v4687_v60  ;;  %v4694_v3 = vor.u32 %v5301_v63, %v4693_v62  ;;  %v3846_v62 = vld [vmem:[#allocation8] sm:$0xf] }
 0x30d   :  { %v2537_v4 = vsel %vm2530_vm0, %v4698_v0, 0 }
 0x313   :  { %3748 = vmatpush.bf16.xpose.msrb.mxu0 %v4270_v24  ;;  %3761 = vmatpush.bf16.xpose.msrb.mxu1 %v4274_v25  ;;  %v582_v24 = vld [vmem:[#allocation1 + $0x9] sm:$0xff]  ;;  %v583_v25 = vld [vmem:[#allocation1 + $0x12] sm:$0xff] }
 0x314   :  { %3774 = vmatpush.bf16.xpose.msrb.mxu2 %v4278_v27  ;;  %3787 = vmatpush.bf16.xpose.msrb.mxu3 %v4282_v28 }
 0x317   :  { %v3542_v20 = vpop.f32.mrf.mxu0  ;;  %v3555_v21 = vpop.f32.mrf.mxu1 }
 0x318   :  { %v3543_v22 = vadd.f32 %v3542_v20, %v3530_v61 }
 0x31a   :  { %3749 = vmatmul.bf16.vlgmr.msrb.gmra.mxu0 %v575_v14  ;;  %3762 = vmatmul.bf16.vlgmr.msrb.gmra.mxu1 %v576_v16  ;;  %v5201_v14 = vld [vmem:[#allocation5 + $0x314] sm:$0xf0]  ;;  %v4286_v16 = vor.u32 %v5200_v10, %v4285_v9  ;;  %v3556_v27 = vadd.f32 %v3555_v21, %v3543_v22 }
 0x31b   :  { %3797 = vmatpush.bf16.xpose.msra.mxu0 %v2130_v29  ;;  %3810 = vmatpush.bf16.xpose.msra.mxu1 %v2131_v30  ;;  %v4294_v18 = vor.u32 %v5201_v14, %v4293_v13 }
 0x31c   :  { %3823 = vmatpush.bf16.xpose.msra.mxu2 %v2132_v31  ;;  %3836 = vmatpush.bf16.xpose.msra.mxu3 %v2543_v32 }
 0x31d   :  { %3775 = vmatmul.bf16.vlgmr.msrb.gmra.mxu2 %v577_v15  ;;  %3788 = vmatmul.bf16.vlgmr.msrb.gmra.mxu3 %v578_v17  ;;  %v4298_v15 = vor.u32 %v5151_v5, %v4295_v6  ;;  %v4290_v17 = vor.u32 %v5150_v11, %v4287_v12 }
 0x31f   :  { %v2534_v19 = vsel %vm2530_vm0, %v4298_v15, 0  ;;  %v3544_v31 = vpop.f32.mrf.mxu0  ;;  %v3557_v32 = vpop.f32.mrf.mxu1 }
 0x320   :  { %v3568_v28 = vpop.f32.mrf.mxu2  ;;  %v3581_v29 = vpop.f32.mrf.mxu3 }
 0x321   :  { %v3569_v30 = vadd.f32 %v3568_v28, %v3556_v27 }
 0x323   :  { %3798 = vmatpush.bf16.xpose.msra.mxu0 %v5086_v46  ;;  %3811 = vmatpush.bf16.xpose.msra.mxu1 %v5090_v47  ;;  %v3582_v33 = vadd.f32 %v3581_v29, %v3569_v30 }
 0x324   :  { %3824 = vmatpush.bf16.xpose.msra.mxu2 %v5094_v48  ;;  %3837 = vmatpush.bf16.xpose.msra.mxu3 %v2540_v49 }
 0x328   :  { %v3570_v34 = vpop.f32.mrf.mxu2  ;;  %v3583_v35 = vpop.f32.mrf.mxu3 }
 0x329   :  { %v5411_v34 = vld [vmem:[#allocation10] ss:$0 sm:$0xff] }
 0x32b   :  { %3799 = vmatpush.bf16.xpose.msra.mxu0 %v4686_v1  ;;  %3812 = vmatpush.bf16.xpose.msra.mxu1 %v4690_v2 }
 0x32c   :  { %3825 = vmatpush.bf16.xpose.msra.mxu2 %v4694_v3  ;;  %3838 = vmatpush.bf16.xpose.msra.mxu3 %v2537_v4 }
 0x333   :  { %3800 = vmatpush.bf16.xpose.msra.mxu0 %v4286_v16  ;;  %3813 = vmatpush.bf16.xpose.msra.mxu1 %v4290_v17 }
 0x334   :  { %3826 = vmatpush.bf16.xpose.msra.mxu2 %v4294_v18  ;;  %3839 = vmatpush.bf16.xpose.msra.mxu3 %v2534_v19 }
 0x337   :  { %v3594_v36 = vpop.f32.mrf.mxu0  ;;  %v3607_v37 = vpop.f32.mrf.mxu1 }
 0x338   :  { %v3595_v38 = vadd.f32 %v3594_v36, %v3582_v33 }
 0x33a   :  { %3801 = vmatmul.bf16.vlgmr.msra.gmra.mxu0 %v581_v23  ;;  %3814 = vmatmul.bf16.vlgmr.msra.gmra.mxu1 %v582_v24  ;;  %v3608_v39 = vadd.f32 %v3607_v37, %v3595_v38 }
 0x33b   :  { %3827 = vmatmul.bf16.vlgmr.msra.gmra.mxu2 %v583_v25  ;;  %5099 = vmatmul.msk.bf16.vlgmr.msra.gmra.mxu3 %vm2530_vm0, %v584_v26 }
 0x33c   :  { %5100 = vmatpush.xpose.msk.msrb.mxu0 %vm3851_vm1, %v3846_v62 }
 0x33f   :  { %v3596_v43 = vpop.f32.mrf.mxu0  ;;  %v3609_v44 = vpop.f32.mrf.mxu1 }
 0x340   :  { %v3620_v40 = vpop.f32.mrf.mxu2  ;;  %v3633_v41 = vpop.f32.mrf.mxu3 }
 0x341   :  { %v3621_v42 = vadd.f32 %v3620_v40, %v3608_v39 }
 0x343   :  { %v3634_v45 = vadd.f32 %v3633_v41, %v3621_v42 }
 0x348   :  { %v3622_v46 = vpop.f32.mrf.mxu2  ;;  %v3635_v47 = vpop.f32.mrf.mxu3 }
 0x357   :  { %v3646_v48 = vpop.f32.mrf.mxu0  ;;  %v3659_v49 = vpop.f32.mrf.mxu1 }
 0x358   :  { %v3647_v1 = vadd.f32 %v3646_v48, %v3634_v45 }
 0x35a   :  { %v3660_v2 = vadd.f32 %v3659_v49, %v3647_v1 }
 0x35f   :  { %v3648_v52 = vpop.f32.mrf.mxu0  ;;  %v3661_v53 = vpop.f32.mrf.mxu1 }
 0x360   :  { %v3672_v50 = vpop.f32.mrf.mxu2  ;;  %v3685_v51 = vpop.f32.mrf.mxu3 }
 0x361   :  { %v3673_v3 = vadd.f32 %v3672_v50, %v3660_v2 }
 0x363   :  { %v3686_v6 = vadd.f32 %v3685_v51, %v3673_v3 }
 0x368   :  { %v3674_v54 = vpop.f32.mrf.mxu2  ;;  %v3687_v55 = vpop.f32.mrf.mxu3 }
 0x377   :  { %v3698_v56 = vpop.f32.mrf.mxu0  ;;  %v3711_v57 = vpop.f32.mrf.mxu1 }
 0x378   :  { %v3699_v7 = vadd.f32 %v3698_v56, %v3686_v6 }
 0x37a   :  { %v3712_v10 = vadd.f32 %v3711_v57, %v3699_v7 }
 0x37f   :  { %v3700_v60 = vpop.f32.mrf.mxu0  ;;  %v3713_v61 = vpop.f32.mrf.mxu1 }
 0x380   :  { %v3724_v58 = vpop.f32.mrf.mxu2  ;;  %v3737_v59 = vpop.f32.mrf.mxu3 }
 0x381   :  { %v3725_v13 = vadd.f32 %v3724_v58, %v3712_v10 }
 0x383   :  { %v3738_v14 = vadd.f32 %v3737_v59, %v3725_v13 }
 0x388   :  { %v3726_v63 = vpop.f32.mrf.mxu2  ;;  %v3739_v0 = vpop.f32.mrf.mxu3 }
 0x397   :  { %v3750_v4 = vpop.f32.mrf.mxu0  ;;  %v3763_v5 = vpop.f32.mrf.mxu1 }
 0x398   :  { %v3751_v17 = vadd.f32 %v3750_v4, %v3738_v14 }
 0x39a   :  { %v3764_v18 = vadd.f32 %v3763_v5, %v3751_v17 }
 0x39f   :  { %v3752_v11 = vpop.f32.mrf.mxu0  ;;  %v3765_v12 = vpop.f32.mrf.mxu1 }
 0x3a0   :  { %v3776_v8 = vpop.f32.mrf.mxu2  ;;  %v3789_v9 = vpop.f32.mrf.mxu3 }
 0x3a1   :  { %v3777_v19 = vadd.f32 %v3776_v8, %v3764_v18 }
 0x3a3   :  { %v3790_v20 = vadd.f32 %v3789_v9, %v3777_v19 }
 0x3a8   :  { %v3778_v15 = vpop.f32.mrf.mxu2  ;;  %v3791_v16 = vpop.f32.mrf.mxu3 }
 0x3b7   :  { %v3802_v21 = vpop.f32.mrf.mxu0  ;;  %v3815_v22 = vpop.f32.mrf.mxu1 }
 0x3b8   :  { %v3803_v23 = vadd.f32 %v3802_v21, %v3790_v20 }
 0x3ba   :  { %v3816_v24 = vadd.f32 %v3815_v22, %v3803_v23 }
 0x3be   :  { %v3828_v25 = vpop.f32.mrf.mxu2  ;;  %v3841_v26 = vpop.f32.mrf.mxu3 }
 0x3bf   :  { %v3829_v27 = vadd.f32 %v3828_v25, %v3816_v24  ;;  %v3804_v28 = vpop.f32.mrf.mxu0  ;;  %v3817_v29 = vpop.f32.mrf.mxu1 }
 0x3c1   :  { %v3842_v30 = vadd.f32 %v3841_v26, %v3829_v27 }
 0x3c3   :  { %v3845_v31 = vmax.f32 %v3842_v30, 0.0 }
 0x3c5   :  { %5101 = vmatmul.msk.f32.vlgmr.msrb.gmra.mxu0 %vm3851_vm1, %v3845_v31 }
 0x3c6   :  { %v3830_v32 = vpop.f32.mrf.mxu2  ;;  %v3843_v33 = vpop.f32.mrf.mxu3 }
 0x442   :  { %v3875_v35 = vpop.f32.mrf.mxu0 }
 0x443   :  { %v3876_v36 = vadd.f32 %v5411_v34, %v3875_v35 }
 0x445   :  { %3879 = vst.msk [vmem:[#allocation11] sm:$0x3] %vm3878_vm2, %v3876_v36 }
 0x446   :  { %3890 = dma.vmem_to_hbm [thread:$0]  %s3886_s4, 32, %s3888_s19, [#allocation4]  }
 0x447   :  { %5562 = dma.done.wait [#allocation4], 32  }
 0x448   :  { %5563 = vsyncadd [#allocation4], 4294967264 }
 0x449   :  { %3895 = vsyncpa [#allocation3], 1 }
 0x44a   :  { %3896 = vsyncpa [#allocation6], 1 }
 0x44b   :  { %3897 = vsyncpa [#allocation9], 1 }
 0x44c   :  { %3898 = vsyncpa [#allocation4], 1 }

</bundles_post_ra>
